<compile_context>
chip_gen: v5e
topology: v5e:2x2
jax: 0.10.0
libtpu: 0.0.40
codegen_flags: <defaults>
</compile_context>

<pallas_src>
import math

import jax
import jax.numpy as jnp
from jax.experimental import pallas as pl
from jax.experimental.pallas import tpu as pltpu


# ----------------------------------------------------------------------------
# Fused Pallas kernel: whole ConvSequence on a block of `nb` images (NHWC).
# ----------------------------------------------------------------------------
def _conv_sequence_kernel(x_ref, w0_ref, wres_ref, b_ref, o_ref):
    """x_ref   : (nb, H, W, cin)        input block (VMEM)
       w0_ref  : (9*cin, cout)          first conv, tap-major im2col layout
       wres_ref: (4, 9*cout, cout)      [r0.conv0, r0.conv1, r1.conv0, r1.conv1]
       b_ref   : (5, cout)              [conv, r0c0, r0c1, r1c0, r1c1] biases
       o_ref   : (nb, H//2, W//2, cout) pooled + residual output block
    """
    f32 = jnp.float32
    b_all = b_ref[...]                                    # (5, cout)

    def conv3x3(v, w_flat, bias_row, relu_in):
        # v: (n, h, w, c) f32; w_flat: (9*c, cout); bias_row: (1, cout)
        n, h, w, c = v.shape
        if relu_in:
            v = jnp.maximum(v, 0.0)                       # relu(0)=0 keeps zero halo valid
        # zero halo built in VMEM (no HBM round trip of a padded copy)
        zrow = jnp.zeros((n, 1, w, c), f32)
        vp = jnp.concatenate([zrow, v, zrow], axis=1)     # (n, h+2, w, c)
        zcol = jnp.zeros((n, h + 2, 1, c), f32)
        vp = jnp.concatenate([zcol, vp, zcol], axis=2)    # (n, h+2, w+2, c)
        # im2col: one (n*h*w, 9*c) patch matrix -> single MXU matmul, f32 acc
        taps = [vp[:, dy:dy + h, dx:dx + w, :]
                for dy in range(3) for dx in range(3)]
        patches = jnp.concatenate(taps, axis=-1).reshape(n * h * w, 9 * c)
        y = jnp.dot(patches, w_flat, preferred_element_type=f32) + bias_row
        return y.reshape(n, h, w, -1)

    def maxpool3x3s2(v):
        # kernel=3, stride=2, padding=1; only output positions are evaluated.
        n, h, w, c = v.shape
        ho, wo = h // 2, w // 2
        # H direction: out row i = max(rows 2i-1, 2i, 2i+1)
        vr = v.reshape(n, ho, 2, w, c)
        ev, od = vr[:, :, 0], vr[:, :, 1]                 # rows 2i, 2i+1
        neg_r = jnp.full((n, 1, w, c), -jnp.inf, f32)
        pr = jnp.concatenate([neg_r, od[:, :ho - 1]], axis=1)   # rows 2i-1 (pad)
        hmax = jnp.maximum(jnp.maximum(ev, od), pr)       # (n, ho, w, c)
        # W direction: out col j = max(cols 2j-1, 2j, 2j+1)
        wr = hmax.reshape(n, ho, wo, 2, c)
        ev, od = wr[:, :, :, 0], wr[:, :, :, 1]           # cols 2j, 2j+1
        neg_c = jnp.full((n, ho, 1, c), -jnp.inf, f32)
        pc = jnp.concatenate([neg_c, od[:, :, :wo - 1]], axis=2)  # cols 2j-1 (pad)
        return jnp.maximum(jnp.maximum(ev, od), pc)       # (n, ho, wo, c)

    x = x_ref[...].astype(f32)                            # (nb, H, W, cin)
    y = conv3x3(x, w0_ref[...], b_all[0:1, :], relu_in=False)
    y = maxpool3x3s2(y)
    for blk in range(2):                                  # two residual blocks
        h1 = conv3x3(y, wres_ref[2 * blk],
                     b_all[1 + 2 * blk:2 + 2 * blk, :], relu_in=True)
        y = conv3x3(h1, wres_ref[2 * blk + 1],
                    b_all[2 + 2 * blk:3 + 2 * blk, :], relu_in=True) + y
    o_ref[...] = y.astype(o_ref.dtype)


# ----------------------------------------------------------------------------
# Wrappers
# ----------------------------------------------------------------------------
def _pick_batch_block(n):
    """Pick images-per-grid-step: amortise per-step overhead but keep >=2 grid
    steps so both v7x TensorCores are used (footprint is tiny at these shapes)."""
    if n < 4:
        return 1
    for nb in (8, 4, 2):
        if n % nb == 0 and n // nb >= 2:
            return nb
    return 1


def conv_sequence_forward_nhwc(x, params, *, batch_block=None):
    """x: (N, H, W, cin) NHWC.  Returns (N, H//2, W//2, cout) NHWC."""
    N, H, W, cin = x.shape
    assert H % 2 == 0 and W % 2 == 0, "even spatial dims expected"
    w0, b0 = params["conv"]
    cout = w0.shape[-1]
    (w_r0c0, b_r0c0), (w_r0c1, b_r0c1) = params["res0"]
    (w_r1c0, b_r1c0), (w_r1c1, b_r1c1) = params["res1"]
    wres = jnp.stack([w_r0c0, w_r0c1, w_r1c0, w_r1c1], axis=0)      # (4, 9*cout, cout)
    ball = jnp.stack([b0, b_r0c0, b_r0c1, b_r1c0, b_r1c1], axis=0)  # (5, cout)

    nb = batch_block or _pick_batch_block(N)
    assert N % nb == 0, (N, nb)
    Ho, Wo = H // 2, W // 2

    return pl.pallas_call(
        _conv_sequence_kernel,
        out_shape=jax.ShapeDtypeStruct((N, Ho, Wo, cout), x.dtype),
        grid=(N // nb,),
        in_specs=[
            pl.BlockSpec((nb, H, W, cin), lambda i: (i, 0, 0, 0)),
            pl.BlockSpec((9 * cin, cout), lambda i: (0, 0)),
            pl.BlockSpec((4, 9 * cout, cout), lambda i: (0, 0, 0)),
            pl.BlockSpec((5, cout), lambda i: (0, 0)),
        ],
        out_specs=pl.BlockSpec((nb, Ho, Wo, cout), lambda i: (i, 0, 0, 0)),
        compiler_params=pltpu.CompilerParams(dimension_semantics=("parallel",)),
    )(x, w0, wres, ball)


def conv_sequence_forward(x_nchw, params, *, batch_block=None):
    """PyTorch-convention entry point: NCHW in, NCHW out (single boundary
    transpose each way; chained ConvSequences should stay in NHWC)."""
    x = jnp.transpose(x_nchw, (0, 2, 3, 1))               # NCHW -> NHWC
    y = conv_sequence_forward_nhwc(x, params, batch_block=batch_block)
    return jnp.transpose(y, (0, 3, 1, 2))                 # NHWC -> NCHW


# ----------------------------------------------------------------------------
# Parameter init (mirrors layer_init_normed: per-out-channel L2 normalize,
# bias = 0).  Weights are stored pre-flattened for the im2col matmul.
# ----------------------------------------------------------------------------
def init_conv(key, cin, cout, scale):
    w = jax.random.normal(key, (cout, cin, 3, 3), jnp.float32)      # torch OIHW
    norm = jnp.sqrt(jnp.sum(w * w, axis=(1, 2, 3), keepdims=True))
    w = w * (scale / norm)
    b = jnp.zeros((cout,), jnp.float32)
    # OIHW -> (kh, kw, cin, cout) -> (9*cin, cout), flat index = (dy*3+dx)*cin + ci
    w_flat = jnp.transpose(w, (2, 3, 1, 0)).reshape(9 * cin, cout)
    return w_flat, b


def make_conv_sequence_params(key, cin, cout, scale):
    k = jax.random.split(key, 5)
    block_scale = scale / math.sqrt(2.0)                  # nblocks = 2
    s = math.sqrt(block_scale)                            # per-conv scale in ResidualBlock
    return {
        "conv": init_conv(k[0], cin, cout, 1.0),
        "res0": (init_conv(k[1], cout, cout, s), init_conv(k[2], cout, cout, s)),
        "res1": (init_conv(k[3], cout, cout, s), init_conv(k[4], cout, cout, s)),
    }


# ----------------------------------------------------------------------------
# Pure-JAX reference (for correctness check)
# ----------------------------------------------------------------------------
def _conv_ref(x, w_flat, b):
    cin = x.shape[-1]
    w = w_flat.reshape(3, 3, cin, -1)                     # HWIO
    y = jax.lax.conv_general_dilated(
        x, w, window_strides=(1, 1), padding="SAME",
        dimension_numbers=("NHWC", "HWIO", "NHWC"))
    return y + b


def _ref_forward_nhwc(x, params):
    w, b = params["conv"]
    x = _conv_ref(x, w, b)
    x = jax.lax.reduce_window(x, -jnp.inf, jax.lax.max,
                              (1, 3, 3, 1), (1, 2, 2, 1),
                              [(0, 0), (1, 1), (1, 1), (0, 0)])
    for name in ("res0", "res1"):
        (w0, b0), (w1, b1) = params[name]
        h = _conv_ref(jax.nn.relu(x), w0, b0)
        x = _conv_ref(jax.nn.relu(h), w1, b1) + x
    return x


# ----------------------------------------------------------------------------
if __name__ == "__main__":
    key = jax.random.PRNGKey(0)
    kx, kp, kx2 = jax.random.split(key, 3)

    N, Cin, H, W = 2, 4, 16, 16
    Cout = 16
    scale = 1.0 / math.sqrt(3.0)                          # 3 conv sequences in ppg_procgen

    x_nchw = jax.random.normal(kx, (N, Cin, H, W), jnp.float32)
    params = make_conv_sequence_params(kp, Cin, Cout, scale)

    y = jax.block_until_ready(conv_sequence_forward(x_nchw, params))

    # get_output_shape(): (out_channels, (H+1)//2, (W+1)//2)
    assert y.shape == (N, Cout, (H + 1) // 2, (W + 1) // 2), y.shape

    # numerical check vs plain-JAX reference
    y_ref = _ref_forward_nhwc(jnp.transpose(x_nchw, (0, 2, 3, 1)), params)
    y_ref = jnp.transpose(y_ref, (0, 3, 1, 2))
    assert jnp.allclose(y, y_ref, atol=1e-3, rtol=1e-3), float(
        jnp.max(jnp.abs(y - y_ref)))

    # also exercise the multi-image-per-grid-step path (nb > 1, grid >= 2)
    N2 = 8
    x2 = jax.random.normal(kx2, (N2, H, W, Cin), jnp.float32)       # NHWC path
    y2 = jax.block_until_ready(conv_sequence_forward_nhwc(x2, params))
    y2_ref = _ref_forward_nhwc(x2, params)
    assert y2.shape == (N2, H // 2, W // 2, Cout), y2.shape
    assert jnp.allclose(y2, y2_ref, atol=1e-3, rtol=1e-3), float(
        jnp.max(jnp.abs(y2 - y2_ref)))

    print("KERNEL_OK")
</pallas_src>

<mosaic_0001>
module attributes {stable_mosaic.version = 11 : i64} {
  func.func @_conv_sequence_kernel(%arg0: i32, %arg1: memref<1x16x16x4xf32, #tpu.memory_space<vmem>>, %arg2: memref<36x16xf32, #tpu.memory_space<vmem>>, %arg3: memref<4x144x16xf32, #tpu.memory_space<vmem>>, %arg4: memref<5x16xf32, #tpu.memory_space<vmem>>, %arg5: memref<1x8x8x16xf32, #tpu.memory_space<vmem>>) attributes {dimension_semantics = [#tpu.dimension_semantics<parallel>], iteration_bounds = array<i64: 2>, scalar_prefetch = 0 : i64, scratch_operands = 0 : i64, tpu.core_type = #tpu.core_type<tc>, window_params = [{transform_indices = @transform_0, window_bounds = array<i64: 1, 16, 16, 4>}, {pipeline_mode = #tpu.pipeline_mode<synchronous>, transform_indices = @transform_1, window_bounds = array<i64: 36, 16>}, {pipeline_mode = #tpu.pipeline_mode<synchronous>, transform_indices = @transform_2, window_bounds = array<i64: 4, 144, 16>}, {pipeline_mode = #tpu.pipeline_mode<synchronous>, transform_indices = @transform_3, window_bounds = array<i64: 5, 16>}, {transform_indices = @transform_4, window_bounds = array<i64: 1, 8, 8, 16>}]} {
    %c0 = arith.constant 0 : index
    %c0_0 = arith.constant 0 : index
    %0 = vector.load %arg4[%c0, %c0_0] : memref<5x16xf32, #tpu.memory_space<vmem>>, vector<5x16xf32>
    %c0_1 = arith.constant 0 : index
    %c0_2 = arith.constant 0 : index
    %c0_3 = arith.constant 0 : index
    %c0_4 = arith.constant 0 : index
    %1 = vector.load %arg1[%c0_1, %c0_2, %c0_3, %c0_4] : memref<1x16x16x4xf32, #tpu.memory_space<vmem>>, vector<1x16x16x4xf32>
    %c0_5 = arith.constant 0 : index
    %c0_6 = arith.constant 0 : index
    %2 = vector.load %arg2[%c0_5, %c0_6] : memref<36x16xf32, #tpu.memory_space<vmem>>, vector<36x16xf32>
    %3 = vector.extract_strided_slice %0 {offsets = [0, 0], sizes = [1, 16], strides = [1, 1]} : vector<5x16xf32> to vector<1x16xf32>
    %cst = arith.constant 0.000000e+00 : f32
    %4 = vector.broadcast %cst : f32 to vector<1x1x16x4xf32>
    %5 = tpu.concatenate %4, %1, %4 in 1 : vector<1x1x16x4xf32>, vector<1x16x16x4xf32>, vector<1x1x16x4xf32> -> vector<1x18x16x4xf32>
    %cst_7 = arith.constant 0.000000e+00 : f32
    %6 = vector.broadcast %cst_7 : f32 to vector<1x18x1x4xf32>
    %7 = tpu.concatenate %6, %5, %6 in 2 : vector<1x18x1x4xf32>, vector<1x18x16x4xf32>, vector<1x18x1x4xf32> -> vector<1x18x18x4xf32>
    %8 = vector.extract_strided_slice %7 {offsets = [0, 0, 0, 0], sizes = [1, 16, 16, 4], strides = [1, 1, 1, 1]} : vector<1x18x18x4xf32> to vector<1x16x16x4xf32>
    %9 = vector.extract_strided_slice %7 {offsets = [0, 0, 1, 0], sizes = [1, 16, 16, 4], strides = [1, 1, 1, 1]} : vector<1x18x18x4xf32> to vector<1x16x16x4xf32>
    %10 = vector.extract_strided_slice %7 {offsets = [0, 0, 2, 0], sizes = [1, 16, 16, 4], strides = [1, 1, 1, 1]} : vector<1x18x18x4xf32> to vector<1x16x16x4xf32>
    %11 = vector.extract_strided_slice %7 {offsets = [0, 1, 0, 0], sizes = [1, 16, 16, 4], strides = [1, 1, 1, 1]} : vector<1x18x18x4xf32> to vector<1x16x16x4xf32>
    %12 = vector.extract_strided_slice %7 {offsets = [0, 1, 1, 0], sizes = [1, 16, 16, 4], strides = [1, 1, 1, 1]} : vector<1x18x18x4xf32> to vector<1x16x16x4xf32>
    %13 = vector.extract_strided_slice %7 {offsets = [0, 1, 2, 0], sizes = [1, 16, 16, 4], strides = [1, 1, 1, 1]} : vector<1x18x18x4xf32> to vector<1x16x16x4xf32>
    %14 = vector.extract_strided_slice %7 {offsets = [0, 2, 0, 0], sizes = [1, 16, 16, 4], strides = [1, 1, 1, 1]} : vector<1x18x18x4xf32> to vector<1x16x16x4xf32>
    %15 = vector.extract_strided_slice %7 {offsets = [0, 2, 1, 0], sizes = [1, 16, 16, 4], strides = [1, 1, 1, 1]} : vector<1x18x18x4xf32> to vector<1x16x16x4xf32>
    %16 = vector.extract_strided_slice %7 {offsets = [0, 2, 2, 0], sizes = [1, 16, 16, 4], strides = [1, 1, 1, 1]} : vector<1x18x18x4xf32> to vector<1x16x16x4xf32>
    %17 = tpu.concatenate %8, %9, %10, %11, %12, %13, %14, %15, %16 in 3 : vector<1x16x16x4xf32>, vector<1x16x16x4xf32>, vector<1x16x16x4xf32>, vector<1x16x16x4xf32>, vector<1x16x16x4xf32>, vector<1x16x16x4xf32>, vector<1x16x16x4xf32>, vector<1x16x16x4xf32>, vector<1x16x16x4xf32> -> vector<1x16x16x36xf32>
    %18 = vector.shape_cast %17 : vector<1x16x16x36xf32> to vector<256x36xf32>
    %cst_8 = arith.constant dense<0.000000e+00> : vector<256x16xf32>
    %19 = tpu.matmul %18, %2, %cst_8 {dimension_numbers = #tpu.dot_dimension_numbers<[1], [0], [0], [1], [0, 0, 1, 1], [], []>} : vector<256x36xf32>, vector<36x16xf32>, vector<256x16xf32> -> vector<256x16xf32>
    %20 = vector.broadcast %3 : vector<1x16xf32> to vector<256x16xf32>
    %21 = arith.addf %19, %20 : vector<256x16xf32>
    %22 = vector.shape_cast %21 : vector<256x16xf32> to vector<1x16x16x16xf32>
    %23 = vector.shape_cast %22 : vector<1x16x16x16xf32> to vector<1x8x2x16x16xf32>
    %24 = vector.extract_strided_slice %23 {offsets = [0, 0, 0, 0, 0], sizes = [1, 8, 1, 16, 16], strides = [1, 1, 1, 1, 1]} : vector<1x8x2x16x16xf32> to vector<1x8x1x16x16xf32>
    %25 = vector.shape_cast %24 : vector<1x8x1x16x16xf32> to vector<1x8x16x16xf32>
    %26 = vector.extract_strided_slice %23 {offsets = [0, 0, 1, 0, 0], sizes = [1, 8, 1, 16, 16], strides = [1, 1, 1, 1, 1]} : vector<1x8x2x16x16xf32> to vector<1x8x1x16x16xf32>
    %27 = vector.shape_cast %26 : vector<1x8x1x16x16xf32> to vector<1x8x16x16xf32>
    %cst_9 = arith.constant 0xFF800000 : f32
    %28 = vector.broadcast %cst_9 : f32 to vector<1x1x16x16xf32>
    %29 = vector.extract_strided_slice %27 {offsets = [0, 0, 0, 0], sizes = [1, 7, 16, 16], strides = [1, 1, 1, 1]} : vector<1x8x16x16xf32> to vector<1x7x16x16xf32>
    %30 = tpu.concatenate %28, %29 in 1 : vector<1x1x16x16xf32>, vector<1x7x16x16xf32> -> vector<1x8x16x16xf32>
    %31 = arith.maximumf %25, %27 : vector<1x8x16x16xf32>
    %32 = arith.maximumf %31, %30 : vector<1x8x16x16xf32>
    %33 = vector.shape_cast %32 : vector<1x8x16x16xf32> to vector<1x8x8x2x16xf32>
    %34 = vector.extract_strided_slice %33 {offsets = [0, 0, 0, 0, 0], sizes = [1, 8, 8, 1, 16], strides = [1, 1, 1, 1, 1]} : vector<1x8x8x2x16xf32> to vector<1x8x8x1x16xf32>
    %35 = vector.shape_cast %34 : vector<1x8x8x1x16xf32> to vector<1x8x8x16xf32>
    %36 = vector.extract_strided_slice %33 {offsets = [0, 0, 0, 1, 0], sizes = [1, 8, 8, 1, 16], strides = [1, 1, 1, 1, 1]} : vector<1x8x8x2x16xf32> to vector<1x8x8x1x16xf32>
    %37 = vector.shape_cast %36 : vector<1x8x8x1x16xf32> to vector<1x8x8x16xf32>
    %cst_10 = arith.constant 0xFF800000 : f32
    %38 = vector.broadcast %cst_10 : f32 to vector<1x8x1x16xf32>
    %39 = vector.extract_strided_slice %37 {offsets = [0, 0, 0, 0], sizes = [1, 8, 7, 16], strides = [1, 1, 1, 1]} : vector<1x8x8x16xf32> to vector<1x8x7x16xf32>
    %40 = tpu.concatenate %38, %39 in 2 : vector<1x8x1x16xf32>, vector<1x8x7x16xf32> -> vector<1x8x8x16xf32>
    %41 = arith.maximumf %35, %37 : vector<1x8x8x16xf32>
    %42 = arith.maximumf %41, %40 : vector<1x8x8x16xf32>
    %c0_11 = arith.constant 0 : index
    %c0_12 = arith.constant 0 : index
    %c0_13 = arith.constant 0 : index
    %43 = vector.load %arg3[%c0_11, %c0_12, %c0_13] : memref<4x144x16xf32, #tpu.memory_space<vmem>>, vector<1x144x16xf32>
    %44 = vector.shape_cast %43 : vector<1x144x16xf32> to vector<144x16xf32>
    %45 = vector.extract_strided_slice %0 {offsets = [1, 0], sizes = [1, 16], strides = [1, 1]} : vector<5x16xf32> to vector<1x16xf32>
    %cst_14 = arith.constant 0.000000e+00 : f32
    %46 = vector.broadcast %cst_14 : f32 to vector<1x8x8x16xf32>
    %47 = arith.maximumf %42, %46 : vector<1x8x8x16xf32>
    %cst_15 = arith.constant 0.000000e+00 : f32
    %48 = vector.broadcast %cst_15 : f32 to vector<1x1x8x16xf32>
    %49 = tpu.concatenate %48, %47, %48 in 1 : vector<1x1x8x16xf32>, vector<1x8x8x16xf32>, vector<1x1x8x16xf32> -> vector<1x10x8x16xf32>
    %cst_16 = arith.constant 0.000000e+00 : f32
    %50 = vector.broadcast %cst_16 : f32 to vector<1x10x1x16xf32>
    %51 = tpu.concatenate %50, %49, %50 in 2 : vector<1x10x1x16xf32>, vector<1x10x8x16xf32>, vector<1x10x1x16xf32> -> vector<1x10x10x16xf32>
    %52 = vector.extract_strided_slice %51 {offsets = [0, 0, 0, 0], sizes = [1, 8, 8, 16], strides = [1, 1, 1, 1]} : vector<1x10x10x16xf32> to vector<1x8x8x16xf32>
    %53 = vector.extract_strided_slice %51 {offsets = [0, 0, 1, 0], sizes = [1, 8, 8, 16], strides = [1, 1, 1, 1]} : vector<1x10x10x16xf32> to vector<1x8x8x16xf32>
    %54 = vector.extract_strided_slice %51 {offsets = [0, 0, 2, 0], sizes = [1, 8, 8, 16], strides = [1, 1, 1, 1]} : vector<1x10x10x16xf32> to vector<1x8x8x16xf32>
    %55 = vector.extract_strided_slice %51 {offsets = [0, 1, 0, 0], sizes = [1, 8, 8, 16], strides = [1, 1, 1, 1]} : vector<1x10x10x16xf32> to vector<1x8x8x16xf32>
    %56 = vector.extract_strided_slice %51 {offsets = [0, 1, 1, 0], sizes = [1, 8, 8, 16], strides = [1, 1, 1, 1]} : vector<1x10x10x16xf32> to vector<1x8x8x16xf32>
    %57 = vector.extract_strided_slice %51 {offsets = [0, 1, 2, 0], sizes = [1, 8, 8, 16], strides = [1, 1, 1, 1]} : vector<1x10x10x16xf32> to vector<1x8x8x16xf32>
    %58 = vector.extract_strided_slice %51 {offsets = [0, 2, 0, 0], sizes = [1, 8, 8, 16], strides = [1, 1, 1, 1]} : vector<1x10x10x16xf32> to vector<1x8x8x16xf32>
    %59 = vector.extract_strided_slice %51 {offsets = [0, 2, 1, 0], sizes = [1, 8, 8, 16], strides = [1, 1, 1, 1]} : vector<1x10x10x16xf32> to vector<1x8x8x16xf32>
    %60 = vector.extract_strided_slice %51 {offsets = [0, 2, 2, 0], sizes = [1, 8, 8, 16], strides = [1, 1, 1, 1]} : vector<1x10x10x16xf32> to vector<1x8x8x16xf32>
    %61 = tpu.concatenate %52, %53, %54, %55, %56, %57, %58, %59, %60 in 3 : vector<1x8x8x16xf32>, vector<1x8x8x16xf32>, vector<1x8x8x16xf32>, vector<1x8x8x16xf32>, vector<1x8x8x16xf32>, vector<1x8x8x16xf32>, vector<1x8x8x16xf32>, vector<1x8x8x16xf32>, vector<1x8x8x16xf32> -> vector<1x8x8x144xf32>
    %62 = vector.shape_cast %61 : vector<1x8x8x144xf32> to vector<64x144xf32>
    %cst_17 = arith.constant dense<0.000000e+00> : vector<64x16xf32>
    %63 = tpu.matmul %62, %44, %cst_17 {dimension_numbers = #tpu.dot_dimension_numbers<[1], [0], [0], [1], [0, 0, 1, 1], [], []>} : vector<64x144xf32>, vector<144x16xf32>, vector<64x16xf32> -> vector<64x16xf32>
    %64 = vector.broadcast %45 : vector<1x16xf32> to vector<64x16xf32>
    %65 = arith.addf %63, %64 : vector<64x16xf32>
    %66 = vector.shape_cast %65 : vector<64x16xf32> to vector<1x8x8x16xf32>
    %c1 = arith.constant 1 : index
    %c0_18 = arith.constant 0 : index
    %c0_19 = arith.constant 0 : index
    %67 = vector.load %arg3[%c1, %c0_18, %c0_19] : memref<4x144x16xf32, #tpu.memory_space<vmem>>, vector<1x144x16xf32>
    %68 = vector.shape_cast %67 : vector<1x144x16xf32> to vector<144x16xf32>
    %69 = vector.extract_strided_slice %0 {offsets = [2, 0], sizes = [1, 16], strides = [1, 1]} : vector<5x16xf32> to vector<1x16xf32>
    %cst_20 = arith.constant 0.000000e+00 : f32
    %70 = vector.broadcast %cst_20 : f32 to vector<1x8x8x16xf32>
    %71 = arith.maximumf %66, %70 : vector<1x8x8x16xf32>
    %cst_21 = arith.constant 0.000000e+00 : f32
    %72 = vector.broadcast %cst_21 : f32 to vector<1x1x8x16xf32>
    %73 = tpu.concatenate %72, %71, %72 in 1 : vector<1x1x8x16xf32>, vector<1x8x8x16xf32>, vector<1x1x8x16xf32> -> vector<1x10x8x16xf32>
    %cst_22 = arith.constant 0.000000e+00 : f32
    %74 = vector.broadcast %cst_22 : f32 to vector<1x10x1x16xf32>
    %75 = tpu.concatenate %74, %73, %74 in 2 : vector<1x10x1x16xf32>, vector<1x10x8x16xf32>, vector<1x10x1x16xf32> -> vector<1x10x10x16xf32>
    %76 = vector.extract_strided_slice %75 {offsets = [0, 0, 0, 0], sizes = [1, 8, 8, 16], strides = [1, 1, 1, 1]} : vector<1x10x10x16xf32> to vector<1x8x8x16xf32>
    %77 = vector.extract_strided_slice %75 {offsets = [0, 0, 1, 0], sizes = [1, 8, 8, 16], strides = [1, 1, 1, 1]} : vector<1x10x10x16xf32> to vector<1x8x8x16xf32>
    %78 = vector.extract_strided_slice %75 {offsets = [0, 0, 2, 0], sizes = [1, 8, 8, 16], strides = [1, 1, 1, 1]} : vector<1x10x10x16xf32> to vector<1x8x8x16xf32>
    %79 = vector.extract_strided_slice %75 {offsets = [0, 1, 0, 0], sizes = [1, 8, 8, 16], strides = [1, 1, 1, 1]} : vector<1x10x10x16xf32> to vector<1x8x8x16xf32>
    %80 = vector.extract_strided_slice %75 {offsets = [0, 1, 1, 0], sizes = [1, 8, 8, 16], strides = [1, 1, 1, 1]} : vector<1x10x10x16xf32> to vector<1x8x8x16xf32>
    %81 = vector.extract_strided_slice %75 {offsets = [0, 1, 2, 0], sizes = [1, 8, 8, 16], strides = [1, 1, 1, 1]} : vector<1x10x10x16xf32> to vector<1x8x8x16xf32>
    %82 = vector.extract_strided_slice %75 {offsets = [0, 2, 0, 0], sizes = [1, 8, 8, 16], strides = [1, 1, 1, 1]} : vector<1x10x10x16xf32> to vector<1x8x8x16xf32>
    %83 = vector.extract_strided_slice %75 {offsets = [0, 2, 1, 0], sizes = [1, 8, 8, 16], strides = [1, 1, 1, 1]} : vector<1x10x10x16xf32> to vector<1x8x8x16xf32>
    %84 = vector.extract_strided_slice %75 {offsets = [0, 2, 2, 0], sizes = [1, 8, 8, 16], strides = [1, 1, 1, 1]} : vector<1x10x10x16xf32> to vector<1x8x8x16xf32>
    %85 = tpu.concatenate %76, %77, %78, %79, %80, %81, %82, %83, %84 in 3 : vector<1x8x8x16xf32>, vector<1x8x8x16xf32>, vector<1x8x8x16xf32>, vector<1x8x8x16xf32>, vector<1x8x8x16xf32>, vector<1x8x8x16xf32>, vector<1x8x8x16xf32>, vector<1x8x8x16xf32>, vector<1x8x8x16xf32> -> vector<1x8x8x144xf32>
    %86 = vector.shape_cast %85 : vector<1x8x8x144xf32> to vector<64x144xf32>
    %cst_23 = arith.constant dense<0.000000e+00> : vector<64x16xf32>
    %87 = tpu.matmul %86, %68, %cst_23 {dimension_numbers = #tpu.dot_dimension_numbers<[1], [0], [0], [1], [0, 0, 1, 1], [], []>} : vector<64x144xf32>, vector<144x16xf32>, vector<64x16xf32> -> vector<64x16xf32>
    %88 = vector.broadcast %69 : vector<1x16xf32> to vector<64x16xf32>
    %89 = arith.addf %87, %88 : vector<64x16xf32>
    %90 = vector.shape_cast %89 : vector<64x16xf32> to vector<1x8x8x16xf32>
    %91 = arith.addf %90, %42 : vector<1x8x8x16xf32>
    %c2 = arith.constant 2 : index
    %c0_24 = arith.constant 0 : index
    %c0_25 = arith.constant 0 : index
    %92 = vector.load %arg3[%c2, %c0_24, %c0_25] : memref<4x144x16xf32, #tpu.memory_space<vmem>>, vector<1x144x16xf32>
    %93 = vector.shape_cast %92 : vector<1x144x16xf32> to vector<144x16xf32>
    %94 = vector.extract_strided_slice %0 {offsets = [3, 0], sizes = [1, 16], strides = [1, 1]} : vector<5x16xf32> to vector<1x16xf32>
    %cst_26 = arith.constant 0.000000e+00 : f32
    %95 = vector.broadcast %cst_26 : f32 to vector<1x8x8x16xf32>
    %96 = arith.maximumf %91, %95 : vector<1x8x8x16xf32>
    %cst_27 = arith.constant 0.000000e+00 : f32
    %97 = vector.broadcast %cst_27 : f32 to vector<1x1x8x16xf32>
    %98 = tpu.concatenate %97, %96, %97 in 1 : vector<1x1x8x16xf32>, vector<1x8x8x16xf32>, vector<1x1x8x16xf32> -> vector<1x10x8x16xf32>
    %cst_28 = arith.constant 0.000000e+00 : f32
    %99 = vector.broadcast %cst_28 : f32 to vector<1x10x1x16xf32>
    %100 = tpu.concatenate %99, %98, %99 in 2 : vector<1x10x1x16xf32>, vector<1x10x8x16xf32>, vector<1x10x1x16xf32> -> vector<1x10x10x16xf32>
    %101 = vector.extract_strided_slice %100 {offsets = [0, 0, 0, 0], sizes = [1, 8, 8, 16], strides = [1, 1, 1, 1]} : vector<1x10x10x16xf32> to vector<1x8x8x16xf32>
    %102 = vector.extract_strided_slice %100 {offsets = [0, 0, 1, 0], sizes = [1, 8, 8, 16], strides = [1, 1, 1, 1]} : vector<1x10x10x16xf32> to vector<1x8x8x16xf32>
    %103 = vector.extract_strided_slice %100 {offsets = [0, 0, 2, 0], sizes = [1, 8, 8, 16], strides = [1, 1, 1, 1]} : vector<1x10x10x16xf32> to vector<1x8x8x16xf32>
    %104 = vector.extract_strided_slice %100 {offsets = [0, 1, 0, 0], sizes = [1, 8, 8, 16], strides = [1, 1, 1, 1]} : vector<1x10x10x16xf32> to vector<1x8x8x16xf32>
    %105 = vector.extract_strided_slice %100 {offsets = [0, 1, 1, 0], sizes = [1, 8, 8, 16], strides = [1, 1, 1, 1]} : vector<1x10x10x16xf32> to vector<1x8x8x16xf32>
    %106 = vector.extract_strided_slice %100 {offsets = [0, 1, 2, 0], sizes = [1, 8, 8, 16], strides = [1, 1, 1, 1]} : vector<1x10x10x16xf32> to vector<1x8x8x16xf32>
    %107 = vector.extract_strided_slice %100 {offsets = [0, 2, 0, 0], sizes = [1, 8, 8, 16], strides = [1, 1, 1, 1]} : vector<1x10x10x16xf32> to vector<1x8x8x16xf32>
    %108 = vector.extract_strided_slice %100 {offsets = [0, 2, 1, 0], sizes = [1, 8, 8, 16], strides = [1, 1, 1, 1]} : vector<1x10x10x16xf32> to vector<1x8x8x16xf32>
    %109 = vector.extract_strided_slice %100 {offsets = [0, 2, 2, 0], sizes = [1, 8, 8, 16], strides = [1, 1, 1, 1]} : vector<1x10x10x16xf32> to vector<1x8x8x16xf32>
    %110 = tpu.concatenate %101, %102, %103, %104, %105, %106, %107, %108, %109 in 3 : vector<1x8x8x16xf32>, vector<1x8x8x16xf32>, vector<1x8x8x16xf32>, vector<1x8x8x16xf32>, vector<1x8x8x16xf32>, vector<1x8x8x16xf32>, vector<1x8x8x16xf32>, vector<1x8x8x16xf32>, vector<1x8x8x16xf32> -> vector<1x8x8x144xf32>
    %111 = vector.shape_cast %110 : vector<1x8x8x144xf32> to vector<64x144xf32>
    %cst_29 = arith.constant dense<0.000000e+00> : vector<64x16xf32>
    %112 = tpu.matmul %111, %93, %cst_29 {dimension_numbers = #tpu.dot_dimension_numbers<[1], [0], [0], [1], [0, 0, 1, 1], [], []>} : vector<64x144xf32>, vector<144x16xf32>, vector<64x16xf32> -> vector<64x16xf32>
    %113 = vector.broadcast %94 : vector<1x16xf32> to vector<64x16xf32>
    %114 = arith.addf %112, %113 : vector<64x16xf32>
    %115 = vector.shape_cast %114 : vector<64x16xf32> to vector<1x8x8x16xf32>
    %c3 = arith.constant 3 : index
    %c0_30 = arith.constant 0 : index
    %c0_31 = arith.constant 0 : index
    %116 = vector.load %arg3[%c3, %c0_30, %c0_31] : memref<4x144x16xf32, #tpu.memory_space<vmem>>, vector<1x144x16xf32>
    %117 = vector.shape_cast %116 : vector<1x144x16xf32> to vector<144x16xf32>
    %118 = vector.extract_strided_slice %0 {offsets = [4, 0], sizes = [1, 16], strides = [1, 1]} : vector<5x16xf32> to vector<1x16xf32>
    %cst_32 = arith.constant 0.000000e+00 : f32
    %119 = vector.broadcast %cst_32 : f32 to vector<1x8x8x16xf32>
    %120 = arith.maximumf %115, %119 : vector<1x8x8x16xf32>
    %cst_33 = arith.constant 0.000000e+00 : f32
    %121 = vector.broadcast %cst_33 : f32 to vector<1x1x8x16xf32>
    %122 = tpu.concatenate %121, %120, %121 in 1 : vector<1x1x8x16xf32>, vector<1x8x8x16xf32>, vector<1x1x8x16xf32> -> vector<1x10x8x16xf32>
    %cst_34 = arith.constant 0.000000e+00 : f32
    %123 = vector.broadcast %cst_34 : f32 to vector<1x10x1x16xf32>
    %124 = tpu.concatenate %123, %122, %123 in 2 : vector<1x10x1x16xf32>, vector<1x10x8x16xf32>, vector<1x10x1x16xf32> -> vector<1x10x10x16xf32>
    %125 = vector.extract_strided_slice %124 {offsets = [0, 0, 0, 0], sizes = [1, 8, 8, 16], strides = [1, 1, 1, 1]} : vector<1x10x10x16xf32> to vector<1x8x8x16xf32>
    %126 = vector.extract_strided_slice %124 {offsets = [0, 0, 1, 0], sizes = [1, 8, 8, 16], strides = [1, 1, 1, 1]} : vector<1x10x10x16xf32> to vector<1x8x8x16xf32>
    %127 = vector.extract_strided_slice %124 {offsets = [0, 0, 2, 0], sizes = [1, 8, 8, 16], strides = [1, 1, 1, 1]} : vector<1x10x10x16xf32> to vector<1x8x8x16xf32>
    %128 = vector.extract_strided_slice %124 {offsets = [0, 1, 0, 0], sizes = [1, 8, 8, 16], strides = [1, 1, 1, 1]} : vector<1x10x10x16xf32> to vector<1x8x8x16xf32>
    %129 = vector.extract_strided_slice %124 {offsets = [0, 1, 1, 0], sizes = [1, 8, 8, 16], strides = [1, 1, 1, 1]} : vector<1x10x10x16xf32> to vector<1x8x8x16xf32>
    %130 = vector.extract_strided_slice %124 {offsets = [0, 1, 2, 0], sizes = [1, 8, 8, 16], strides = [1, 1, 1, 1]} : vector<1x10x10x16xf32> to vector<1x8x8x16xf32>
    %131 = vector.extract_strided_slice %124 {offsets = [0, 2, 0, 0], sizes = [1, 8, 8, 16], strides = [1, 1, 1, 1]} : vector<1x10x10x16xf32> to vector<1x8x8x16xf32>
    %132 = vector.extract_strided_slice %124 {offsets = [0, 2, 1, 0], sizes = [1, 8, 8, 16], strides = [1, 1, 1, 1]} : vector<1x10x10x16xf32> to vector<1x8x8x16xf32>
    %133 = vector.extract_strided_slice %124 {offsets = [0, 2, 2, 0], sizes = [1, 8, 8, 16], strides = [1, 1, 1, 1]} : vector<1x10x10x16xf32> to vector<1x8x8x16xf32>
    %134 = tpu.concatenate %125, %126, %127, %128, %129, %130, %131, %132, %133 in 3 : vector<1x8x8x16xf32>, vector<1x8x8x16xf32>, vector<1x8x8x16xf32>, vector<1x8x8x16xf32>, vector<1x8x8x16xf32>, vector<1x8x8x16xf32>, vector<1x8x8x16xf32>, vector<1x8x8x16xf32>, vector<1x8x8x16xf32> -> vector<1x8x8x144xf32>
    %135 = vector.shape_cast %134 : vector<1x8x8x144xf32> to vector<64x144xf32>
    %cst_35 = arith.constant dense<0.000000e+00> : vector<64x16xf32>
    %136 = tpu.matmul %135, %117, %cst_35 {dimension_numbers = #tpu.dot_dimension_numbers<[1], [0], [0], [1], [0, 0, 1, 1], [], []>} : vector<64x144xf32>, vector<144x16xf32>, vector<64x16xf32> -> vector<64x16xf32>
    %137 = vector.broadcast %118 : vector<1x16xf32> to vector<64x16xf32>
    %138 = arith.addf %136, %137 : vector<64x16xf32>
    %139 = vector.shape_cast %138 : vector<64x16xf32> to vector<1x8x8x16xf32>
    %140 = arith.addf %139, %91 : vector<1x8x8x16xf32>
    %c0_36 = arith.constant 0 : index
    %c0_37 = arith.constant 0 : index
    %c0_38 = arith.constant 0 : index
    %c0_39 = arith.constant 0 : index
    %141 = vector.load %arg5[%c0_36, %c0_37, %c0_38, %c0_39] : memref<1x8x8x16xf32, #tpu.memory_space<vmem>>, vector<1x8x8x16xf32>
    tpu.vector_store %arg5[%c0_36, %c0_37, %c0_38, %c0_39], %140 {strides = array<i32>} : memref<1x8x8x16xf32, #tpu.memory_space<vmem>>, vector<1x8x8x16xf32>,
    return
  }
  func.func @transform_0(%arg0: i32) -> (i32, i32, i32, i32) {
    %c0_i32 = arith.constant 0 : i32
    %c0_i32_0 = arith.constant 0 : i32
    %c0_i32_1 = arith.constant 0 : i32
    %c0_i32_2 = arith.constant 0 : i32
    return %arg0, %c0_i32, %c0_i32_0, %c0_i32_1 : i32, i32, i32, i32
  }
  func.func @transform_1(%arg0: i32) -> (i32, i32) {
    %c0_i32 = arith.constant 0 : i32
    %c0_i32_0 = arith.constant 0 : i32
    %c0_i32_1 = arith.constant 0 : i32
    return %c0_i32, %c0_i32_0 : i32, i32
  }
  func.func @transform_2(%arg0: i32) -> (i32, i32, i32) {
    %c0_i32 = arith.constant 0 : i32
    %c0_i32_0 = arith.constant 0 : i32
    %c0_i32_1 = arith.constant 0 : i32
    %c0_i32_2 = arith.constant 0 : i32
    return %c0_i32, %c0_i32_0, %c0_i32_1 : i32, i32, i32
  }
  func.func @transform_3(%arg0: i32) -> (i32, i32) {
    %c0_i32 = arith.constant 0 : i32
    %c0_i32_0 = arith.constant 0 : i32
    %c0_i32_1 = arith.constant 0 : i32
    return %c0_i32, %c0_i32_0 : i32, i32
  }
  func.func @transform_4(%arg0: i32) -> (i32, i32, i32, i32) {
    %c0_i32 = arith.constant 0 : i32
    %c0_i32_0 = arith.constant 0 : i32
    %c0_i32_1 = arith.constant 0 : i32
    %c0_i32_2 = arith.constant 0 : i32
    return %arg0, %c0_i32, %c0_i32_0, %c0_i32_1 : i32, i32, i32, i32
  }
}

</mosaic_0001>

<bundles_post_ra>
// kernel: tpu_custom_call.1
= control target key start
LH: loop header
LB: loop body
LE: loop exit
PB: predicated region body
PF: predicated region fallthrough
CT: control target
= control target key end

     0   :  { %9 = vsyncpa [#allocation3], 0  ;;  %s9135_s0 = inlined_call_operand.vmem [shape: f32[2,16,16,4], index: 0, kind: input, shape index: {}]   ;;  %s9136_s1 = inlined_call_operand.vmem [shape: f32[36,16], index: 1, kind: input, shape index: {}]   ;;  %s9137_s2 = inlined_call_operand.vmem [shape: f32[4,144,16], index: 2, kind: input, shape index: {}]   ;;  %s9138_s3 = inlined_call_operand.vmem [shape: f32[5,16], index: 3, kind: input, shape index: {}]   ;;  %s9139_s4 = inlined_call_operand.hbm [shape: f32[2,8,8,16], index: 4, kind: output, shape index: {}]  }
   0x1   :  { %11 = vsyncpa [#allocation3 + $0x1], 0  ;;  %s5709_s15 = smov 0   ;;  %s5711_s16 = smov 0  }
   0x2   :  { %s5713_s17 = smov 0   ;;  %s5715_s18 = smov 0  }
   0x3 LB: > { %s5730_s19 = sadd.s32 4294967295, %s5667_s18   ;;  %s4871_s20 = sadd.s32 4294967294, %s5667_s18   ;;  %s5667_s18 = sphi %s5715_s18, %s9684_s18   ;;  %s5663_s17 = sphi %s5713_s17, %s9683_s17   ;;  %s5659_s16 = sphi %s5711_s16, %s9682_s16   ;;  %s5655_s15 = sphi %s5709_s15, %s9681_s15  }
   0x4   : > { %s5734_s21 = sadd.s32 1, %s5667_s18   ;;  %s113_s22 = sadd.s32 1, %s5663_s17 }
   0x5   : > { %s110_s23 = ssub.s32 %s5667_s18, %s5734_s21  ;;  %p123_p0 = scmp.ne.s32.totalorder %s5663_s17, %s5659_s16 }
   0x6   : > { %p111_p1 = scmp.eq.s32.totalorder %s110_s23, 0  ;;  %p124_p2 = scmp.eq.s32.totalorder %s5730_s19, 1 }
   0x7   : > { %p129_p3 = scmp.ne.s32.totalorder %s5659_s16, %s5655_s15  ;;  %p130_p4 = scmp.eq.s32.totalorder %s4871_s20, 1 }
   0x8   : > { %s5745_s24 = scalar_select %p111_p1, %s5663_s17, %s113_s22  }
   0x9   : > { %p5747_p5 = por %p124_p2, %p123_p0  ;;  %p5751_p6 = por %p130_p4, %p129_p3 }
   0xa   : > { %p4874_p7 = scmp.ge.s32.totalorder %s5667_s18, 1  ;;  %p165_p8 = scmp.lt.s32.totalorder %s5667_s18, 3 }
   0xc   : > { %p166_p9 = pnand %p4874_p7, %p165_p8 }
   0xe   : > { %169 = sbr.rel (%p166_p9) target bundleno = 2184 (0x888), region = 36 }
  0x13   : > { %vm9238_vm0 = vcmask 1040384   ;;  %p191_p10 = scmp.lt.s32.totalorder %s5730_s19, 1  ;;  %v5669_v0 = vmov 0.0   ;;  %vm9236_vm1 = vcmask 1046528   ;;  %s5670_s6 = smov 4   ;;  %vm610_vm2 = vcmask 1045504  }
  0x14   : > { %v5758_v1 = vrot.slane %v5669_v0, 7  ;;  %s9261_s7 = smov 8   ;;  %s5672_s8 = smov 12   ;;  %vm1737_vm3 = vcmask 1043456   ;;  %vm9245_vm4 = vcmask 31744   ;;  %vm1441_vm5 = vcmask 97280  }
  0x15   : > { %s192_s27 = scalar_select %p191_p10, %s5730_s19, 1  ;;  %vm1408_vm6 = vcmask 64512   ;;  %vm1474_vm7 = vcmask 130048   ;;  %vm1507_vm8 = vcmask 162816   ;;  %vm1540_vm9 = vcmask 195584  }
  0x16   : > { %v5763_v2 = vsel %vm9238_vm0, 0.0, %v5758_v1  ;;  %v5767_v3 = vsel %vm9238_vm0, %v5758_v1, 0.0  ;;  %v435_v4 = vrot.slane %v5758_v1, 1  ;;  %s5673_s9 = smov 16   ;;  %s5674_s10 = smov 24   ;;  %vm9260_vm10 = vcmask 228352  }
  0x17   : > { %9264 = vst [vmem:[#allocation5_spill] sm:$0xff] %v5767_v3  ;;  %v9140_v5 = vrot.slane %v5763_v2, 1  ;;  %v9141_v6 = vrot.slane %v5767_v3, 1  ;;  %s5066_s28 = sshll.u32 %s192_s27, 8  ;;  %s5675_s11 = smov 20   ;;  %vm9246_vm11 = vcmask 261120  }
  0x18   : > { %s5775_s5 = scalar_lea.vmem %s9135_s0, %s5066_s28  ;;  %s5676_s12 = smov 28   ;;  %vm9244_vm12 = vcmask 293888   ;;  %vm2052_vm13 = vcmask 1042434   ;;  %vm9237_vm14 = vcmask 1043459   ;;  %vm2056_vm15 = vcmask 1044484  }
  0x19   : > { %v5780_v7 = vsel %vm9236_vm1, %v9140_v5, %v435_v4  ;;  %v5785_v8 = vsel %vm9236_vm1, %v435_v4, %v9141_v6  ;;  %v199_v9 = vld [vmem:[%s5775_s5 + $0x10] sm:$0xff]  ;;  %v200_v10 = vld [vmem:[%s5775_s5 + $0x18] sm:$0xff]  ;;  %v197_v11 = vld [vmem:[%s5775_s5] sm:$0xff]  ;;  %s5677_s13 = smov 32   ;;  %s188_s20 = sand.u32 1, %s5659_s16  }
  0x1a   : > { %9265 = vst [vmem:[#allocation6_spill] sm:$0xff] %v5780_v7  ;;  %v5143_v12 = vpack.i.bf16 %v5785_v8, %v5780_v7  ;;  %v273_v13 = vrot.slane %v199_v9, 7  ;;  %v274_v14 = vrot.slane %v200_v10, 7  ;;  %v198_v15 = vld [vmem:[%s5775_s5 + $0x8] sm:$0xff]  ;;  %v270_v16 = vrot.slane %v197_v11, 7  ;;  %v201_v17 = vld [vmem:[%s5775_s5 + $0x20] sm:$0xff] }
  0x1b   : > { %9266 = vst [vmem:[#allocation7_spill] sm:$0xff] %v5785_v8  ;;  %v202_v18 = vld [vmem:[%s5775_s5 + $0x28] sm:$0xff]  ;;  %v271_v19 = vrot.slane %v198_v15, 7  ;;  %v276_v20 = vrot.slane %v201_v17, 7  ;;  %v203_v36 = vld [vmem:[%s5775_s5 + $0x30] sm:$0xff]  ;;  %v204_v37 = vld [vmem:[%s5775_s5 + $0x38] sm:$0xff] }
  0x1c   : > { %v277_v21 = vrot.slane %v202_v18, 7  ;;  %5144 = vrot.lane.b32.xlu0 %v5143_v12, %s5670_s6  ;;  %v5797_v22 = vsel %vm9238_vm0, %v273_v13, %v274_v14  ;;  %v5800_v23 = vsel %vm9238_vm0, %v274_v14, 0.0  ;;  %v5803_v24 = vsel %vm9238_vm0, 0.0, %v270_v16  ;;  %v205_v46 = vld [vmem:[%s5775_s5 + $0x40] sm:$0xff]  ;;  %v206_v47 = vld [vmem:[%s5775_s5 + $0x48] sm:$0xff]  ;;  %v207_v55 = vld [vmem:[%s5775_s5 + $0x50] sm:$0xff] }
  0x1d   : > { %v5806_v25 = vsel %vm9238_vm0, 0.0, %v273_v13  ;;  %v445_v26 = vrot.slane %v5797_v22, 1  ;;  %v447_v27 = vrot.slane %v5800_v23, 1  ;;  %v5811_v28 = vsel %vm9238_vm0, %v270_v16, %v271_v19  ;;  %v208_v57 = vld [vmem:[%s5775_s5 + $0x58] sm:$0xff]  ;;  %v209_v15 = vld [vmem:[%s5775_s5 + $0x60] sm:$0xff]  ;;  %v210_v17 = vld [vmem:[%s5775_s5 + $0x68] sm:$0xff] }
  0x1e   : > { %v5814_v29 = vsel %vm9238_vm0, %v271_v19, 0.0  ;;  %v440_v30 = vrot.slane %v5811_v28, 1  ;;  %v439_v32 = vrot.slane %v5803_v24, 1  ;;  %v5820_v33 = vsel %vm9238_vm0, %v276_v20, %v277_v21  ;;  %v219_v5 = vld [vmem:[%s5775_s5 + $0xb0] sm:$0xff]  ;;  %v220_v8 = vld [vmem:[%s5775_s5 + $0xb8] sm:$0xff] }
  0x1f   : > { %v442_v31 = vrot.slane %v5814_v29, 1  ;;  %v5823_v34 = vsel %vm9236_vm1, %v445_v26, %v447_v27  ;;  %v5826_v35 = vsel %vm9238_vm0, 0.0, %v276_v20  ;;  %v450_v41 = vrot.slane %v5820_v33, 1 }
  0x20   : > { %524 = vrot.lane.b32.xlu2 %v5823_v34, %s5670_s6  ;;  %v5838_v39 = vsel %vm9236_vm1, %v439_v32, %v440_v30  ;;  %v449_v40 = vrot.slane %v5826_v35, 1  ;;  %v444_v42 = vrot.slane %v5806_v25, 1  ;;  %v5844_v43 = vsel %vm9238_vm0, %v277_v21, 0.0  ;;  %v212_v32 = vld [vmem:[%s5775_s5 + $0x78] sm:$0xff] }
  0x21   : > { %v5833_v38 = vsel %vm9236_vm1, %v440_v30, %v442_v31  ;;  %v279_v44 = vrot.slane %v203_v36, 7  ;;  %v280_v45 = vrot.slane %v204_v37, 7  ;;  %v452_v50 = vrot.slane %v5844_v43, 1  ;;  %v211_v31 = vld [vmem:[%s5775_s5 + $0x70] sm:$0xff] }
  0x22   : > { %520 = vrot.lane.b32.xlu1 %v5833_v38, %s5670_s6  ;;  %v5851_v48 = vsel %vm9236_vm1, %v449_v40, %v450_v41  ;;  %v5854_v49 = vsel %vm9236_vm1, %v444_v42, %v445_v26  ;;  %v282_v53 = vrot.slane %v205_v46, 7  ;;  %v283_v54 = vrot.slane %v206_v47, 7  ;;  %v213_v47 = vld [vmem:[%s5775_s5 + $0x80] sm:$0xff] }
  0x23   : > { %v5858_v51 = vsel %vm9238_vm0, %v279_v44, %v280_v45  ;;  %v5861_v52 = vsel %vm9238_vm0, %v280_v45, 0.0  ;;  %v5865_v56 = vsel %vm9238_vm0, 0.0, %v279_v44  ;;  %v5873_v58 = vsel %vm9236_vm1, %v450_v41, %v452_v50  ;;  %v214_v50 = vld [vmem:[%s5775_s5 + $0x88] sm:$0xff] }
  0x24   : > { %518 = vrot.lane.b32.xlu0 %v5838_v39, %s5670_s6  ;;  %v455_v59 = vrot.slane %v5858_v51, 1  ;;  %v457_v60 = vrot.slane %v5861_v52, 1  ;;  %v285_v61 = vrot.slane %v207_v55, 7  ;;  %v454_v62 = vrot.slane %v5865_v56, 1 }
  0x25   : > { %v5879_v63 = vsel %vm9238_vm0, %v282_v53, %v283_v54  ;;  %v5882_v0 = vsel %vm9238_vm0, 0.0, %v282_v53  ;;  %v286_v4 = vrot.slane %v208_v57, 7  ;;  %v5902_v16 = vsel %vm9238_vm0, %v283_v54, 0.0 }
  0x26   : > { %v5887_v9 = vsel %vm9236_vm1, %v455_v59, %v457_v60  ;;  %v459_v10 = vrot.slane %v5882_v0, 1  ;;  %v460_v11 = vrot.slane %v5879_v63, 1  ;;  %v5892_v12 = vsel %vm9236_vm1, %v454_v62, %v455_v59 }
  0x27   : > { %9267 = vst [vmem:[#allocation8_spill] sm:$0xff] %v5887_v9  ;;  %v5895_v13 = vsel %vm9238_vm0, %v285_v61, %v286_v4  ;;  %v5898_v14 = vsel %vm9238_vm0, 0.0, %v285_v61  ;;  %v288_v21 = vrot.slane %v209_v15, 7  ;;  %v462_v26 = vrot.slane %v5902_v16, 1  ;;  %v215_v15 = vld [vmem:[%s5775_s5 + $0x90] sm:$0xff] }
  0x28   : > { %526 = vrot.lane.b32.xlu2 %v5851_v48, %s5670_s6  ;;  %v5910_v18 = vsel %vm9236_vm1, %v459_v10, %v460_v11  ;;  %v464_v19 = vrot.slane %v5898_v14, 1  ;;  %v465_v20 = vrot.slane %v5895_v13, 1  ;;  %v5916_v27 = vsel %vm9238_vm0, %v286_v4, 0.0 }
  0x29   : > { %9268 = vst [vmem:[#allocation9_spill] sm:$0xff] %v5910_v18  ;;  %v289_v30 = vrot.slane %v210_v17, 7  ;;  %v467_v37 = vrot.slane %v5916_v27, 1  ;;  %v5927_v40 = vsel %vm9238_vm0, 0.0, %v288_v21  ;;  %v291_v41 = vrot.slane %v211_v31, 7 }
  0x2a   : > { %522 = vrot.lane.b32.xlu1 %v5854_v49, %s5670_s6  ;;  %v5923_v36 = vsel %vm9236_vm1, %v464_v19, %v465_v20  ;;  %v5930_v42 = vsel %vm9236_vm1, %v460_v11, %v462_v26  ;;  %v292_v46 = vrot.slane %v212_v32, 7  ;;  %v469_v57 = vrot.slane %v5927_v40, 1 }
  0x2b   : > { %9269 = vst [vmem:[#allocation10_spill] sm:$0xff] %v5923_v36  ;;  %v5933_v44 = vsel %vm9238_vm0, %v288_v21, %v289_v30  ;;  %v5936_v45 = vsel %vm9238_vm0, %v289_v30, 0.0  ;;  %v5945_v53 = vsel %vm9236_vm1, %v465_v20, %v467_v37  ;;  %v5954_v60 = vsel %vm9238_vm0, 0.0, %v291_v41  ;;  %v216_v21 = vld [vmem:[%s5775_s5 + $0x98] sm:$0xff] }
  0x2c   : > { %528 = vrot.lane.b32.xlu0 %v5873_v58, %s5670_s6  ;;  %9270 = vst [vmem:[#allocation11_spill] sm:$0xff] %v5930_v42  ;;  %v470_v54 = vrot.slane %v5933_v44, 1  ;;  %v472_v55 = vrot.slane %v5936_v45, 1  ;;  %v5951_v59 = vsel %vm9238_vm0, %v291_v41, %v292_v46  ;;  %v294_v61 = vrot.slane %v213_v47, 7 }
  0x2d   : > { %9271 = vst [vmem:[#allocation12_spill] sm:$0xff] %v5945_v53  ;;  %v295_v62 = vrot.slane %v214_v50, 7  ;;  %v474_v10 = vrot.slane %v5954_v60, 1  ;;  %v475_v11 = vrot.slane %v5951_v59, 1  ;;  %v5975_v26 = vsel %vm9238_vm0, %v292_v46, 0.0  ;;  %v217_v50 = vld [vmem:[%s5775_s5 + $0xa0] sm:$0xff] }
  0x2e   : > { %9272 = vst [vmem:[#allocation13_spill] sm:$0xff] %v5951_v59  ;;  %v5959_v4 = vsel %vm9236_vm1, %v470_v54, %v472_v55  ;;  %v5965_v17 = vsel %vm9236_vm1, %v469_v57, %v470_v54  ;;  %v5971_v20 = vsel %vm9238_vm0, 0.0, %v294_v61  ;;  %v297_v30 = vrot.slane %v215_v15, 7  ;;  %v218_v54 = vld [vmem:[%s5775_s5 + $0xa8] sm:$0xff] }
  0x2f   : > { %9273 = vst [vmem:[#allocation14_spill] sm:$0xff] %v5959_v4  ;;  %v5968_v19 = vsel %vm9238_vm0, %v294_v61, %v295_v62  ;;  %v5982_v31 = vsel %vm9236_vm1, %v474_v10, %v475_v11  ;;  %v479_v32 = vrot.slane %v5971_v20, 1  ;;  %v298_v41 = vrot.slane %v216_v21, 7 }
  0x30   : > { %532 = vrot.lane.b32.xlu2 %v5887_v9, %s5670_s6  ;;  %9274 = vst [vmem:[#allocation15_spill] sm:$0xff] %v5965_v17  ;;  %v480_v37 = vrot.slane %v5968_v19, 1  ;;  %v477_v46 = vrot.slane %v5975_v26, 1  ;;  %v5988_v47 = vsel %vm9238_vm0, %v295_v62, 0.0  ;;  %v300_v62 = vrot.slane %v217_v50, 7  ;;  %v226_v9 = vld [vmem:[%s5775_s5 + $0xe8] sm:$0xff] }
  0x31   : > { %9275 = vst [vmem:[#allocation16_spill] sm:$0xff] %v5968_v19  ;;  %v482_v57 = vrot.slane %v5988_v47, 1  ;;  %v5999_v61 = vsel %vm9238_vm0, %v297_v30, %v298_v41  ;;  %v6002_v10 = vsel %vm9238_vm0, %v298_v41, 0.0  ;;  %v301_v21 = vrot.slane %v218_v54, 7 }
  0x32   : > { %530 = vrot.lane.b32.xlu1 %v5892_v12, %s5670_s6  ;;  %9276 = vst [vmem:[#allocation17_spill] sm:$0xff] %v5971_v20  ;;  %v5995_v55 = vsel %vm9236_vm1, %v479_v32, %v480_v37  ;;  %v6005_v15 = vsel %vm9236_vm1, %v475_v11, %v477_v46  ;;  %v6009_v6 = vsel %vm9238_vm0, 0.0, %v297_v30  ;;  %v485_v32 = vrot.slane %v5999_v61, 1 }
  0x33   : > { %9277 = vst [vmem:[#allocation18_spill] sm:$0xff] %v5982_v31  ;;  %v487_v7 = vrot.slane %v6002_v10, 1  ;;  %v6019_v11 = vsel %vm9236_vm1, %v480_v37, %v482_v57  ;;  %v303_v41 = vrot.slane %v219_v5, 7  ;;  %v484_v30 = vrot.slane %v6009_v6, 1 }
  0x34   : > { %534 = vrot.lane.b32.xlu0 %v5910_v18, %s5670_s6  ;;  %9278 = vst [vmem:[#allocation19_spill] sm:$0xff] %v5995_v55  ;;  %v6023_v46 = vsel %vm9238_vm0, %v300_v62, %v301_v21  ;;  %v6026_v50 = vsel %vm9238_vm0, 0.0, %v300_v62  ;;  %v304_v54 = vrot.slane %v220_v8, 7  ;;  %v6039_v57 = vsel %vm9238_vm0, %v301_v21, 0.0 }
  0x35   : > { %9279 = vst [vmem:[#allocation20_spill] sm:$0xff] %v5999_v61  ;;  %v490_v37 = vrot.slane %v6023_v46, 1  ;;  %v6036_v5 = vsel %vm9238_vm0, 0.0, %v303_v41  ;;  %v6042_v8 = vsel %vm9236_vm1, %v484_v30, %v485_v32 }
  0x36   : > { %9280 = vst [vmem:[#allocation21_spill] sm:$0xff] %v6005_v15  ;;  %v6045_v62 = vsel %vm9238_vm0, %v303_v41, %v304_v54 }
  0x37   : > { %9281 = vst [vmem:[#allocation22_spill] sm:$0xff] %v6009_v6 }
  0x38   : > { %538 = vrot.lane.b32.xlu2 %v5923_v36, %s5670_s6  ;;  %9282 = vst [vmem:[#allocation23_spill] sm:$0xff] %v6019_v11 }
  0x39   : > { %9283 = vst [vmem:[#allocation24_spill] sm:$0xff] %v6023_v46 }
  0x3a   : > { %536 = vrot.lane.b32.xlu1 %v5930_v42, %s5670_s6  ;;  %9284 = vst [vmem:[#allocation25_spill] sm:$0xff] %v6026_v50 }
  0x3b   : > { %9286 = vst [vmem:[#allocation27_spill] sm:$0xff] %v6036_v5 }
  0x3c   : > { %540 = vrot.lane.b32.xlu0 %v5945_v53, %s5670_s6  ;;  %9287 = vst [vmem:[#allocation28_spill] sm:$0xff] %v6042_v8  ;;  %v224_v53 = vld [vmem:[%s5775_s5 + $0xd8] sm:$0xff] }
  0x3d   : > { %9288 = vst [vmem:[#allocation29_spill] sm:$0xff] %v6045_v62  ;;  %v310_v18 = vrot.slane %v224_v53, 7 }
  0x40   : > { %544 = vrot.lane.b32.xlu2 %v5959_v4, %s5670_s6  ;;  %v492_v4 = vrot.slane %v6039_v57, 1 }
  0x42   : > { %542 = vrot.lane.b32.xlu1 %v5965_v17, %s5670_s6  ;;  %v6060_v17 = vsel %vm9238_vm0, %v304_v54, 0.0 }
  0x44   : > { %546 = vrot.lane.b32.xlu0 %v5982_v31, %s5670_s6  ;;  %v494_v31 = vrot.slane %v6036_v5, 1 }
  0x48   : > { %550 = vrot.lane.b32.xlu2 %v5995_v55, %s5670_s6  ;;  %v6031_v55 = vsel %vm9236_vm1, %v485_v32, %v487_v7  ;;  %v221_v7 = vld [vmem:[%s5775_s5 + $0xc0] sm:$0xff]  ;;  %v495_v32 = vrot.slane %v6045_v62, 1 }
  0x49   : > { %9285 = vst [vmem:[#allocation26_spill] sm:$0xff] %v6031_v55  ;;  %v306_v41 = vrot.slane %v221_v7, 7 }
  0x4a   : > { %548 = vrot.lane.b32.xlu1 %v6005_v15, %s5670_s6  ;;  %v489_v15 = vrot.slane %v6026_v50, 1  ;;  %v6067_v36 = vsel %vm9236_vm1, %v494_v31, %v495_v32 }
  0x4b   : > { %9290 = vst [vmem:[#allocation31_spill] sm:$0xff] %v6067_v36  ;;  %v6080_v54 = vsel %vm9238_vm0, 0.0, %v306_v41 }
  0x4c   : > { %552 = vrot.lane.b32.xlu0 %v6019_v11, %s5670_s6  ;;  %v222_v11 = vld [vmem:[%s5775_s5 + $0xc8] sm:$0xff]  ;;  %v6056_v21 = vsel %vm9236_vm1, %v489_v15, %v490_v37  ;;  %v6070_v15 = vsel %vm9236_vm1, %v490_v37, %v492_v4  ;;  %9294 = vst [vmem:[#allocation35_spill] sm:$0xff] %v6080_v54 }
  0x4d   : > { %9289 = vst [vmem:[#allocation30_spill] sm:$0xff] %v6056_v21  ;;  %v307_v30 = vrot.slane %v222_v11, 7 }
  0x4e   : > { %9291 = vst [vmem:[#allocation32_spill] sm:$0xff] %v6070_v15 }
  0x4f   : > { %v6074_v42 = vsel %vm9238_vm0, %v306_v41, %v307_v30  ;;  %v6077_v11 = vsel %vm9238_vm0, %v307_v30, 0.0  ;;  %v499_v41 = vrot.slane %v6080_v54, 1 }
  0x50   : > { %556 = vrot.lane.b32.xlu2 %v6031_v55, %s5670_s6  ;;  %v223_v55 = vld [vmem:[%s5775_s5 + $0xd0] sm:$0xff]  ;;  %9292 = vst [vmem:[#allocation33_spill] sm:$0xff] %v6074_v42  ;;  %v500_v31 = vrot.slane %v6074_v42, 1  ;;  %v502_v37 = vrot.slane %v6077_v11, 1 }
  0x51   : > { %9293 = vst [vmem:[#allocation34_spill] sm:$0xff] %v6077_v11  ;;  %v309_v7 = vrot.slane %v223_v55, 7 }
  0x52   : > { %554 = vrot.lane.b32.xlu1 %v6042_v8, %s5670_s6  ;;  %v497_v8 = vrot.slane %v6060_v17, 1  ;;  %v6108_v54 = vsel %vm9236_vm1, %v499_v41, %v500_v31 }
  0x53   : > { %v6095_v55 = vsel %vm9238_vm0, %v309_v7, %v310_v18  ;;  %v6098_v53 = vsel %vm9238_vm0, 0.0, %v309_v7  ;;  %9299 = vst [vmem:[#allocation40_spill] sm:$0xff] %v6108_v54 }
  0x54   : > { %558 = vrot.lane.b32.xlu0 %v6056_v21, %s5670_s6  ;;  %v225_v21 = vld [vmem:[%s5775_s5 + $0xe0] sm:$0xff]  ;;  %v6089_v4 = vsel %vm9236_vm1, %v495_v32, %v497_v8  ;;  %9296 = vst [vmem:[#allocation37_spill] sm:$0xff] %v6095_v55  ;;  %v6103_v8 = vsel %vm9236_vm1, %v500_v31, %v502_v37  ;;  %v504_v32 = vrot.slane %v6098_v53, 1 }
  0x55   : > { %9295 = vst [vmem:[#allocation36_spill] sm:$0xff] %v6089_v4  ;;  %v312_v30 = vrot.slane %v225_v21, 7 }
  0x56   : > { %9297 = vst [vmem:[#allocation38_spill] sm:$0xff] %v6098_v53  ;;  %v642_v53 = vrot.slane %v5895_v13, 2 }
  0x57   : > { %9298 = vst [vmem:[#allocation39_spill] sm:$0xff] %v6103_v8  ;;  %v6114_v7 = vsel %vm9238_vm0, 0.0, %v312_v30 }
  0x58   : > { %562 = vrot.lane.b32.xlu2 %v6067_v36, %s5670_s6  ;;  %v313_v36 = vrot.slane %v226_v9, 7  ;;  %9301 = vst [vmem:[#allocation42_spill] sm:$0xff] %v6114_v7  ;;  %v6117_v9 = vsel %vm9238_vm0, %v310_v18, 0.0  ;;  %v509_v31 = vrot.slane %v6114_v7, 1  ;;  %v612_v7 = vrot.slane %v5758_v1, 2 }
  0x59   : > { %9302 = vst [vmem:[#allocation43_spill] sm:$0xff] %v6117_v9  ;;  %v507_v41 = vrot.slane %v6117_v9, 1  ;;  %v644_v9 = vrot.slane %v5916_v27, 2 }
  0x5a   : > { %560 = vrot.lane.b32.xlu1 %v6070_v15, %s5670_s6  ;;  %v505_v15 = vrot.slane %v6095_v55, 1  ;;  %v6111_v11 = vsel %vm9238_vm0, %v312_v30, %v313_v36  ;;  %v6130_v30 = vsel %vm9238_vm0, %v313_v36, 0.0 }
  0x5b   : > { %9300 = vst [vmem:[#allocation41_spill] sm:$0xff] %v6111_v11  ;;  %v510_v37 = vrot.slane %v6111_v11, 1  ;;  %v9190_v11 = vrot.slane %v5763_v2, 2 }
  0x5c   : > { %564 = vrot.lane.b32.xlu0 %v6089_v4, %s5670_s6  ;;  %v6124_v21 = vsel %vm9236_vm1, %v504_v32, %v505_v15  ;;  %9304 = vst [vmem:[#allocation45_spill] sm:$0xff] %v6130_v30  ;;  %v6140_v4 = vsel %vm9236_vm1, %v505_v15, %v507_v41  ;;  %v617_v32 = vrot.slane %v5811_v28, 2  ;;  %v9309_v41 = vrot.slane %v5767_v3, 2 }
  0x5d   : > { %9303 = vst [vmem:[#allocation44_spill] sm:$0xff] %v6124_v21  ;;  %v6135_v18 = vsel %vm9236_vm1, %v509_v31, %v510_v37  ;;  %v616_v31 = vrot.slane %v5803_v24, 2  ;;  %v6156_v15 = vsel %vm610_vm2, %v9190_v11, %v612_v7  ;;  %v624_v11 = vrot.slane %v5800_v23, 2 }
  0x5e   : > { %9305 = vst [vmem:[#allocation46_spill] sm:$0xff] %v6135_v18  ;;  %v627_v3 = vrot.slane %v5820_v33, 2 }
  0x5f   : > { %9306 = vst [vmem:[#allocation47_spill] sm:$0xff] %v6140_v4 }
  0x60   : > { %568 = vrot.lane.b32.xlu2 %v6103_v8, %s5670_s6  ;;  %9308 = vst [vmem:[#allocation49_spill] sm:$0xff] %v6156_v15  ;;  %v652_v8 = vrot.slane %v5951_v59, 2 }
  0x62   : > { %566 = vrot.lane.b32.xlu1 %v6108_v54, %s5670_s6  ;;  %v512_v54 = vrot.slane %v6130_v30, 1  ;;  %v6161_v30 = vsel %vm610_vm2, %v612_v7, %v9309_v41  ;;  %v622_v41 = vrot.slane %v5797_v22, 2 }
  0x63   : > { %9310 = vst [vmem:[#allocation50_spill] sm:$0xff] %v6161_v30 }
  0x64   : > { %570 = vrot.lane.b32.xlu0 %v6124_v21, %s5670_s6  ;;  %v6149_v36 = vsel %vm9236_vm1, %v510_v37, %v512_v54  ;;  %v6166_v54 = vsel %vm610_vm2, %v616_v31, %v617_v32  ;;  %v5148_v37 = vpack.i.bf16 %v6161_v30, %v6156_v15  ;;  %v621_v31 = vrot.slane %v5806_v25, 2 }
  0x65   : > { %9307 = vst [vmem:[#allocation48_spill] sm:$0xff] %v6149_v36  ;;  %v626_v30 = vrot.slane %v5826_v35, 2  ;;  %v629_v15 = vrot.slane %v5844_v43, 2  ;;  %v637_v43 = vrot.slane %v5879_v63, 2  ;;  %v639_v21 = vrot.slane %v5902_v16, 2 }
  0x66   : > { %vm2060_vm1 = vcmask 1046534  }
  0x67   : > { %v6195_v23 = vsel %vm610_vm2, %v626_v30, %v627_v3 }
  0x68   : > { %574 = vrot.lane.b32.xlu2 %v6135_v18, %s5670_s6  ;;  %v619_v18 = vrot.slane %v5814_v29, 2  ;;  %v6183_v29 = vsel %vm610_vm2, %v622_v41, %v624_v11  ;;  %v632_v11 = vrot.slane %v5858_v51, 2 }
  0x6a   : > { %572 = vrot.lane.b32.xlu1 %v6140_v4, %s5670_s6  ;;  %v6175_v7 = vsel %vm610_vm2, %v617_v32, %v619_v18  ;;  %v631_v18 = vrot.slane %v5865_v56, 2 }
  0x6c   : > { %576 = vrot.lane.b32.xlu0 %v6149_v36, %s5670_s6  ;;  %v6209_v36 = vsel %vm610_vm2, %v627_v3, %v629_v15  ;;  %v6226_v3 = vsel %vm610_vm2, %v637_v43, %v639_v21  ;;  %v641_v15 = vrot.slane %v5898_v14, 2  ;;  %v647_v21 = vrot.slane %v5933_v44, 2 }
  0x6e   : > { %v6238_v16 = vsel %vm610_vm2, %v641_v15, %v642_v53  ;;  %v6254_v15 = vsel %vm610_vm2, %v642_v53, %v644_v9  ;;  %v656_v9 = vrot.slane %v5971_v20, 2  ;;  %v662_v20 = vrot.slane %v5999_v61, 2 }
  0x70   : > { %695 = vrot.lane.b32.xlu2 %v6166_v54, %s9261_s7 }
  0x72   : > { %5149 = vrot.lane.b32.xlu1 %v5148_v37, %s9261_s7  ;;  %v6188_v37 = vsel %vm610_vm2, %v621_v31, %v622_v41  ;;  %v6205_v41 = vsel %vm610_vm2, %v631_v18, %v632_v11  ;;  %v634_v31 = vrot.slane %v5861_v52, 2  ;;  %v636_v52 = vrot.slane %v5882_v0, 2 }
  0x74   : > { %697 = vrot.lane.b32.xlu0 %v6175_v7, %s9261_s7  ;;  %v6216_v30 = vsel %vm610_vm2, %v632_v11, %v634_v31  ;;  %v6231_v11 = vsel %vm610_vm2, %v636_v52, %v637_v43  ;;  %v646_v31 = vrot.slane %v5927_v40, 2  ;;  %v649_v52 = vrot.slane %v5936_v45, 2 }
  0x75   : > { %v651_v45 = vrot.slane %v5954_v60, 2 }
  0x76   : > { %v6248_v43 = vsel %vm610_vm2, %v646_v31, %v647_v21  ;;  %v6261_v27 = vsel %vm610_vm2, %v647_v21, %v649_v52  ;;  %v654_v31 = vrot.slane %v5975_v26, 2  ;;  %v657_v21 = vrot.slane %v5968_v19, 2 }
  0x77   : > { %v6280_v26 = vsel %vm610_vm2, %v651_v45, %v652_v8  ;;  %v659_v19 = vrot.slane %v5988_v47, 2  ;;  %v664_v45 = vrot.slane %v6002_v10, 2  ;;  %v666_v10 = vrot.slane %v6026_v50, 2 }
  0x78   : > { %701 = vrot.lane.b32.xlu2 %v6183_v29, %s9261_s7  ;;  %v6273_v53 = vsel %vm610_vm2, %v652_v8, %v654_v31  ;;  %v661_v31 = vrot.slane %v6009_v6, 2 }
  0x79   : > { %v6305_v6 = vsel %vm610_vm2, %v657_v21, %v659_v19  ;;  %v6312_v47 = vsel %vm610_vm2, %v662_v20, %v664_v45 }
  0x7a   : > { %699 = vrot.lane.b32.xlu1 %v6188_v37, %s9261_s7  ;;  %v6199_v32 = vpop.permute.xlu2 %524  ;;  %v6299_v8 = vsel %vm610_vm2, %v661_v31, %v662_v20  ;;  %v669_v31 = vrot.slane %v6039_v57, 2  ;;  %v672_v20 = vrot.slane %v6045_v62, 2 }
  0x7c   : > { %703 = vrot.lane.b32.xlu0 %v6195_v23, %s9261_s7 }
  0x80   : > { %707 = vrot.lane.b32.xlu2 %v6205_v41, %s9261_s7 }
  0x82   : > { %705 = vrot.lane.b32.xlu1 %v6209_v36, %s9261_s7  ;;  %v6220_v18 = vpop.permute.xlu2 %526 }
  0x83   : > { %9311 = vst [vmem:[#allocation51_spill] sm:$0xff] %v6220_v18 }
  0x84   : > { %709 = vrot.lane.b32.xlu0 %v6216_v30, %s9261_s7 }
  0x88   : > { %713 = vrot.lane.b32.xlu2 %v6226_v3, %s9261_s7 }
  0x8a   : > { %711 = vrot.lane.b32.xlu1 %v6231_v11, %s9261_s7  ;;  %v6242_v4 = vpop.permute.xlu2 %532 }
  0x8b   : > { %9312 = vst [vmem:[#allocation52_spill] sm:$0xff] %v6242_v4 }
  0x8c   : > { %715 = vrot.lane.b32.xlu0 %v6238_v16, %s9261_s7 }
  0x8e   : > { %v6251_v55 = vpop.permute.xlu0 %5144 }
  0x90   : > { %719 = vrot.lane.b32.xlu2 %v6248_v43, %s9261_s7 }
  0x92   : > { %717 = vrot.lane.b32.xlu1 %v6254_v15, %s9261_s7  ;;  %v6265_v42 = vpop.permute.xlu2 %538 }
  0x93   : > { %9313 = vst [vmem:[#allocation53_spill] sm:$0xff] %v6265_v42  ;;  %v6287_v42 = vsel %vm610_vm2, %v656_v9, %v657_v21  ;;  %v671_v21 = vrot.slane %v6036_v5, 2  ;;  %v674_v5 = vrot.slane %v6060_v17, 2 }
  0x94   : > { %v6268_v4 = vpop.permute.xlu1 %520  ;;  %721 = vrot.lane.b32.xlu0 %v6261_v27, %s9261_s7  ;;  %9314 = vst [vmem:[#allocation54_spill] sm:$0xff] %v6287_v42 }
  0x96   : > { %v6277_v52 = vpop.permute.xlu0 %518 }
  0x98   : > { %725 = vrot.lane.b32.xlu2 %v6273_v53, %s9261_s7 }
  0x9a   : > { %723 = vrot.lane.b32.xlu1 %v6280_v26, %s9261_s7  ;;  %v6291_v18 = vpop.permute.xlu2 %544 }
  0x9b   : > { %9315 = vst [vmem:[#allocation55_spill] sm:$0xff] %v6291_v18  ;;  %v667_v18 = vrot.slane %v6023_v46, 2 }
  0x9c   : > { %v6294_v59 = vpop.permute.xlu1 %522  ;;  %727 = vrot.lane.b32.xlu0 %v6287_v42, %s9261_s7 }
  0x9d   : > { %v6324_v19 = vsel %vm610_vm2, %v667_v18, %v669_v31  ;;  %v6331_v57 = vsel %vm610_vm2, %v666_v10, %v667_v18  ;;  %v6350_v10 = vsel %vm610_vm2, %v672_v20, %v674_v5 }
  0x9e   : > { %v6302_v9 = vpop.permute.xlu0 %528  ;;  %9317 = vst [vmem:[#allocation57_spill] sm:$0xff] %v6324_v19 }
  0x9f   : > { %9318 = vst [vmem:[#allocation58_spill] sm:$0xff] %v6331_v57 }
  0xa0   : > { %731 = vrot.lane.b32.xlu2 %v6299_v8, %s9261_s7  ;;  %9323 = vst [vmem:[#allocation63_spill] sm:$0xff] %v6350_v10 }
  0xa2   : > { %729 = vrot.lane.b32.xlu1 %v6305_v6, %s9261_s7  ;;  %v6316_v61 = vpop.permute.xlu2 %550 }
  0xa3   : > { %9316 = vst [vmem:[#allocation56_spill] sm:$0xff] %v6316_v61  ;;  %v6338_v61 = vsel %vm610_vm2, %v671_v21, %v672_v20 }
  0xa4   : > { %v6319_v42 = vpop.permute.xlu1 %530  ;;  %733 = vrot.lane.b32.xlu0 %v6312_v47, %s9261_s7  ;;  %9319 = vst [vmem:[#allocation59_spill] sm:$0xff] %v6338_v61 }
  0xa6   : > { %v6328_v45 = vpop.permute.xlu0 %534 }
  0xa8   : > { %737 = vrot.lane.b32.xlu2 %v6324_v19, %s9261_s7 }
  0xaa   : > { %735 = vrot.lane.b32.xlu1 %v6331_v57, %s9261_s7  ;;  %v6340_v31 = vpop.permute.xlu2 %556 }
  0xab   : > { %9320 = vst [vmem:[#allocation60_spill] sm:$0xff] %v6340_v31 }
  0xac   : > { %v6343_v46 = vpop.permute.xlu1 %536  ;;  %739 = vrot.lane.b32.xlu0 %v6338_v61, %s9261_s7 }
  0xad   : > { %9321 = vst [vmem:[#allocation61_spill] sm:$0xff] %v6343_v46 }
  0xae   : > { %v6347_v18 = vpop.permute.xlu0 %540 }
  0xaf   : > { %9322 = vst [vmem:[#allocation62_spill] sm:$0xff] %v6347_v18 }
  0xb0   : > { %788 = vrot.lane.b32.xlu2 %v5803_v24, %s5672_s8 }
  0xb2   : > { %741 = vrot.lane.b32.xlu1 %v6350_v10, %s9261_s7  ;;  %v6356_v21 = vpop.permute.xlu2 %562 }
  0xb3   : > { %9324 = vst [vmem:[#allocation64_spill] sm:$0xff] %v6356_v21 }
  0xb4   : > { %v6358_v17 = vpop.permute.xlu1 %542  ;;  %890 = vrot.lane.b32.xlu0 %v5838_v39, %s5673_s9 }
  0xb5   : > { %9325 = vst [vmem:[#allocation65_spill] sm:$0xff] %v6358_v17  ;;  %v9348_v17 = vld [vmem:[#allocation8_spill] sm:$0xff] }
  0xb6   : > { %v6362_v31 = vpop.permute.xlu0 %546 }
  0xb7   : > { %9326 = vst [vmem:[#allocation66_spill] sm:$0xff] %v6362_v31 }
  0xb8   : > { %1087 = vrot.lane.b32.xlu2 %v5806_v25, %s5674_s10 }
  0xba   : > { %991 = vrot.lane.b32.xlu1 %v6166_v54, %s5675_s11  ;;  %v6368_v5 = vpop.permute.xlu2 %568 }
  0xbb   : > { %9327 = vst [vmem:[#allocation67_spill] sm:$0xff] %v6368_v5 }
  0xbc   : > { %v6370_v20 = vpop.permute.xlu1 %548  ;;  %1183 = vrot.lane.b32.xlu0 %v5854_v49, %s5676_s12 }
  0xbd   : > { %9328 = vst [vmem:[#allocation68_spill] sm:$0xff] %v6370_v20 }
  0xbe   : > { %v6374_v21 = vpop.permute.xlu0 %552 }
  0xbf   : > { %9329 = vst [vmem:[#allocation69_spill] sm:$0xff] %v6374_v21 }
  0xc0   : > { %790 = vrot.lane.b32.xlu2 %v5811_v28, %s5672_s8 }
  0xc2   : > { %1279 = vrot.lane.b32.xlu1 %v6188_v37, %s5677_s13  ;;  %v6380_v39 = vpop.permute.xlu2 %574 }
  0xc3   : > { %9330 = vst [vmem:[#allocation70_spill] sm:$0xff] %v6380_v39 }
  0xc4   : > { %v6382_v54 = vpop.permute.xlu1 %554  ;;  %892 = vrot.lane.b32.xlu0 %v5833_v38, %s5673_s9 }
  0xc5   : > { %9331 = vst [vmem:[#allocation71_spill] sm:$0xff] %v6382_v54 }
  0xc6   : > { %v6386_v5 = vpop.permute.xlu0 %558 }
  0xc7   : > { %9332 = vst [vmem:[#allocation72_spill] sm:$0xff] %v6386_v5 }
  0xc8   : > { %1089 = vrot.lane.b32.xlu2 %v5797_v22, %s5674_s10 }
  0xca   : > { %993 = vrot.lane.b32.xlu1 %v6175_v7, %s5675_s11  ;;  %v6392_v21 = vpop.permute.xlu2 %695 }
  0xcc   : > { %v6394_v10 = vpop.permute.xlu1 %560  ;;  %1185 = vrot.lane.b32.xlu0 %v5823_v34, %s5676_s12 }
  0xcd   : > { %9333 = vst [vmem:[#allocation73_spill] sm:$0xff] %v6394_v10 }
  0xce   : > { %v6398_v39 = vpop.permute.xlu0 %564 }
  0xcf   : > { %9334 = vst [vmem:[#allocation74_spill] sm:$0xff] %v6398_v39 }
  0xd0   : > { %792 = vrot.lane.b32.xlu2 %v5806_v25, %s5672_s8 }
  0xd2   : > { %1281 = vrot.lane.b32.xlu1 %v6183_v29, %s5677_s13  ;;  %v6404_v38 = vpop.permute.xlu2 %701 }
  0xd4   : > { %v6406_v5 = vpop.permute.xlu1 %566  ;;  %894 = vrot.lane.b32.xlu0 %v5854_v49, %s5673_s9 }
  0xd5   : > { %9335 = vst [vmem:[#allocation75_spill] sm:$0xff] %v6406_v5 }
  0xd6   : > { %v6410_v7 = vpop.permute.xlu0 %570 }
  0xd7   : > { %9336 = vst [vmem:[#allocation76_spill] sm:$0xff] %v6410_v7 }
  0xd8   : > { %1091 = vrot.lane.b32.xlu2 %v5826_v35, %s5674_s10 }
  0xda   : > { %995 = vrot.lane.b32.xlu1 %v6188_v37, %s5675_s11  ;;  %v6416_v10 = vpop.permute.xlu2 %707 }
  0xdc   : > { %v6418_v54 = vpop.permute.xlu1 %572  ;;  %1187 = vrot.lane.b32.xlu0 %v5851_v48, %s5676_s12 }
  0xdd   : > { %9337 = vst [vmem:[#allocation77_spill] sm:$0xff] %v6418_v54 }
  0xde   : > { %v6422_v39 = vpop.permute.xlu0 %576 }
  0xdf   : > { %9338 = vst [vmem:[#allocation78_spill] sm:$0xff] %v6422_v39 }
  0xe0   : > { %794 = vrot.lane.b32.xlu2 %v5797_v22, %s5672_s8 }
  0xe2   : > { %1283 = vrot.lane.b32.xlu1 %v6195_v23, %s5677_s13  ;;  %v6428_v49 = vpop.permute.xlu2 %713 }
  0xe3   : > { %9339 = vst [vmem:[#allocation79_spill] sm:$0xff] %v6428_v49 }
  0xe4   : > { %v6430_v7 = vpop.permute.xlu1 %5149  ;;  %896 = vrot.lane.b32.xlu0 %v5823_v34, %s5673_s9 }
  0xe6   : > { %v6434_v37 = vpop.permute.xlu0 %697 }
  0xe8   : > { %1093 = vrot.lane.b32.xlu2 %v5820_v33, %s5674_s10 }
  0xea   : > { %997 = vrot.lane.b32.xlu1 %v6183_v29, %s5675_s11  ;;  %v6440_v39 = vpop.permute.xlu2 %719 }
  0xeb   : > { %9340 = vst [vmem:[#allocation80_spill] sm:$0xff] %v6440_v39 }
  0xec   : > { %v6442_v54 = vpop.permute.xlu1 %699  ;;  %1189 = vrot.lane.b32.xlu0 %v5873_v58, %s5676_s12 }
  0xee   : > { %v6446_v5 = vpop.permute.xlu0 %703 }
  0xf0   : > { %796 = vrot.lane.b32.xlu2 %v5826_v35, %s5672_s8 }
  0xf2   : > { %1285 = vrot.lane.b32.xlu1 %v6209_v36, %s5677_s13  ;;  %v6452_v34 = vpop.permute.xlu2 %725 }
  0xf3   : > { %9341 = vst [vmem:[#allocation81_spill] sm:$0xff] %v6452_v34 }
  0xf4   : > { %v6454_v62 = vpop.permute.xlu1 %705  ;;  %898 = vrot.lane.b32.xlu0 %v5851_v48, %s5673_s9 }
  0xf6   : > { %v6458_v29 = vpop.permute.xlu0 %709 }
  0xf8   : > { %1095 = vrot.lane.b32.xlu2 %v5865_v56, %s5674_s10 }
  0xfa   : > { %999 = vrot.lane.b32.xlu1 %v6195_v23, %s5675_s11  ;;  %v6464_v20 = vpop.permute.xlu2 %731 }
  0xfb   : > { %9342 = vst [vmem:[#allocation82_spill] sm:$0xff] %v6464_v20 }
  0xfc   : > { %v6466_v31 = vpop.permute.xlu1 %711  ;;  %1191 = vrot.lane.b32.xlu0 %v5892_v12, %s5676_s12 }
  0xfe   : > { %v6470_v34 = vpop.permute.xlu0 %715 }
  0xff   : > { %9343 = vst [vmem:[#allocation83_spill] sm:$0xff] %v6470_v34  ;;  %v9356_v34 = vld [vmem:[#allocation11_spill] sm:$0xff] }
 0x100   : > { %798 = vrot.lane.b32.xlu2 %v5820_v33, %s5672_s8 }
 0x102   : > { %1287 = vrot.lane.b32.xlu1 %v6205_v41, %s5677_s13  ;;  %v6476_v48 = vpop.permute.xlu2 %737 }
 0x103   : > { %9344 = vst [vmem:[#allocation84_spill] sm:$0xff] %v6476_v48  ;;  %v233_v48 = vld [vmem:[%s9136_s1 + $0x20] sm:$0xf] }
 0x104   : > { %v6478_v61 = vpop.permute.xlu1 %717  ;;  %900 = vrot.lane.b32.xlu0 %v5873_v58, %s5673_s9  ;;  %4878 = vmatpush.msk.msra.mxu0 %vm1737_vm3, %v233_v48  ;;  %v232_v58 = vld [vmem:[%s9136_s1 + $0x18] sm:$0xff] }
 0x105   : > { %9345 = vst [vmem:[#allocation85_spill] sm:$0xff] %v6478_v61  ;;  %5068 = vmatpush.msk.msra.mxu3 %vm1737_vm3, %v233_v48  ;;  %v9353_v61 = vld [vmem:[#allocation9_spill] sm:$0xff]  ;;  %vm2058_vm3 = vcmask 1045509  }
 0x106   : > { %v6482_v23 = vpop.permute.xlu0 %721  ;;  %1753 = vmatpush.msra.mxu0 %v232_v58 }
 0x107   : > { %9346 = vst [vmem:[#allocation86_spill] sm:$0xff] %v6482_v23  ;;  %5069 = vmatpush.msra.mxu3 %v232_v58  ;;  %v229_v58 = vld [vmem:[%s9136_s1] sm:$0xff] }
 0x108   : > { %1097 = vrot.lane.b32.xlu2 %v5858_v51, %s5674_s10 }
 0x10a   : > { %1001 = vrot.lane.b32.xlu1 %v6209_v36, %s5675_s11  ;;  %v789_v20 = vpop.permute.xlu2 %788  ;;  %v231_v36 = vld [vmem:[%s9136_s1 + $0x10] sm:$0xff] }
 0x10b   : > { %1754 = vmatpush.msra.mxu0 %v231_v36  ;;  %5070 = vmatpush.msra.mxu3 %v231_v36 }
 0x10c   : > { %v6488_v39 = vpop.permute.xlu1 %723  ;;  %1193 = vrot.lane.b32.xlu0 %v9348_v17, %s5676_s12 }
 0x10d   : > { %9347 = vst [vmem:[#allocation87_spill] sm:$0xff] %v6488_v39  ;;  %v230_v39 = vld [vmem:[%s9136_s1 + $0x8] sm:$0xff] }
 0x10e   : > { %v6498_v23 = vpop.permute.xlu0 %727  ;;  %1755 = vmatpush.msra.mxu0 %v230_v39  ;;  %5071 = vmatpush.msra.mxu3 %v230_v39 }
 0x10f   : > { %9349 = vst [vmem:[#allocation8_spill] sm:$0xff] %v6498_v23 }
 0x110   : > { %800 = vrot.lane.b32.xlu2 %v5865_v56, %s5672_s8  ;;  %1756 = vmatpush.msra.mxu0 %v229_v58 }
 0x111   : > { %5072 = vmatpush.msra.mxu3 %v229_v58 }
 0x112   : > { %1289 = vrot.lane.b32.xlu1 %v6216_v30, %s5677_s13  ;;  %v1088_v48 = vpop.permute.xlu2 %1087 }
 0x114   : > { %v6510_v23 = vpop.permute.xlu1 %729  ;;  %902 = vrot.lane.b32.xlu0 %v5892_v12, %s5673_s9 }
 0x115   : > { %9350 = vst [vmem:[#allocation88_spill] sm:$0xff] %v6510_v23 }
 0x116   : > { %v6517_v19 = vpop.permute.xlu0 %733 }
 0x117   : > { %9351 = vst [vmem:[#allocation89_spill] sm:$0xff] %v6517_v19  ;;  %v5151_v19 = vunpack.i.l.bf16 %v6430_v7 }
 0x118   : > { %1099 = vrot.lane.b32.xlu2 %v5882_v0, %s5674_s10 }
 0x11a   : > { %1003 = vrot.lane.b32.xlu1 %v6205_v41, %s5675_s11  ;;  %v791_v36 = vpop.permute.xlu2 %790 }
 0x11c   : > { %v6523_v23 = vpop.permute.xlu1 %735  ;;  %1195 = vrot.lane.b32.xlu0 %v9353_v61, %s5676_s12 }
 0x11d   : > { %9352 = vst [vmem:[#allocation90_spill] sm:$0xff] %v6523_v23  ;;  %v5146_v23 = vunpack.i.l.bf16 %v6251_v55 }
 0x11e   : > { %v6527_v39 = vpop.permute.xlu0 %739 }
 0x11f   : > { %9354 = vst [vmem:[#allocation9_spill] sm:$0xff] %v6527_v39 }
 0x120   : > { %802 = vrot.lane.b32.xlu2 %v5858_v51, %s5672_s8 }
 0x122   : > { %1291 = vrot.lane.b32.xlu1 %v6231_v11, %s5677_s13  ;;  %v1090_v12 = vpop.permute.xlu2 %1089 }
 0x124   : > { %v6533_v58 = vpop.permute.xlu1 %741  ;;  %904 = vrot.lane.b32.xlu0 %v9348_v17, %s5673_s9 }
 0x125   : > { %9355 = vst [vmem:[#allocation91_spill] sm:$0xff] %v6533_v58  ;;  %v1376_v58 = vsel %vm9245_vm4, %v5763_v2, %v5146_v23 }
 0x126   : > { %v891_v41 = vpop.permute.xlu0 %890  ;;  %v1409_v18 = vsel %vm1408_vm6, %v1376_v58, %v5151_v19  ;;  %v5147_v58 = vunpack.i.h.bf16 %v6251_v55 }
 0x127   : > { %v1442_v57 = vsel %vm1441_vm5, %v1409_v18, %v789_v20 }
 0x128   : > { %1101 = vrot.lane.b32.xlu2 %v5879_v63, %s5674_s10  ;;  %v1475_v49 = vsel %vm1474_vm7, %v1442_v57, %v891_v41  ;;  %v5152_v41 = vunpack.i.h.bf16 %v6430_v7 }
 0x12a   : > { %1005 = vrot.lane.b32.xlu1 %v6216_v30, %s5675_s11  ;;  %v793_v39 = vpop.permute.xlu2 %792 }
 0x12c   : > { %v992_v17 = vpop.permute.xlu1 %991  ;;  %1197 = vrot.lane.b32.xlu0 %v9356_v34, %s5676_s12 }
 0x12d   : > { %v1508_v30 = vsel %vm1507_vm8, %v1475_v49, %v992_v17 }
 0x12e   : > { %v1184_v46 = vpop.permute.xlu0 %1183  ;;  %v1541_v19 = vsel %vm1540_vm9, %v1508_v30, %v1088_v48  ;;  %v1377_v48 = vsel %vm9245_vm4, %v5758_v1, %v5147_v58  ;;  %v9357_v30 = vld [vmem:[#allocation10_spill] sm:$0xff] }
 0x12f   : > { %v1574_v18 = vsel %vm9260_vm10, %v1541_v19, %v1184_v46  ;;  %v1410_v17 = vsel %vm1408_vm6, %v1377_v48, %v5152_v41 }
 0x130   : > { %804 = vrot.lane.b32.xlu2 %v5882_v0, %s5672_s8  ;;  %v1443_v55 = vsel %vm1441_vm5, %v1410_v17, %v791_v36 }
 0x132   : > { %1293 = vrot.lane.b32.xlu1 %v6226_v3, %s5677_s13  ;;  %v1092_v23 = vpop.permute.xlu2 %1091 }
 0x134   : > { %v1280_v20 = vpop.permute.xlu1 %1279  ;;  %906 = vrot.lane.b32.xlu0 %v9353_v61, %s5673_s9 }
 0x135   : > { %v1607_v57 = vsel %vm9246_vm11, %v1574_v18, %v1280_v20 }
 0x136   : > { %4879 = vmatmul.msk.f32.vlgmr.msra.gmra.mxu0 %vm9244_vm12, %v1607_v57  ;;  %v893_v49 = vpop.permute.xlu0 %892 }
 0x137   : > { %v1476_v7 = vsel %vm1474_vm7, %v1443_v55, %v893_v49 }
 0x138   : > { %1103 = vrot.lane.b32.xlu2 %v5898_v14, %s5674_s10 }
 0x13a   : > { %1007 = vrot.lane.b32.xlu1 %v6231_v11, %s5675_s11  ;;  %v795_v46 = vpop.permute.xlu2 %794 }
 0x13c   : > { %v994_v61 = vpop.permute.xlu1 %993  ;;  %1199 = vrot.lane.b32.xlu0 %v9357_v30, %s5676_s12 }
 0x13d   : > { %v1509_v18 = vsel %vm1507_vm8, %v1476_v7, %v994_v61  ;;  %v9358_v61 = vld [vmem:[#allocation12_spill] sm:$0xff] }
 0x13e   : > { %v1186_v19 = vpop.permute.xlu0 %1185  ;;  %v1542_v11 = vsel %vm1540_vm9, %v1509_v18, %v1090_v12  ;;  %v1378_v12 = vsel %vm9245_vm4, %v5803_v24, %v6277_v52 }
 0x13f   : > { %v1575_v57 = vsel %vm9260_vm10, %v1542_v11, %v1186_v19 }
 0x140   : > { %806 = vrot.lane.b32.xlu2 %v5879_v63, %s5672_s8 }
 0x142   : > { %1295 = vrot.lane.b32.xlu1 %v6238_v16, %s5677_s13  ;;  %v1094_v20 = vpop.permute.xlu2 %1093 }
 0x144   : > { %v1282_v58 = vpop.permute.xlu1 %1281  ;;  %908 = vrot.lane.b32.xlu0 %v9356_v34, %s5673_s9  ;;  %v1411_v34 = vsel %vm1408_vm6, %v1378_v12, %v6392_v21 }
 0x145   : > { %v1608_v36 = vsel %vm9246_vm11, %v1575_v57, %v1282_v58  ;;  %v1444_v17 = vsel %vm1441_vm5, %v1411_v34, %v793_v39  ;;  %v9359_v58 = vld [vmem:[#allocation15_spill] sm:$0xff] }
 0x146   : > { %4880 = vmatmul.msk.f32.gmra.mxu0 %vm9244_vm12, %v1608_v36  ;;  %v895_v49 = vpop.permute.xlu0 %894 }
 0x147   : > { %v1477_v55 = vsel %vm1474_vm7, %v1444_v17, %v895_v49 }
 0x148   : > { %1105 = vrot.lane.b32.xlu2 %v5895_v13, %s5674_s10 }
 0x14a   : > { %1009 = vrot.lane.b32.xlu1 %v6226_v3, %s5675_s11  ;;  %v797_v41 = vpop.permute.xlu2 %796 }
 0x14c   : > { %v996_v48 = vpop.permute.xlu1 %995  ;;  %1201 = vrot.lane.b32.xlu0 %v9358_v61, %s5676_s12 }
 0x14d   : > { %v1510_v19 = vsel %vm1507_vm8, %v1477_v55, %v996_v48 }
 0x14e   : > { %v1188_v7 = vpop.permute.xlu0 %1187  ;;  %v1543_v24 = vsel %vm1540_vm9, %v1510_v19, %v1092_v23  ;;  %v1379_v23 = vsel %vm9245_vm4, %v5811_v28, %v6268_v4 }
 0x14f   : > { %v1576_v52 = vsel %vm9260_vm10, %v1543_v24, %v1188_v7  ;;  %v9360_v7 = vld [vmem:[#allocation14_spill] sm:$0xff] }
 0x150   : > { %808 = vrot.lane.b32.xlu2 %v5898_v14, %s5672_s8 }
 0x152   : > { %1297 = vrot.lane.b32.xlu1 %v6254_v15, %s5677_s13  ;;  %v1096_v3 = vpop.permute.xlu2 %1095 }
 0x154   : > { %v1284_v21 = vpop.permute.xlu1 %1283  ;;  %910 = vrot.lane.b32.xlu0 %v9357_v30, %s5673_s9  ;;  %v1412_v30 = vsel %vm1408_vm6, %v1379_v23, %v6434_v37 }
 0x155   : > { %v1609_v39 = vsel %vm9246_vm11, %v1576_v52, %v1284_v21  ;;  %v1445_v36 = vsel %vm1441_vm5, %v1412_v30, %v795_v46  ;;  %v9361_v30 = vld [vmem:[#allocation18_spill] sm:$0xff] }
 0x156   : > { %4881 = vmatmul.msk.f32.gmra.mxu0 %vm9244_vm12, %v1609_v39  ;;  %v897_v18 = vpop.permute.xlu0 %896 }
 0x157   : > { %v1478_v49 = vsel %vm1474_vm7, %v1445_v36, %v897_v18 }
 0x158   : > { %1107 = vrot.lane.b32.xlu2 %v5927_v40, %s5674_s10 }
 0x15a   : > { %1011 = vrot.lane.b32.xlu1 %v6238_v16, %s5675_s11  ;;  %v799_v11 = vpop.permute.xlu2 %798 }
 0x15c   : > { %v998_v57 = vpop.permute.xlu1 %997  ;;  %1203 = vrot.lane.b32.xlu0 %v9359_v58, %s5676_s12 }
 0x15d   : > { %v1511_v48 = vsel %vm1507_vm8, %v1478_v49, %v998_v57 }
 0x15e   : > { %v1190_v12 = vpop.permute.xlu0 %1189  ;;  %v1544_v28 = vsel %vm1540_vm9, %v1511_v48, %v1094_v20  ;;  %v1380_v20 = vsel %vm9245_vm4, %v5806_v25, %v6294_v59 }
 0x15f   : > { %v1577_v16 = vsel %vm9260_vm10, %v1544_v28, %v1190_v12  ;;  %v9362_v28 = vld [vmem:[#allocation13_spill] sm:$0xff] }
 0x160   : > { %810 = vrot.lane.b32.xlu2 %v5895_v13, %s5672_s8 }
 0x162   : > { %1299 = vrot.lane.b32.xlu1 %v6248_v43, %s5677_s13  ;;  %v1098_v4 = vpop.permute.xlu2 %1097 }
 0x164   : > { %v1286_v37 = vpop.permute.xlu1 %1285  ;;  %912 = vrot.lane.b32.xlu0 %v9358_v61, %s5673_s9  ;;  %v1413_v61 = vsel %vm1408_vm6, %v1380_v20, %v6442_v54  ;;  %v9364_v20 = vld [vmem:[#allocation21_spill] sm:$0xff] }
 0x165   : > { %v1610_v46 = vsel %vm9246_vm11, %v1577_v16, %v1286_v37  ;;  %v1446_v19 = vsel %vm1441_vm5, %v1413_v61, %v797_v41 }
 0x166   : > { %4882 = vmatmul.msk.f32.gmra.mxu0 %vm9244_vm12, %v1610_v46  ;;  %v899_v34 = vpop.permute.xlu0 %898 }
 0x167   : > { %v1479_v24 = vsel %vm1474_vm7, %v1446_v19, %v899_v34 }
 0x168   : > { %1109 = vrot.lane.b32.xlu2 %v5933_v44, %s5674_s10 }
 0x16a   : > { %1013 = vrot.lane.b32.xlu1 %v6254_v15, %s5675_s11  ;;  %v801_v17 = vpop.permute.xlu2 %800 }
 0x16c   : > { %v1000_v55 = vpop.permute.xlu1 %999  ;;  %1205 = vrot.lane.b32.xlu0 %v9360_v7, %s5676_s12 }
 0x16d   : > { %v1512_v21 = vsel %vm1507_vm8, %v1479_v24, %v1000_v55 }
 0x16e   : > { %v1192_v52 = vpop.permute.xlu0 %1191  ;;  %v1545_v25 = vsel %vm1540_vm9, %v1512_v21, %v1096_v3  ;;  %v1381_v3 = vsel %vm9245_vm4, %v5797_v22, %v6199_v32  ;;  %v9365_v21 = vld [vmem:[#allocation17_spill] sm:$0xff] }
 0x16f   : > { %v1578_v15 = vsel %vm9260_vm10, %v1545_v25, %v1192_v52  ;;  %v1414_v57 = vsel %vm1408_vm6, %v1381_v3, %v6404_v38 }
 0x170   : > { %812 = vrot.lane.b32.xlu2 %v5927_v40, %s5672_s8 }
 0x172   : > { %1301 = vrot.lane.b32.xlu1 %v6261_v27, %s5677_s13  ;;  %v1100_v59 = vpop.permute.xlu2 %1099 }
 0x174   : > { %v1288_v54 = vpop.permute.xlu1 %1287  ;;  %914 = vrot.lane.b32.xlu0 %v9359_v58, %s5673_s9  ;;  %v1447_v58 = vsel %vm1441_vm5, %v1414_v57, %v799_v11 }
 0x175   : > { %v1611_v41 = vsel %vm9246_vm11, %v1578_v15, %v1288_v54 }
 0x176   : > { %4883 = vmatmul.msk.f32.gmra.mxu0 %vm9244_vm12, %v1611_v41  ;;  %v901_v39 = vpop.permute.xlu0 %900  ;;  %v9366_v41 = vld [vmem:[#allocation19_spill] sm:$0xff] }
 0x177   : > { %v1480_v36 = vsel %vm1474_vm7, %v1447_v58, %v901_v39 }
 0x178   : > { %1111 = vrot.lane.b32.xlu2 %v5954_v60, %s5674_s10 }
 0x17a   : > { %1015 = vrot.lane.b32.xlu1 %v6248_v43, %s5675_s11  ;;  %v803_v18 = vpop.permute.xlu2 %802 }
 0x17c   : > { %v1002_v23 = vpop.permute.xlu1 %1001  ;;  %1207 = vrot.lane.b32.xlu0 %v9361_v30, %s5676_s12 }
 0x17d   : > { %v1513_v12 = vsel %vm1507_vm8, %v1480_v36, %v1002_v23  ;;  %v9368_v36 = vld [vmem:[#allocation16_spill] sm:$0xff] }
 0x17e   : > { %v1194_v49 = vpop.permute.xlu0 %1193  ;;  %v1546_v22 = vsel %vm1540_vm9, %v1513_v12, %v1098_v4  ;;  %v9363_v4 = vld [vmem:[#allocation51_spill] sm:$0xff]  ;;  %v1384_v12 = vsel %vm9245_vm4, %v5865_v56, %v6319_v42 }
 0x17f   : > { %v1579_v43 = vsel %vm9260_vm10, %v1546_v22, %v1194_v49  ;;  %v1382_v37 = vsel %vm9245_vm4, %v5826_v35, %v9363_v4 }
 0x180   : > { %814 = vrot.lane.b32.xlu2 %v5933_v44, %s5672_s8  ;;  %v1415_v34 = vsel %vm1408_vm6, %v1382_v37, %v6446_v5 }
 0x181   : > { %v1448_v55 = vsel %vm1441_vm5, %v1415_v34, %v801_v17 }
 0x182   : > { %1303 = vrot.lane.b32.xlu1 %v6280_v26, %s5677_s13  ;;  %v1102_v32 = vpop.permute.xlu2 %1101 }
 0x184   : > { %v1290_v38 = vpop.permute.xlu1 %1289  ;;  %916 = vrot.lane.b32.xlu0 %v9360_v7, %s5673_s9 }
 0x185   : > { %v1612_v11 = vsel %vm9246_vm11, %v1579_v43, %v1290_v38  ;;  %v9369_v43 = vld [vmem:[#allocation23_spill] sm:$0xff] }
 0x186   : > { %4884 = vmatmul.msk.f32.gmra.mxu0 %vm9244_vm12, %v1612_v11  ;;  %v903_v48 = vpop.permute.xlu0 %902 }
 0x187   : > { %v1481_v61 = vsel %vm1474_vm7, %v1448_v55, %v903_v48 }
 0x188   : > { %1113 = vrot.lane.b32.xlu2 %v9362_v28, %s5674_s10 }
 0x18a   : > { %1017 = vrot.lane.b32.xlu1 %v6261_v27, %s5675_s11  ;;  %v805_v16 = vpop.permute.xlu2 %804 }
 0x18c   : > { %v1004_v46 = vpop.permute.xlu1 %1003  ;;  %1209 = vrot.lane.b32.xlu0 %v9364_v20, %s5676_s12 }
 0x18d   : > { %v1514_v19 = vsel %vm1507_vm8, %v1481_v61, %v1004_v46  ;;  %v9370_v46 = vld [vmem:[#allocation22_spill] sm:$0xff] }
 0x18e   : > { %v1196_v7 = vpop.permute.xlu0 %1195  ;;  %v1547_v35 = vsel %vm1540_vm9, %v1514_v19, %v1100_v59  ;;  %v1383_v59 = vsel %vm9245_vm4, %v5820_v33, %v6302_v9  ;;  %v9372_v19 = vld [vmem:[#allocation28_spill] sm:$0xff] }
 0x18f   : > { %v1580_v5 = vsel %vm9260_vm10, %v1547_v35, %v1196_v7  ;;  %v1416_v54 = vsel %vm1408_vm6, %v1383_v59, %v6454_v62 }
 0x190   : > { %816 = vrot.lane.b32.xlu2 %v5954_v60, %s5672_s8  ;;  %v1449_v39 = vsel %vm1441_vm5, %v1416_v54, %v803_v18  ;;  %v9373_v54 = vld [vmem:[#allocation20_spill] sm:$0xff] }
 0x192   : > { %1305 = vrot.lane.b32.xlu1 %v6273_v53, %s5677_s13  ;;  %v1104_v27 = vpop.permute.xlu2 %1103 }
 0x194   : > { %v1292_v24 = vpop.permute.xlu1 %1291  ;;  %918 = vrot.lane.b32.xlu0 %v9361_v30, %s5673_s9 }
 0x195   : > { %v1613_v17 = vsel %vm9246_vm11, %v1580_v5, %v1292_v24 }
 0x196   : > { %4885 = vmatmul.msk.f32.gmra.mxu0 %vm9244_vm12, %v1613_v17  ;;  %v905_v52 = vpop.permute.xlu0 %904 }
 0x197   : > { %v1482_v3 = vsel %vm1474_vm7, %v1449_v39, %v905_v52 }
 0x198   : > { %1115 = vrot.lane.b32.xlu2 %v9365_v21, %s5674_s10 }
 0x19a   : > { %1019 = vrot.lane.b32.xlu1 %v6280_v26, %s5675_s11  ;;  %v807_v25 = vpop.permute.xlu2 %806  ;;  %v9367_v26 = vld [vmem:[#allocation54_spill] sm:$0xff] }
 0x19c   : > { %v1006_v15 = vpop.permute.xlu1 %1005  ;;  %1211 = vrot.lane.b32.xlu0 %v9366_v41, %s5676_s12 }
 0x19d   : > { %v1515_v57 = vsel %vm1507_vm8, %v1482_v3, %v1006_v15  ;;  %v1386_v3 = vsel %vm9245_vm4, %v5882_v0, %v6328_v45 }
 0x19e   : > { %v1198_v23 = vpop.permute.xlu0 %1197  ;;  %v1548_v33 = vsel %vm1540_vm9, %v1515_v57, %v1102_v32  ;;  %v1417_v32 = vsel %vm1408_vm6, %v1384_v12, %v6416_v10  ;;  %v1419_v57 = vsel %vm1408_vm6, %v1386_v3, %v6466_v31 }
 0x19f   : > { %v1581_v62 = vsel %vm9260_vm10, %v1548_v33, %v1198_v23  ;;  %v1450_v38 = vsel %vm1441_vm5, %v1417_v32, %v805_v16 }
 0x1a0   : > { %818 = vrot.lane.b32.xlu2 %v9362_v28, %s5672_s8 }
 0x1a2   : > { %1307 = vrot.lane.b32.xlu1 %v9367_v26, %s5677_s13  ;;  %v1106_v9 = vpop.permute.xlu2 %1105 }
 0x1a4   : > { %v1294_v30 = vpop.permute.xlu1 %1293  ;;  %920 = vrot.lane.b32.xlu0 %v9364_v20, %s5673_s9  ;;  %v9371_v20 = vld [vmem:[#allocation52_spill] sm:$0xff] }
 0x1a5   : > { %v1614_v18 = vsel %vm9246_vm11, %v1581_v62, %v1294_v30  ;;  %v1385_v55 = vsel %vm9245_vm4, %v5858_v51, %v9371_v20 }
 0x1a6   : > { %4886 = vmatmul.msk.f32.gmra.mxu0 %vm9244_vm12, %v1614_v18  ;;  %v907_v58 = vpop.permute.xlu0 %906  ;;  %v1418_v7 = vsel %vm1408_vm6, %v1385_v55, %v6458_v29 }
 0x1a7   : > { %v1483_v11 = vsel %vm1474_vm7, %v1450_v38, %v907_v58  ;;  %v1451_v35 = vsel %vm1441_vm5, %v1418_v7, %v807_v25 }
 0x1a8   : > { %1117 = vrot.lane.b32.xlu2 %v9368_v36, %s5674_s10 }
 0x1aa   : > { %1021 = vrot.lane.b32.xlu1 %v6273_v53, %s5675_s11  ;;  %v809_v49 = vpop.permute.xlu2 %808 }
 0x1ab   : > { %v1452_v33 = vsel %vm1441_vm5, %v1419_v57, %v809_v49 }
 0x1ac   : > { %v1008_v22 = vpop.permute.xlu1 %1007  ;;  %1213 = vrot.lane.b32.xlu0 %v9369_v43, %s5676_s12 }
 0x1ad   : > { %v1516_v4 = vsel %vm1507_vm8, %v1483_v11, %v1008_v22 }
 0x1ae   : > { %v1200_v48 = vpop.permute.xlu0 %1199  ;;  %v1549_v56 = vsel %vm1540_vm9, %v1516_v4, %v1104_v27  ;;  %v9375_v4 = vld [vmem:[#allocation61_spill] sm:$0xff] }
 0x1af   : > { %v1582_v53 = vsel %vm9260_vm10, %v1549_v56, %v1200_v48  ;;  %v1387_v56 = vsel %vm9245_vm4, %v5879_v63, %v9375_v4 }
 0x1b0   : > { %820 = vrot.lane.b32.xlu2 %v9365_v21, %s5672_s8 }
 0x1b2   : > { %1309 = vrot.lane.b32.xlu1 %v6305_v6, %s5677_s13  ;;  %v1108_v42 = vpop.permute.xlu2 %1107 }
 0x1b3   : > { %v1758_v51 = vpop.f32.mrf.mxu0 }
 0x1b4   : > { %v1296_v10 = vpop.permute.xlu1 %1295  ;;  %922 = vrot.lane.b32.xlu0 %v9366_v41, %s5673_s9 }
 0x1b5   : > { %v1615_v16 = vsel %vm9246_vm11, %v1582_v53, %v1296_v10  ;;  %v9376_v53 = vld [vmem:[#allocation79_spill] sm:$0xff] }
 0x1b6   : > { %4887 = vmatmul.msk.f32.gmra.mxu0 %vm9244_vm12, %v1615_v16  ;;  %v909_v37 = vpop.permute.xlu0 %908  ;;  %v1420_v10 = vsel %vm1408_vm6, %v1387_v56, %v9376_v53  ;;  %v9377_v16 = vld [vmem:[#allocation30_spill] sm:$0xff]  ;;  %v9382_v56 = vld [vmem:[#allocation53_spill] sm:$0xff] }
 0x1b7   : > { %v1484_v27 = vsel %vm1474_vm7, %v1451_v35, %v909_v37 }
 0x1b8   : > { %1119 = vrot.lane.b32.xlu2 %v9370_v46, %s5674_s10 }
 0x1ba   : > { %1023 = vrot.lane.b32.xlu1 %v9367_v26, %s5675_s11  ;;  %v811_v34 = vpop.permute.xlu2 %810  ;;  %v9374_v26 = vld [vmem:[#allocation26_spill] sm:$0xff] }
 0x1bb   : > { %v1453_v37 = vsel %vm1441_vm5, %v1420_v10, %v811_v34  ;;  %v9379_v34 = vld [vmem:[#allocation58_spill] sm:$0xff] }
 0x1bc   : > { %v1010_v61 = vpop.permute.xlu1 %1009  ;;  %1215 = vrot.lane.b32.xlu0 %v9372_v19, %s5676_s12 }
 0x1bd   : > { %v1517_v24 = vsel %vm1507_vm8, %v1484_v27, %v1010_v61 }
 0x1be   : > { %v1202_v5 = vpop.permute.xlu0 %1201  ;;  %v1550_v17 = vsel %vm1540_vm9, %v1517_v24, %v1106_v9 }
 0x1bf   : > { %v1583_v52 = vsel %vm9260_vm10, %v1550_v17, %v1202_v5  ;;  %v9380_v5 = vld [vmem:[#allocation34_spill] sm:$0xff] }
 0x1c0   : > { %822 = vrot.lane.b32.xlu2 %v9368_v36, %s5672_s8  ;;  %v679_v24 = vrot.slane %v9380_v5, 2 }
 0x1c2   : > { %1311 = vrot.lane.b32.xlu1 %v6299_v8, %s5677_s13  ;;  %v1110_v29 = vpop.permute.xlu2 %1109 }
 0x1c3   : > { %v1761_v41 = vpop.f32.mrf.mxu0 }
 0x1c4   : > { %v1298_v59 = vpop.permute.xlu1 %1297  ;;  %924 = vrot.lane.b32.xlu0 %v9369_v43, %s5673_s9 }
 0x1c5   : > { %v1616_v25 = vsel %vm9246_vm11, %v1583_v52, %v1298_v59 }
 0x1c6   : > { %4888 = vmatmul.msk.f32.gmra.mxu0 %vm9244_vm12, %v1616_v25  ;;  %v911_v15 = vpop.permute.xlu0 %910 }
 0x1c7   : > { %v1485_v9 = vsel %vm1474_vm7, %v1452_v33, %v911_v15  ;;  %v9381_v33 = vld [vmem:[#allocation39_spill] sm:$0xff] }
 0x1c8   : > { %1121 = vrot.lane.b32.xlu2 %v9373_v54, %s5674_s10 }
 0x1ca   : > { %1025 = vrot.lane.b32.xlu1 %v6305_v6, %s5675_s11  ;;  %v6781_v39 = vpop.permute.xlu2 %812  ;;  %v196_v6 = vld [vmem:[%s9138_s3] sm:$0x1f] }
 0x1cb   : > { %v6796_v18 = vperm.slane %v196_v6, 0 }
 0x1cc   : > { %v1012_v23 = vpop.permute.xlu1 %1011  ;;  %1217 = vrot.lane.b32.xlu0 %v9374_v26, %s5676_s12 }
 0x1cd   : > { %v1518_v30 = vsel %vm1507_vm8, %v1485_v9, %v1012_v23  ;;  %v1759_v22 = vadd.f32 %v1758_v51, %v6796_v18  ;;  %v1762_v15 = vadd.f32 %v1761_v41, %v6796_v18 }
 0x1ce   : > { %v1204_v62 = vpop.permute.xlu0 %1203  ;;  %v1551_v0 = vsel %vm1540_vm9, %v1518_v30, %v1108_v42 }
 0x1cf   : > { %v1584_v58 = vsel %vm9260_vm10, %v1551_v0, %v1204_v62 }
 0x1d0   : > { %824 = vrot.lane.b32.xlu2 %v9370_v46, %s5672_s8 }
 0x1d2   : > { %1313 = vrot.lane.b32.xlu1 %v6312_v47, %s5677_s13  ;;  %v6803_v31 = vpop.permute.xlu2 %1111 }
 0x1d3   : > { %v1764_v45 = vpop.f32.mrf.mxu0 }
 0x1d4   : > { %v6807_v49 = vadd.f32 %v1764_v45, %v6796_v18  ;;  %v1300_v12 = vpop.permute.xlu1 %1299  ;;  %926 = vrot.lane.b32.xlu0 %v9372_v19, %s5673_s9  ;;  %v9378_v19 = vld [vmem:[#allocation33_spill] sm:$0xff] }
 0x1d5   : > { %v1617_v32 = vsel %vm9246_vm11, %v1584_v58, %v1300_v12  ;;  %v677_v27 = vrot.slane %v9378_v19, 2 }
 0x1d6   : > { %4889 = vmatmul.msk.f32.gmra.mxu0 %vm9244_vm12, %v1617_v32  ;;  %v6815_v43 = vmax.f32 %v1759_v22, %v6807_v49  ;;  %v913_v38 = vpop.permute.xlu0 %912 }
 0x1d7   : > { %v1486_v55 = vsel %vm1474_vm7, %v1453_v37, %v913_v38  ;;  %v6869_v41 = vsel %vm610_vm2, %v677_v27, %v679_v24  ;;  %v9383_v37 = vld [vmem:[#allocation83_spill] sm:$0xff] }
 0x1d8   : > { %1123 = vrot.lane.b32.xlu2 %v6026_v50, %s5674_s10  ;;  %v6822_v11 = vrot.slane %v6815_v43, 2  ;;  %v1996_v7 = vperm.slane %v6815_v43, 1  ;;  %v1902_v51 = vrot.slane %v6815_v43, 6 }
 0x1da   : > { %1027 = vrot.lane.b32.xlu1 %v6299_v8, %s5675_s11  ;;  %v6824_v48 = vpop.permute.xlu2 %814  ;;  %v6835_v8 = vrot.slane %v6815_v43, 4  ;;  %v1997_v20 = vperm.slane %v6822_v11, 1  ;;  %v1999_v62 = vperm.slane %v1902_v51, 1  ;;  %v4914_v5 = vrot.slane %v1902_v51, 9 }
 0x1dc   : > { %v1014_v42 = vpop.permute.xlu1 %1013  ;;  %1219 = vrot.lane.b32.xlu0 %v9377_v16, %s5676_s12  ;;  %v1998_v35 = vperm.slane %v6835_v8, 1  ;;  %v2053_v17 = vsel %vm2052_vm13, %v1997_v20, %v1996_v7  ;;  %v4912_v7 = vrot.slane %v6822_v11, 9 }
 0x1dd   : > { %v1519_v63 = vsel %vm1507_vm8, %v1486_v55, %v1014_v42  ;;  %v1388_v42 = vsel %vm9245_vm4, %v5898_v14, %v9382_v56  ;;  %v4911_v55 = vrot.slane %v6815_v43, 9  ;;  %v4913_v14 = vrot.slane %v6835_v8, 9 }
 0x1de   : > { %v1206_v61 = vpop.permute.xlu0 %1205  ;;  %v1552_v52 = vsel %vm1540_vm9, %v1519_v63, %v1110_v29  ;;  %v2055_v9 = vsel %vm9237_vm14, %v1998_v35, %v2053_v17  ;;  %vm2062_vm14 = vcmask 1047559   ;;  %v1421_v20 = vsel %vm1408_vm6, %v1388_v42, %v9383_v37 }
 0x1df   : > { %v1585_v3 = vsel %vm9260_vm10, %v1552_v52, %v1206_v61  ;;  %v2057_v12 = vsel %vm2056_vm15, %v1999_v62, %v2055_v9  ;;  %v1454_v63 = vsel %vm1441_vm5, %v1421_v20, %v6781_v39  ;;  %v9384_v39 = vld [vmem:[#allocation37_spill] sm:$0xff]  ;;  %v2315_v9 = vmax.f32 %v6822_v11, %v4912_v7 }
 0x1e0   : > { %838 = vrot.lane.b32.xlu2 %v9378_v19, %s5672_s8  ;;  %v2316_v62 = vmax.f32 %v6835_v8, %v4913_v14 }
 0x1e2   : > { %1315 = vrot.lane.b32.xlu1 %v9379_v34, %s5677_s13  ;;  %v6851_v25 = vpop.permute.xlu2 %1113 }
 0x1e3   : > { %v1767_v59 = vpop.f32.mrf.mxu0 }
 0x1e4   : > { %v6856_v23 = vadd.f32 %v1767_v59, %v6796_v18  ;;  %v1302_v57 = vpop.permute.xlu1 %1301  ;;  %940 = vrot.lane.b32.xlu0 %v9381_v33, %s5673_s9 }
 0x1e5   : > { %v1618_v6 = vsel %vm9246_vm11, %v1585_v3, %v1302_v57  ;;  %v2314_v3 = vmax.f32 %v6815_v43, %v4911_v55  ;;  %v9385_v57 = vld [vmem:[#allocation43_spill] sm:$0xff] }
 0x1e6   : > { %v6863_v29 = vmax.f32 %v1762_v15, %v6856_v23  ;;  %4890 = vmatmul.msk.f32.gmra.mxu0 %vm9244_vm12, %v1618_v6  ;;  %v915_v30 = vpop.permute.xlu0 %914  ;;  %v684_v6 = vrot.slane %v9385_v57, 2  ;;  %v9388_v57 = vld [vmem:[#allocation35_spill] sm:$0xff] }
 0x1e7   : > { %v1487_v24 = vsel %vm1474_vm7, %v1454_v63, %v915_v30 }
 0x1e8   : > { %v1903_v0 = vrot.slane %v6863_v29, 2  ;;  %v1904_v45 = vrot.slane %v6863_v29, 4  ;;  %v2000_v58 = vperm.slane %v6863_v29, 1  ;;  %1041 = vrot.lane.b32.xlu2 %v6869_v41, %s5675_s11  ;;  %v4915_v43 = vrot.slane %v6863_v29, 9 }
 0x1ea   : > { %v2001_v22 = vperm.slane %v1903_v0, 1  ;;  %v2002_v32 = vperm.slane %v1904_v45, 1  ;;  %v2059_v38 = vsel %vm2058_vm3, %v2000_v58, %v2057_v12  ;;  %826 = vrot.lane.b32.xlu1 %v9373_v54, %s5672_s8  ;;  %v6880_v4 = vpop.permute.xlu2 %816  ;;  %v2317_v12 = vmax.f32 %v1902_v51, %v4914_v5 }
 0x1eb   : > { %v4917_v56 = vrot.slane %v1904_v45, 9  ;;  %v2318_v7 = vmax.f32 %v6863_v29, %v4915_v43 }
 0x1ec   : > { %v2061_v53 = vsel %vm2060_vm1, %v2001_v22, %v2059_v38  ;;  %v1016_v10 = vpop.permute.xlu1 %1015  ;;  %928 = vrot.lane.b32.xlu0 %v9374_v26, %s5673_s9  ;;  %v682_v26 = vrot.slane %v9384_v39, 2  ;;  %v1905_v22 = vrot.slane %v6863_v29, 6  ;;  %v4916_v38 = vrot.slane %v1903_v0, 9 }
 0x1ed   : > { %v2063_v61 = vsel %vm2062_vm14, %v2002_v32, %v2061_v53  ;;  %v1520_v59 = vsel %vm1507_vm8, %v1487_v24, %v1016_v10  ;;  %v9386_v53 = vld [vmem:[#allocation47_spill] sm:$0xff]  ;;  %v2320_v24 = vmax.f32 %v1904_v45, %v4917_v56  ;;  %v9391_v56 = vld [vmem:[#allocation32_spill] sm:$0xff] }
 0x1ee   : > { %v2114_v35 = vsel %vm9238_vm0, -inf, %v2063_v61  ;;  %v1208_v17 = vpop.permute.xlu0 %1207  ;;  %v4918_v63 = vrot.slane %v1905_v22, 9  ;;  %v2319_v5 = vmax.f32 %v1903_v0, %v4916_v38  ;;  %vm9239_vm0 = vcmask 1041409  }
 0x1ef   : > { %v2386_v52 = vrot.slane %v2114_v35, 2  ;;  %v2410_v15 = vrot.slane %v2114_v35, 1  ;;  %v2387_v58 = vrot.slane %v2114_v35, 4  ;;  %v2388_v10 = vrot.slane %v2114_v35, 6 }
 0x1f0   : > { %1029 = vrot.lane.b32.xlu2 %v6312_v47, %s5675_s11  ;;  %v1553_v47 = vsel %vm1540_vm9, %v1520_v59, %v6803_v31  ;;  %v6920_v37 = vmax.f32 %v2314_v3, %v2114_v35  ;;  %v6928_v31 = vsel %vm610_vm2, %v682_v26, %v684_v6  ;;  %v9387_v3 = vld [vmem:[#allocation24_spill] sm:$0xff]  ;;  %v676_v6 = vrot.slane %v9388_v57, 2 }
 0x1f1   : > { %v2411_v30 = vrot.slane %v2386_v52, 1  ;;  %v1586_v11 = vsel %vm9260_vm10, %v1553_v47, %v1208_v17  ;;  %v6915_v42 = vmax.f32 %v2315_v9, %v2410_v15  ;;  %v6922_v20 = vmax.f32 %v2316_v62, %v2386_v52  ;;  %v9390_v47 = vld [vmem:[#allocation85_spill] sm:$0xff] }
 0x1f2   : > { %1137 = vrot.lane.b32.xlu1 %v9384_v39, %s5674_s10  ;;  %v6912_v32 = vpop.permute.xlu2 %1115  ;;  %v2412_v55 = vrot.slane %v2387_v58, 1  ;;  %v6934_v17 = vmax.f32 %v2318_v7, %v2387_v58  ;;  %v2413_v52 = vrot.slane %v2388_v10, 1  ;;  %v3765_v59 = vperm.slane %v6920_v37, 0 }
 0x1f3   : > { %v6930_v61 = vmax.f32 %v2317_v12, %v2411_v30  ;;  %v3766_v35 = vperm.slane %v6915_v42, 0  ;;  %v3767_v15 = vperm.slane %v6922_v20, 0  ;;  %v2321_v9 = vmax.f32 %v1905_v22, %v4918_v63  ;;  %v9389_v30 = vld [vmem:[#allocation62_spill] sm:$0xff] }
 0x1f4   : > { %v1304_v8 = vpop.permute.xlu1 %1303  ;;  %1233 = vrot.lane.b32.xlu0 %v9386_v53, %s5676_s12  ;;  %v6942_v29 = vmax.f32 %v2319_v5, %v2412_v55  ;;  %v6948_v62 = vmax.f32 %v2320_v24, %v2388_v10  ;;  %v1389_v12 = vsel %vm9245_vm4, %v5895_v13, %v9389_v30  ;;  %v6970_v7 = vsel %vm610_vm2, %v676_v6, %v677_v27  ;;  %v1770_v27 = vpop.f32.mrf.mxu0  ;;  %v9395_v30 = vld [vmem:[#allocation38_spill] sm:$0xff] }
 0x1f5   : > { %v1619_v51 = vsel %vm9246_vm11, %v1586_v11, %v1304_v8  ;;  %v3768_v0 = vperm.slane %v6930_v61, 0  ;;  %v3829_v58 = vsel %vm9239_vm0, %v3766_v35, %v3765_v59  ;;  %v1422_v38 = vsel %vm1408_vm6, %v1389_v12, %v9390_v47 }
 0x1f6   : > { %4891 = vmatmul.msk.f32.gmra.mxu0 %vm9244_vm12, %v1619_v51  ;;  %v917_v14 = vpop.permute.xlu0 %916  ;;  %v6958_v11 = vmax.f32 %v2321_v9, %v2413_v52  ;;  %v3769_v8 = vperm.slane %v6934_v17, 0  ;;  %v3830_v22 = vsel %vm2052_vm13, %v3767_v15, %v3829_v58  ;;  %v1455_v51 = vsel %vm1441_vm5, %v1422_v38, %v6824_v48  ;;  %v9393_v52 = vld [vmem:[#allocation57_spill] sm:$0xff] }
 0x1f7   : > { %v3770_v10 = vperm.slane %v6942_v29, 0  ;;  %vm9392_vm0 = vcmask 1043459   ;;  %v1488_v55 = vsel %vm1474_vm7, %v1455_v51, %v917_v14  ;;  %v3771_v5 = vperm.slane %v6948_v62, 0  ;;  %v9397_v51 = vld [vmem:[#allocation65_spill] sm:$0xff] }
 0x1f8   : > { %1329 = vrot.lane.b32.xlu2 %v6928_v31, %s5677_s13  ;;  %v3831_v13 = vsel %vm9392_vm0, %v3768_v0, %v3830_v22  ;;  %v3772_v59 = vperm.slane %v6958_v11, 0  ;;  %vm9403_vm0 = vcmask 1041409  }
 0x1f9   : > { %v3832_v24 = vsel %vm2056_vm15, %v3769_v8, %v3831_v13 }
 0x1fa   : > { %1125 = vrot.lane.b32.xlu1 %v9387_v3, %s5674_s10  ;;  %v6945_v45 = vpop.permute.xlu2 %818  ;;  %v3833_v48 = vsel %vm2058_vm3, %v3770_v10, %v3832_v24  ;;  %v1390_v10 = vsel %vm9245_vm4, %v5927_v40, %v9397_v51  ;;  %v2589_v40 = vmax.f32 %v6915_v42, 0.0 }
 0x1fb   : > { %v3834_v14 = vsel %vm2060_vm1, %v3771_v5, %v3833_v48  ;;  %v9399_v48 = vld [vmem:[#allocation42_spill] sm:$0xff] }
 0x1fc   : > { %v1018_v43 = vpop.permute.xlu1 %1017  ;;  %1221 = vrot.lane.b32.xlu0 %v9391_v56, %s5676_s12  ;;  %v6987_v6 = vsel %vm2062_vm14, %v3772_v59, %v3834_v14 }
 0x1fd   : > { %v1521_v35 = vsel %vm1507_vm8, %v1488_v55, %v1018_v43  ;;  %9394 = vst [vmem:[#allocation11_spill] sm:$0xff] %v6987_v6  ;;  %v681_v43 = vrot.slane %v9395_v30, 2  ;;  %v9398_v55 = vld [vmem:[#allocation80_spill] sm:$0xff] }
 0x1fe   : > { %v1210_v63 = vpop.permute.xlu0 %1209  ;;  %v1554_v15 = vsel %vm1540_vm9, %v1521_v35, %v6851_v25  ;;  %v9396_v25 = vld [vmem:[#allocation44_spill] sm:$0xff] }
 0x1ff   : > { %v1587_v9 = vsel %vm9260_vm10, %v1554_v15, %v1210_v63  ;;  %v7002_v38 = vsel %vm610_vm2, %v681_v43, %v682_v26  ;;  %v1423_v63 = vsel %vm1408_vm6, %v1390_v10, %v9398_v55  ;;  %v2588_v43 = vmax.f32 %v6920_v37, 0.0 }
 0x200   : > { %1317 = vrot.lane.b32.xlu2 %v9393_v52, %s5677_s13  ;;  %v1456_v5 = vsel %vm1441_vm5, %v1423_v63, %v6880_v4  ;;  %v1771_v4 = vadd.f32 %v1770_v27, %v6796_v18  ;;  %v686_v27 = vrot.slane %v9399_v48, 2  ;;  %v2717_v10 = vperm.slane %v2589_v40, 0 }
 0x201   : > { %v2591_v55 = vmax.f32 %v6930_v61, 0.0  ;;  %v2716_v37 = vperm.slane %v2588_v43, 0  ;;  %v9404_v61 = vld [vmem:[#allocation55_spill] sm:$0xff] }
 0x202   : > { %743 = vrot.lane.b32.xlu1 %v6970_v7, %s9261_s7  ;;  %v6984_v0 = vpop.permute.xlu2 %1117 }
 0x203   : > { %v7004_v8 = vpop.f32.mrf.mxu0 }
 0x204   : > { %v1306_v58 = vpop.permute.xlu1 %1305  ;;  %840 = vrot.lane.b32.xlu0 %v9395_v30, %s5672_s8 }
 0x205   : > { %v1620_v12 = vsel %vm9246_vm11, %v1587_v9, %v1306_v58 }
 0x206   : > { %4892 = vmatmul.msk.f32.gmra.mxu0 %vm9244_vm12, %v1620_v12  ;;  %v919_v47 = vpop.permute.xlu0 %918 }
 0x207   : > { %v1489_v26 = vsel %vm1474_vm7, %v1456_v5, %v919_v47  ;;  %v9400_v47 = vld [vmem:[#allocation41_spill] sm:$0xff]  ;;  %v9402_v5 = vld [vmem:[#allocation46_spill] sm:$0xff] }
 0x208   : > { %828 = vrot.lane.b32.xlu2 %v6026_v50, %s5672_s8  ;;  %v9240_v51 = vrot.slane %v9400_v47, 2 }
 0x20a   : > { %942 = vrot.lane.b32.xlu1 %v9396_v25, %s5673_s9  ;;  %v7006_v22 = vpop.permute.xlu2 %820 }
 0x20c   : > { %v1020_v13 = vpop.permute.xlu1 %1019  ;;  %1043 = vrot.lane.b32.xlu0 %v7002_v38, %s5675_s11 }
 0x20d   : > { %v1522_v35 = vsel %vm1507_vm8, %v1489_v26, %v1020_v13  ;;  %v7053_v26 = vsel %vm610_vm2, %v686_v27, %v9240_v51 }
 0x20e   : > { %v1212_v24 = vpop.permute.xlu0 %1211  ;;  %v1555_v59 = vsel %vm1540_vm9, %v1522_v35, %v6912_v32  ;;  %v2590_v32 = vmax.f32 %v6922_v20, 0.0 }
 0x20f   : > { %v1588_v9 = vsel %vm9260_vm10, %v1555_v59, %v1212_v24  ;;  %v2781_v24 = vsel %vm9403_vm0, %v2717_v10, %v2716_v37  ;;  %v2719_v59 = vperm.slane %v2591_v55, 0  ;;  %vm9406_vm0 = vcmask 1043459  }
 0x210   : > { %1139 = vrot.lane.b32.xlu2 %v9399_v48, %s5674_s10  ;;  %v2718_v20 = vperm.slane %v2590_v32, 0 }
 0x212   : > { %930 = vrot.lane.b32.xlu1 %v9377_v16, %s5673_s9  ;;  %v7026_v15 = vpop.permute.xlu2 %1119  ;;  %v2782_v43 = vsel %vm2052_vm13, %v2718_v20, %v2781_v24 }
 0x213   : > { %v1776_v14 = vpop.f32.mrf.mxu0  ;;  %v2783_v55 = vsel %vm9406_vm0, %v2719_v59, %v2782_v43  ;;  %v2586_v43 = vld [vmem:[%s9137_s2 + $0x80] sm:$0xff] }
 0x214   : > { %v7031_v58 = vadd.f32 %v1776_v14, %v6796_v18  ;;  %v1308_v12 = vpop.permute.xlu1 %1307  ;;  %1031 = vrot.lane.b32.xlu0 %v9379_v34, %s5675_s11  ;;  %v9401_v34 = vld [vmem:[#allocation27_spill] sm:$0xff]  ;;  %v9405_v14 = vld [vmem:[#allocation86_spill] sm:$0xff] }
 0x215   : > { %v1621_v16 = vsel %vm9246_vm11, %v1588_v9, %v1308_v12  ;;  %v2592_v12 = vmax.f32 %v6934_v17, 0.0 }
 0x216   : > { %v1856_v42 = vmax.f32 %v1771_v4, %v7031_v58  ;;  %4893 = vmatmul.msk.f32.gmra.mxu0 %vm9244_vm12, %v1621_v16  ;;  %v921_v13 = vpop.permute.xlu0 %920 }
 0x217   : > { %v2720_v17 = vperm.slane %v2592_v12, 0 }
 0x218   : > { %v7044_v63 = vmax.f32 %v1856_v42, %v6807_v49  ;;  %1127 = vrot.lane.b32.xlu2 %v9401_v34, %s5674_s10  ;;  %v1391_v49 = vsel %vm9245_vm4, %v5933_v44, %v9404_v61  ;;  %v2593_v42 = vmax.f32 %v6942_v29, 0.0 }
 0x219   : > { %v1424_v4 = vsel %vm1408_vm6, %v1391_v49, %v9405_v14  ;;  %v2587_v49 = vld [vmem:[%s9137_s2 + $0x88] sm:$0xff]  ;;  %v2784_v59 = vsel %vm2056_vm15, %v2720_v17, %v2783_v55  ;;  %v1774_v14 = vadd.f32 %v7004_v8, %v6796_v18 }
 0x21a   : > { %1235 = vrot.lane.b32.xlu1 %v9402_v5, %s5676_s12  ;;  %v7056_v35 = vpop.permute.xlu2 %822  ;;  %v7064_v9 = vrot.slane %v7044_v63, 2  ;;  %v1457_v16 = vsel %vm1441_vm5, %v1424_v4, %v6945_v45  ;;  %v7075_v27 = vrot.slane %v7044_v63, 4  ;;  %v9407_v45 = vld [vmem:[#allocation31_spill] sm:$0xff]  ;;  %v2003_v29 = vperm.slane %v7044_v63, 1  ;;  %3236 = vmatpush.msra.mxu2 %v2587_v49  ;;  %v9409_v17 = vld [vmem:[#allocation66_spill] sm:$0xff] }
 0x21b   : > { %v1490_v44 = vsel %vm1474_vm7, %v1457_v16, %v921_v13  ;;  %v2594_v13 = vmax.f32 %v6948_v62, 0.0  ;;  %v1908_v16 = vrot.slane %v7044_v63, 6 }
 0x21c   : > { %v1022_v40 = vpop.permute.xlu1 %1021  ;;  %1331 = vrot.lane.b32.xlu0 %v7053_v26, %s5677_s13  ;;  %v2004_v37 = vperm.slane %v7064_v9, 1  ;;  %v2005_v62 = vperm.slane %v7075_v27, 1  ;;  %3237 = vmatpush.msra.mxu2 %v2586_v43 }
 0x21d   : > { %v1523_v10 = vsel %vm1507_vm8, %v1490_v44, %v1022_v40  ;;  %v2721_v40 = vperm.slane %v2593_v42, 0  ;;  %v9408_v42 = vld [vmem:[#allocation59_spill] sm:$0xff] }
 0x21e   : > { %v1214_v32 = vpop.permute.xlu0 %1213  ;;  %v1556_v20 = vsel %vm1540_vm9, %v1523_v10, %v6984_v0  ;;  %v2064_v44 = vsel %vm2052_vm13, %v2004_v37, %v2003_v29  ;;  %v2722_v37 = vperm.slane %v2594_v13, 0  ;;  %v9410_v29 = vld [vmem:[#allocation87_spill] sm:$0xff] }
 0x21f   : > { %v1589_v4 = vsel %vm9260_vm10, %v1556_v20, %v1214_v32  ;;  %v2595_v32 = vmax.f32 %v6958_v11, 0.0  ;;  %v2785_v55 = vsel %vm2058_vm3, %v2721_v40, %v2784_v59  ;;  %v1392_v20 = vsel %vm9245_vm4, %v5954_v60, %v9409_v17 }
 0x220   : > { %745 = vrot.lane.b32.xlu2 %v6869_v41, %s9261_s7  ;;  %v1425_v49 = vsel %vm1408_vm6, %v1392_v20, %v9410_v29  ;;  %v2786_v59 = vsel %vm2060_vm1, %v2722_v37, %v2785_v55  ;;  %v4920_v60 = vrot.slane %v7064_v9, 9 }
 0x221   : > { %v2723_v40 = vperm.slane %v2595_v32, 0  ;;  %v1458_v29 = vsel %vm1441_vm5, %v1425_v49, %v7006_v22 }
 0x222   : > { %1223 = vrot.lane.b32.xlu1 %v9407_v45, %s5676_s12  ;;  %v7088_v61 = vpop.permute.xlu2 %1121 }
 0x223   : > { %v1779_v24 = vpop.f32.mrf.mxu0  ;;  %v7138_v6 = vsel %vm2062_vm14, %v2723_v40, %v2786_v59 }
 0x224   : > { %v7099_v12 = vadd.f32 %v1779_v24, %v6796_v18  ;;  %v1310_v0 = vpop.permute.xlu1 %1309  ;;  %1319 = vrot.lane.b32.xlu0 %v9408_v42, %s5677_s13 }
 0x225   : > { %v1622_v8 = vsel %vm9246_vm11, %v1589_v4, %v1310_v0  ;;  %v2065_v4 = vsel %vm9406_vm0, %v2005_v62, %v2064_v44  ;;  %v2006_v0 = vperm.slane %v1908_v16, 1  ;;  %v4921_v62 = vrot.slane %v7075_v27, 9 }
 0x226   : > { %v1857_v10 = vmax.f32 %v1774_v14, %v7099_v12  ;;  %4894 = vmatmul.msk.f32.gmra.mxu0 %vm9244_vm12, %v1622_v8  ;;  %v923_v24 = vpop.permute.xlu0 %922  ;;  %v4919_v14 = vrot.slane %v7044_v63, 9  ;;  %vm9411_vm0 = vcmask 1040384  }
 0x227   : > { %v2066_v44 = vsel %vm2056_vm15, %v2006_v0, %v2065_v4  ;;  %v1491_v0 = vsel %vm1474_vm7, %v1458_v29, %v923_v24 }
 0x228   : > { %v1871_v11 = vmax.f32 %v1857_v10, %v6856_v23  ;;  %944 = vrot.lane.b32.xlu2 %v9386_v53, %s5673_s9  ;;  %v4922_v23 = vrot.slane %v1908_v16, 9  ;;  %v2322_v51 = vmax.f32 %v7044_v63, %v4919_v14 }
 0x22a   : > { %v1909_v43 = vrot.slane %v1871_v11, 2  ;;  %v1910_v13 = vrot.slane %v1871_v11, 4  ;;  %v2007_v8 = vperm.slane %v1871_v11, 1  ;;  %842 = vrot.lane.b32.xlu1 %v9384_v39, %s5672_s8  ;;  %v4923_v10 = vrot.slane %v1871_v11, 9  ;;  %v7129_v17 = vpop.permute.xlu2 %824 }
 0x22b   : > { %v1911_v37 = vrot.slane %v1871_v11, 6  ;;  %v2325_v14 = vmax.f32 %v1908_v16, %v4922_v23 }
 0x22c   : > { %v2008_v53 = vperm.slane %v1909_v43, 1  ;;  %v2009_v32 = vperm.slane %v1910_v13, 1  ;;  %v2067_v55 = vsel %vm2058_vm3, %v2007_v8, %v2066_v44  ;;  %v1024_v20 = vpop.permute.xlu1 %1023  ;;  %830 = vrot.lane.b32.xlu0 %v9387_v3, %s5672_s8  ;;  %v4924_v39 = vrot.slane %v1909_v43, 9 }
 0x22d   : > { %v4925_v50 = vrot.slane %v1910_v13, 9  ;;  %v2323_v8 = vmax.f32 %v7064_v9, %v4920_v60  ;;  %v2324_v44 = vmax.f32 %v7075_v27, %v4921_v62  ;;  %v1524_v22 = vsel %vm1507_vm8, %v1491_v0, %v1024_v20 }
 0x22e   : > { %v2068_v4 = vsel %vm2060_vm1, %v2008_v53, %v2067_v55  ;;  %v1216_v49 = vpop.permute.xlu0 %1215  ;;  %v2326_v3 = vmax.f32 %v1871_v11, %v4923_v10  ;;  %v4926_v59 = vrot.slane %v1911_v37, 9  ;;  %v1557_v9 = vsel %vm1540_vm9, %v1524_v22, %v7026_v15 }
 0x22f   : > { %v2069_v63 = vsel %vm2062_vm14, %v2009_v32, %v2068_v4  ;;  %v2327_v27 = vmax.f32 %v1909_v43, %v4924_v39  ;;  %v2328_v60 = vmax.f32 %v1910_v13, %v4925_v50  ;;  %v1590_v32 = vsel %vm9260_vm10, %v1557_v9, %v1216_v49 }
 0x230   : > { %v2115_v40 = vsel %vm9411_vm0, -inf, %v2069_v63  ;;  %932 = vrot.lane.b32.xlu2 %v9391_v56, %s5673_s9  ;;  %v2329_v4 = vmax.f32 %v1911_v37, %v4926_v59  ;;  %v2837_v22 = vrot.slane %v7138_v6, 7  ;;  %vm9415_vm0 = vcmask 1041409  }
 0x231   : > { %v2389_v24 = vrot.slane %v2115_v40, 2  ;;  %v2390_v53 = vrot.slane %v2115_v40, 4  ;;  %v2391_v55 = vrot.slane %v2115_v40, 6  ;;  %v2414_v29 = vrot.slane %v2115_v40, 1 }
 0x232   : > { %1045 = vrot.lane.b32.xlu1 %v6928_v31, %s5675_s11  ;;  %v7153_v16 = vmax.f32 %v2322_v51, %v2115_v40  ;;  %v7155_v11 = vpop.permute.xlu2 %1123 }
 0x233   : > { %v2415_v62 = vrot.slane %v2389_v24, 1  ;;  %v2416_v23 = vrot.slane %v2390_v53, 1  ;;  %v2417_v10 = vrot.slane %v2391_v55, 1  ;;  %v7157_v56 = vmax.f32 %v2323_v8, %v2414_v29 }
 0x234   : > { %v1312_v20 = vpop.permute.xlu1 %1311  ;;  %v7160_v0 = vmax.f32 %v2324_v44, %v2389_v24  ;;  %v7162_v15 = vmax.f32 %v2326_v3, %v2390_v53  ;;  %1141 = vrot.lane.b32.xlu0 %v9400_v47, %s5674_s10  ;;  %v7171_v43 = vmax.f32 %v2328_v60, %v2391_v55  ;;  %v2596_v37 = vmax.f32 %v7153_v16, 0.0  ;;  %v9412_v53 = vld [vmem:[#allocation48_spill] sm:$0xff]  ;;  %v9413_v55 = vld [vmem:[#allocation45_spill] sm:$0xff] }
 0x235   : > { %v1623_v50 = vsel %vm9246_vm11, %v1590_v32, %v1312_v20  ;;  %v7167_v39 = vmax.f32 %v2325_v14, %v2415_v62  ;;  %v7169_v51 = vmax.f32 %v2327_v27, %v2416_v23  ;;  %v7174_v13 = vmax.f32 %v2329_v4, %v2417_v10  ;;  %v9414_v60 = vld [vmem:[#allocation68_spill] sm:$0xff]  ;;  %v9416_v10 = vld [vmem:[#allocation81_spill] sm:$0xff] }
 0x236   : > { %4895 = vmatmul.msk.f32.gmra.mxu0 %vm9244_vm12, %v1623_v50  ;;  %v2597_v3 = vmax.f32 %v7157_v56, 0.0  ;;  %v2598_v8 = vmax.f32 %v7160_v0, 0.0  ;;  %v925_v44 = vpop.permute.xlu0 %924  ;;  %v2600_v63 = vmax.f32 %v7162_v15, 0.0  ;;  %v2724_v40 = vperm.slane %v2596_v37, 0 }
 0x237   : > { %v2599_v49 = vmax.f32 %v7167_v39, 0.0  ;;  %v2601_v14 = vmax.f32 %v7169_v51, 0.0  ;;  %v689_v29 = vrot.slane %v9413_v55, 2  ;;  %v2602_v9 = vmax.f32 %v7171_v43, 0.0 }
 0x238   : > { %v2725_v59 = vperm.slane %v2597_v3, 0  ;;  %v2726_v24 = vperm.slane %v2598_v8, 0  ;;  %1237 = vrot.lane.b32.xlu2 %v9412_v53, %s5676_s12  ;;  %v1393_v6 = vsel %vm9245_vm4, %v9362_v28, %v9414_v60  ;;  %v2603_v62 = vmax.f32 %v7174_v13, 0.0 }
 0x239   : > { %v2727_v27 = vperm.slane %v2599_v49, 0  ;;  %v1426_v32 = vsel %vm1408_vm6, %v1393_v6, %v9416_v10  ;;  %vm9417_vm12 = vcmask 1040384   ;;  %v2728_v50 = vperm.slane %v2600_v63, 0 }
 0x23a   : > { %1033 = vrot.lane.b32.xlu1 %v9393_v52, %s5675_s11  ;;  %v2788_v23 = vsel %vm9415_vm0, %v2725_v59, %v2724_v40  ;;  %v7196_v20 = vpop.permute.xlu2 %838  ;;  %v7199_v4 = vsel %vm9417_vm12, 0.0, %v2837_v22  ;;  %v1459_v28 = vsel %vm1441_vm5, %v1426_v32, %v7056_v35  ;;  %vm9419_vm4 = vmmov %vm9417_vm12  ;;  %v2729_v8 = vperm.slane %v2601_v14, 0  ;;  %v9421_v40 = vld [vmem:[#allocation29_spill] sm:$0xff] }
 0x23b   : > { %9418 = vst [vmem:[#allocation10_spill] sm:$0xff] %v7199_v4  ;;  %v2789_v37 = vsel %vm2052_vm13, %v2726_v24, %v2788_v23  ;;  %v2861_v52 = vsel %vm9419_vm4, %v2837_v22, 0.0  ;;  %vm9420_vm11 = vcmask 1043459   ;;  %v9422_v59 = vrot.slane %v9400_v47, 2  ;;  %vm9424_vm4 = vmmov %vm9415_vm0 }
 0x23c   : > { %v1026_v3 = vpop.permute.xlu1 %1025  ;;  %v2790_v49 = vsel %vm9420_vm11, %v2727_v27, %v2789_v37  ;;  %1129 = vrot.lane.b32.xlu0 %v9421_v40, %s5674_s10  ;;  %v2730_v63 = vperm.slane %v2602_v9, 0  ;;  %v3774_v60 = vperm.slane %v7157_v56, 0  ;;  %v1492_v35 = vsel %vm1474_vm7, %v1459_v28, %v925_v44  ;;  %v9423_v56 = vld [vmem:[#allocation36_spill] sm:$0xff]  ;;  %vm9425_vm11 = vmmov %vm9417_vm12 }
 0x23d   : > { %v7211_v55 = vsel %vm610_vm2, %v9422_v59, %v689_v29  ;;  %v2791_v24 = vsel %vm2056_vm15, %v2728_v50, %v2790_v49  ;;  %v2731_v6 = vperm.slane %v2603_v62, 0  ;;  %v3775_v14 = vperm.slane %v7160_v0, 0  ;;  %vm9427_vm12 = vmmov %vm9425_vm11 }
 0x23e   : > { %v2792_v22 = vsel %vm2058_vm3, %v2729_v8, %v2791_v24  ;;  %v1525_v27 = vsel %vm1507_vm8, %v1492_v35, %v1026_v3  ;;  %v1218_v23 = vpop.permute.xlu0 %1217  ;;  %v3773_v29 = vperm.slane %v7153_v16, 0  ;;  %v3776_v9 = vperm.slane %v7167_v39, 0  ;;  %v1782_v8 = vpop.f32.mrf.mxu0 }
 0x23f   : > { %v2793_v10 = vsel %vm2060_vm1, %v2730_v63, %v2792_v22  ;;  %v2885_v32 = vrot.slane %v2861_v52, 1  ;;  %v2930_v44 = vrot.slane %v7199_v4, 2  ;;  %v2931_v62 = vrot.slane %v2861_v52, 2 }
 0x240   : > { %v2794_v50 = vsel %vm2062_vm14, %v2731_v6, %v2793_v10  ;;  %1225 = vrot.lane.b32.xlu2 %v9423_v56, %s5676_s12  ;;  %v3836_v0 = vsel %vm9424_vm4, %v3774_v60, %v3773_v29  ;;  %v1558_v28 = vsel %vm1540_vm9, %v1525_v27, %v7088_v61  ;;  %v2884_v16 = vrot.slane %v7199_v4, 1 }
 0x241   : > { %v2838_v37 = vrot.slane %v2794_v50, 7  ;;  %v3777_v39 = vperm.slane %v7162_v15, 0  ;;  %v3837_v3 = vsel %vm2052_vm13, %v3775_v14, %v3836_v0  ;;  %v3778_v63 = vperm.slane %v7169_v51, 0 }
 0x242   : > { %1333 = vrot.lane.b32.xlu1 %v7211_v55, %s5677_s13  ;;  %v7234_v49 = vpop.permute.xlu2 %1041  ;;  %vm9428_vm0 = vcmask 1043459   ;;  %v1591_v24 = vsel %vm9260_vm10, %v1558_v28, %v1218_v23  ;;  %vm9429_vm4 = vcmask 261120   ;;  %v3779_v27 = vperm.slane %v7171_v43, 0  ;;  %v9436_v28 = vld [vmem:[#allocation63_spill] sm:$0xff] }
 0x243   : > { %v7237_v52 = vsel %vm9425_vm11, 0.0, %v2838_v37  ;;  %v2862_v59 = vsel %vm9427_vm12, %v2838_v37, 0.0  ;;  %v3838_v61 = vsel %vm9428_vm0, %v3776_v9, %v3837_v3  ;;  %vm9430_vm11 = vcmask 293888  }
 0x244   : > { %9426 = vst [vmem:[#allocation12_spill] sm:$0xff] %v7237_v52  ;;  %v1314_v60 = vpop.permute.xlu1 %1313  ;;  %v2888_v35 = vrot.slane %v2862_v59, 1  ;;  %v2933_v15 = vrot.slane %v7237_v52, 2  ;;  %v2934_v6 = vrot.slane %v2862_v59, 2  ;;  %747 = vrot.lane.b32.xlu0 %v7002_v38, %s9261_s7  ;;  %v2887_v14 = vrot.slane %v7237_v52, 1 }
 0x245   : > { %v1624_v22 = vsel %vm9429_vm4, %v1591_v24, %v1314_v60  ;;  %v3839_v51 = vsel %vm2056_vm15, %v3777_v39, %v3838_v61  ;;  %v7252_v23 = vsel %vm610_vm2, %v2930_v44, %v2931_v62  ;;  %v3780_v29 = vperm.slane %v7174_v13, 0  ;;  %v7286_v61 = vld [vmem:[%s5775_s5 + $0xf8] sm:$0xff] }
 0x246   : > { %4896 = vmatmul.msk.f32.gmra.mxu0 %vm9430_vm11, %v1624_v22  ;;  %9431 = vst [vmem:[#allocation15_spill] sm:$0xff] %v7252_v23  ;;  %v7255_v10 = vsel %vm610_vm2, %v2933_v15, %v2934_v6  ;;  %v3840_v9 = vsel %vm2058_vm3, %v3778_v63, %v3839_v51  ;;  %v927_v43 = vpop.permute.xlu0 %926  ;;  %vm9432_vm12 = vcmask 1046528   ;;  %v1785_v39 = vpop.f32.mrf.mxu0  ;;  %vm9438_vm4 = vcmask 31744   ;;  %v227_v63 = vld [vmem:[%s5775_s5 + $0xf0] sm:$0xff]  ;;  %v9439_v24 = vld [vmem:[#allocation8_spill] sm:$0xff]  ;;  %s5678_s5 = smov 64  }
 0x247   : > { %4975 = vmatmul.msk.f32.vlgmr.msra.gmra.mxu2 %vm1474_vm7, %v7255_v10  ;;  %v7264_v37 = vsel %vm9432_vm12, %v2884_v16, %v2885_v32  ;;  %vm9434_vm0 = vmmov %vm9432_vm12  ;;  %v3841_v62 = vsel %vm2060_vm1, %v3779_v27, %v3840_v9  ;;  %v9437_v16 = vld [vmem:[#allocation56_spill] sm:$0xff]  ;;  %v315_v22 = vrot.slane %v227_v63, 7  ;;  %vm9440_vm11 = vcmask 1040384  }
 0x248   : > { %9433 = vst [vmem:[#allocation14_spill] sm:$0xff] %v7264_v37  ;;  %v7267_v44 = vsel %vm9434_vm0, %v2887_v14, %v2888_v35  ;;  %v7273_v0 = vsel %vm2062_vm14, %v3780_v29, %v3841_v62  ;;  %844 = vrot.lane.b32.xlu2 %v9399_v48, %s5672_s8  ;;  %v1394_v3 = vsel %vm9438_vm4, %v9365_v21, %v9437_v16  ;;  %v9249_v14 = vrot.slane %v7286_v61, 7  ;;  %vm9441_vm12 = vmmov %vm9440_vm11 }
 0x249   : > { %9435 = vst [vmem:[#allocation18_spill] sm:$0xff] %v7273_v0  ;;  %v1427_v60 = vsel %vm1408_vm6, %v1394_v3, %v9439_v24  ;;  %v7309_v29 = vsel %vm9441_vm12, 0.0, %v315_v22  ;;  %v1783_v9 = vadd.f32 %v1782_v8, %v6796_v18  ;;  %vm9442_vm0 = vcmask 261120  }
 0x24a   : > { %1321 = vrot.lane.b32.xlu1 %v9436_v28, %s5677_s13  ;;  %v7279_v32 = vpop.permute.xlu2 %1029  ;;  %v1460_v35 = vsel %vm1441_vm5, %v1427_v60, %v7129_v17  ;;  %v7306_v17 = vsel %vm9440_vm11, %v315_v22, %v9249_v14  ;;  %vm9443_vm4 = vcmask 293888   ;;  %v986_v60 = vrot.slane %v7309_v29, 2  ;;  %v9451_v14 = vld [vmem:[#allocation88_spill] sm:$0xff] }
 0x24b   : > { %v1493_v15 = vsel %vm1474_vm7, %v1460_v35, %v927_v43  ;;  %v9248_v63 = vrot.slane %v7306_v17, 1  ;;  %vm9444_vm11 = vcmask 1046528   ;;  %v9247_v35 = vrot.slane %v7306_v17, 2 }
 0x24c   : > { %v1028_v59 = vpop.permute.xlu1 %1027  ;;  %946 = vrot.lane.b32.xlu0 %v9402_v5, %s5673_s9  ;;  %vm9446_vm12 = vcmask 31744  }
 0x24d   : > { %v1526_v21 = vsel %vm1507_vm8, %v1493_v15, %v1028_v59  ;;  %v885_v59 = vrot.slane %v7309_v29, 1 }
 0x24e   : > { %v1220_v6 = vpop.permute.xlu0 %1219  ;;  %v1559_v5 = vsel %vm1540_vm9, %v1526_v21, %v7155_v11  ;;  %v9445_v21 = vld [vmem:[#allocation74_spill] sm:$0xff] }
 0x24f   : > { %v1592_v43 = vsel %vm9260_vm10, %v1559_v5, %v1220_v6  ;;  %v1401_v5 = vsel %vm9446_vm12, %v9421_v40, %v9445_v21  ;;  %v1786_v21 = vadd.f32 %v1785_v39, %v6796_v18 }
 0x250   : > { %1047 = vrot.lane.b32.xlu2 %v7053_v26, %s5675_s11 }
 0x252   : > { %832 = vrot.lane.b32.xlu1 %v9401_v34, %s5672_s8  ;;  %v1330_v51 = vpop.permute.xlu2 %1329 }
 0x253   : > { %v1788_v27 = vpop.f32.mrf.mxu0 }
 0x254   : > { %v7314_v62 = vadd.f32 %v1788_v27, %v6796_v18  ;;  %v1316_v16 = vpop.permute.xlu1 %1315  ;;  %934 = vrot.lane.b32.xlu0 %v9407_v45, %s5673_s9  ;;  %v7332_v45 = vsel %vm9444_vm11, %v885_v59, %v9248_v63  ;;  %vm9453_vm11 = vcmask 261120  }
 0x255   : > { %v1625_v11 = vsel %vm9442_vm0, %v1592_v43, %v1316_v16  ;;  %vm9450_vm0 = vmmov %vm9446_vm12  ;;  %vm9454_vm12 = vcmask 293888  }
 0x256   : > { %v1858_v3 = vmax.f32 %v1783_v9, %v7314_v62  ;;  %4897 = vmatmul.msk.f32.gmra.mxu0 %vm9443_vm4, %v1625_v11  ;;  %v941_v8 = vpop.permute.xlu0 %940  ;;  %v9447_v9 = vld [vmem:[#allocation91_spill] sm:$0xff]  ;;  %vm9452_vm4 = vcmask 1043459  }
 0x257   : > { %v1434_v43 = vsel %vm1408_vm6, %v1401_v5, %v9447_v9 }
 0x258   : > { %v1872_v24 = vmax.f32 %v1858_v3, %v7031_v58  ;;  %1035 = vrot.lane.b32.xlu2 %v9408_v42, %s5675_s11  ;;  %v7342_v58 = vsel %vm610_vm2, %v986_v60, %v9247_v35  ;;  %v1467_v11 = vsel %vm1441_vm5, %v1434_v43, %v7196_v20  ;;  %v9448_v20 = vld [vmem:[#allocation40_spill] sm:$0xff]  ;;  %v9449_v43 = vld [vmem:[#allocation69_spill] sm:$0xff] }
 0x259   : > { %v1500_v59 = vsel %vm1474_vm7, %v1467_v11, %v941_v8  ;;  %v1395_v8 = vsel %vm9450_vm0, %v9368_v36, %v9449_v43  ;;  %vm9455_vm0 = vcmask 1040384  }
 0x25a   : > { %1143 = vrot.lane.b32.xlu1 %v7309_v29, %s5674_s10  ;;  %v7335_v15 = vpop.permute.xlu2 %1317  ;;  %v1912_v22 = vrot.slane %v1872_v24, 2  ;;  %v1913_v27 = vrot.slane %v1872_v24, 4  ;;  %v2010_v3 = vperm.slane %v1872_v24, 1  ;;  %v1914_v35 = vrot.slane %v1872_v24, 6 }
 0x25b   : > { %v1533_v39 = vsel %vm1507_vm8, %v1500_v59, %v7234_v49 }
 0x25c   : > { %v827_v6 = vpop.permute.xlu1 %826  ;;  %1239 = vrot.lane.b32.xlu0 %v7332_v45, %s5676_s12  ;;  %v2011_v16 = vperm.slane %v1912_v22, 1  ;;  %v2012_v13 = vperm.slane %v1913_v27, 1  ;;  %v2013_v4 = vperm.slane %v1914_v35, 1  ;;  %v4928_v36 = vrot.slane %v1912_v22, 9 }
 0x25d   : > { %v4929_v43 = vrot.slane %v1913_v27, 9 }
 0x25e   : > { %v929_v42 = vpop.permute.xlu0 %928  ;;  %v2070_v63 = vsel %vm2052_vm13, %v2011_v16, %v2010_v3  ;;  %v4927_v3 = vrot.slane %v1872_v24, 9 }
 0x25f   : > { %v2071_v16 = vsel %vm9452_vm4, %v2012_v13, %v2070_v63  ;;  %vm9456_vm4 = vmmov %vm9453_vm11 }
 0x260   : > { %1335 = vrot.lane.b32.xlu2 %v7342_v58, %s5677_s13  ;;  %v2072_v13 = vsel %vm2056_vm15, %v2013_v4, %v2071_v16 }
 0x262   : > { %1131 = vrot.lane.b32.xlu1 %v9388_v57, %s5674_s10  ;;  %v7356_v50 = vpop.permute.xlu2 %828 }
 0x263   : > { %v1791_v60 = vpop.f32.mrf.mxu0 }
 0x264   : > { %v7360_v5 = vadd.f32 %v1791_v60, %v6796_v18  ;;  %v1138_v9 = vpop.permute.xlu1 %1137  ;;  %1227 = vrot.lane.b32.xlu0 %v9448_v20, %s5676_s12  ;;  %v1428_v60 = vsel %vm1408_vm6, %v1395_v8, %v9451_v14 }
 0x265   : > { %v1566_v0 = vsel %vm1540_vm9, %v1533_v39, %v1138_v9  ;;  %v1461_v14 = vsel %vm1441_vm5, %v1428_v60, %v827_v6  ;;  %v2330_v39 = vmax.f32 %v1872_v24, %v4927_v3  ;;  %v2331_v60 = vmax.f32 %v1912_v22, %v4928_v36 }
 0x266   : > { %v1859_v11 = vmax.f32 %v1786_v21, %v7360_v5  ;;  %v1234_v34 = vpop.permute.xlu0 %1233 }
 0x267   : > { %v1599_v52 = vsel %vm9260_vm10, %v1566_v0, %v1234_v34  ;;  %v1494_v34 = vsel %vm1474_vm7, %v1461_v14, %v929_v42  ;;  %v2332_v14 = vmax.f32 %v1913_v27, %v4929_v43 }
 0x268   : > { %v1873_v48 = vmax.f32 %v1859_v11, %v7099_v12  ;;  %1323 = vrot.lane.b32.xlu2 %v6970_v7, %s5677_s13  ;;  %v1632_v49 = vsel %vm9453_vm11, %v1599_v52, %v1330_v51  ;;  %v4930_v12 = vrot.slane %v1914_v35, 9  ;;  %v1527_v4 = vsel %vm1507_vm8, %v1494_v34, %v7279_v32  ;;  %vm9457_vm11 = vmmov %vm9454_vm12 }
 0x269   : > { %4904 = vmatmul.msk.f32.vlgmr.msra.gmra.mxu3 %vm9454_vm12, %v1632_v49  ;;  %vm9459_vm12 = vmmov %vm9455_vm0 }
 0x26a   : > { %v1915_v59 = vrot.slane %v1873_v48, 2  ;;  %v1916_v21 = vrot.slane %v1873_v48, 4  ;;  %v2014_v9 = vperm.slane %v1873_v48, 1  ;;  %749 = vrot.lane.b32.xlu1 %v6928_v31, %s9261_s7  ;;  %v7386_v0 = vpop.permute.xlu2 %1139  ;;  %v1917_v63 = vrot.slane %v1873_v48, 6 }
 0x26b   : > { %v4931_v6 = vrot.slane %v1873_v48, 9  ;;  %v2333_v23 = vmax.f32 %v1914_v35, %v4930_v12 }
 0x26c   : > { %v2015_v8 = vperm.slane %v1915_v59, 1  ;;  %v2016_v52 = vperm.slane %v1916_v21, 1  ;;  %v2073_v51 = vsel %vm2058_vm3, %v2014_v9, %v2072_v13  ;;  %v1126_v11 = vpop.permute.xlu1 %1125  ;;  %846 = vrot.lane.b32.xlu0 %v9400_v47, %s5672_s8  ;;  %v4932_v31 = vrot.slane %v1915_v59, 9 }
 0x26d   : > { %v4933_v42 = vrot.slane %v1916_v21, 9  ;;  %v4934_v16 = vrot.slane %v1917_v63, 9  ;;  %v1560_v37 = vsel %vm1540_vm9, %v1527_v4, %v1126_v11  ;;  %v2334_v24 = vmax.f32 %v1873_v48, %v4931_v6 }
 0x26e   : > { %v2074_v49 = vsel %vm2060_vm1, %v2015_v8, %v2073_v51  ;;  %v1222_v9 = vpop.permute.xlu0 %1221  ;;  %v2335_v36 = vmax.f32 %v1915_v59, %v4932_v31 }
 0x26f   : > { %v2075_v13 = vsel %vm2062_vm14, %v2016_v52, %v2074_v49  ;;  %v1593_v22 = vsel %vm9260_vm10, %v1560_v37, %v1222_v9  ;;  %v2336_v48 = vmax.f32 %v1916_v21, %v4933_v42  ;;  %v2337_v43 = vmax.f32 %v1917_v63, %v4934_v16 }
 0x270   : > { %v2116_v3 = vsel %vm9455_vm0, -inf, %v2075_v13  ;;  %834 = vrot.lane.b32.xlu2 %v9421_v40, %s5672_s8  ;;  %v1626_v32 = vsel %vm9456_vm4, %v1593_v22, %v7335_v15  ;;  %v9458_v15 = vrot.slane %v7286_v61, 7  ;;  %vm9460_vm0 = vcmask 1041409  }
 0x271   : > { %v2392_v34 = vrot.slane %v2116_v3, 2  ;;  %v2393_v27 = vrot.slane %v2116_v3, 4  ;;  %v2394_v35 = vrot.slane %v2116_v3, 6  ;;  %4898 = vmatmul.msk.f32.gmra.mxu0 %vm9457_vm11, %v1626_v32  ;;  %v2418_v37 = vrot.slane %v2116_v3, 1  ;;  %vm9462_vm11 = vmmov %vm9460_vm0 }
 0x272   : > { %948 = vrot.lane.b32.xlu1 %v9412_v53, %s5673_s9  ;;  %v2522_v12 = vmax.f32 %v2330_v39, %v2116_v3  ;;  %v7405_v8 = vpop.permute.xlu2 %1127  ;;  %v400_v11 = vsel %vm9459_vm12, %v9458_v15, 0.0  ;;  %vm9461_vm4 = vcmask 1043459   ;;  %vm9464_vm12 = vcmask 1046528  }
 0x273   : > { %v2419_v59 = vrot.slane %v2392_v34, 1  ;;  %v2420_v52 = vrot.slane %v2393_v27, 1  ;;  %v2421_v40 = vrot.slane %v2394_v35, 1  ;;  %v2524_v51 = vmax.f32 %v2332_v14, %v2392_v34 }
 0x274   : > { %v7407_v6 = vpop.permute.xlu1 %743  ;;  %v2523_v31 = vmax.f32 %v2331_v60, %v2418_v37  ;;  %v2526_v53 = vmax.f32 %v2334_v24, %v2393_v27  ;;  %1049 = vrot.lane.b32.xlu0 %v7211_v55, %s5675_s11  ;;  %v2528_v39 = vmax.f32 %v2336_v48, %v2394_v35  ;;  %v2604_v4 = vmax.f32 %v2522_v12, 0.0 }
 0x275   : > { %v2525_v21 = vmax.f32 %v2333_v23, %v2419_v59  ;;  %v2527_v63 = vmax.f32 %v2335_v36, %v2420_v52  ;;  %v2529_v49 = vmax.f32 %v2337_v43, %v2421_v40  ;;  %v2606_v16 = vmax.f32 %v2524_v51, 0.0 }
 0x276   : > { %v2605_v42 = vmax.f32 %v2523_v31, 0.0  ;;  %v2608_v9 = vmax.f32 %v2526_v53, 0.0  ;;  %v7414_v14 = vpop.permute.xlu0 %840  ;;  %v2732_v61 = vperm.slane %v2604_v4, 0  ;;  %v888_v60 = vrot.slane %v400_v11, 1 }
 0x277   : > { %v2607_v13 = vmax.f32 %v2525_v21, 0.0  ;;  %v2609_v22 = vmax.f32 %v2527_v63, 0.0  ;;  %v2734_v32 = vperm.slane %v2606_v16, 0  ;;  %v2610_v24 = vmax.f32 %v2528_v39, 0.0 }
 0x278   : > { %v2733_v3 = vperm.slane %v2605_v42, 0  ;;  %1145 = vrot.lane.b32.xlu2 %v7306_v17, %s5674_s10  ;;  %v2611_v36 = vmax.f32 %v2529_v49, 0.0  ;;  %v2736_v34 = vperm.slane %v2608_v9, 0  ;;  %v3782_v35 = vperm.slane %v2523_v31, 0 }
 0x279   : > { %v2735_v23 = vperm.slane %v2607_v13, 0  ;;  %v3781_v37 = vperm.slane %v2522_v12, 0  ;;  %v3783_v59 = vperm.slane %v2524_v51, 0  ;;  %v3784_v52 = vperm.slane %v2525_v21, 0 }
 0x27a   : > { %936 = vrot.lane.b32.xlu1 %v9423_v56, %s5673_s9  ;;  %v2795_v27 = vsel %vm9460_vm0, %v2733_v3, %v2732_v61  ;;  %v7421_v48 = vpop.permute.xlu2 %745  ;;  %v2737_v15 = vperm.slane %v2609_v22, 0  ;;  %v989_v56 = vrot.slane %v400_v11, 2  ;;  %v2738_v42 = vperm.slane %v2610_v24, 0  ;;  %vm9465_vm0 = vmmov %vm9461_vm4 }
 0x27b   : > { %v2796_v43 = vsel %vm2052_vm13, %v2734_v32, %v2795_v27  ;;  %v3843_v31 = vsel %vm9462_vm11, %v3782_v35, %v3781_v37  ;;  %v2739_v9 = vperm.slane %v2611_v36, 0  ;;  %v3785_v61 = vperm.slane %v2526_v53, 0 }
 0x27c   : > { %v943_v40 = vpop.permute.xlu1 %942  ;;  %v2797_v4 = vsel %vm9461_vm4, %v2735_v23, %v2796_v43  ;;  %1037 = vrot.lane.b32.xlu0 %v9436_v28, %s5675_s11  ;;  %v3844_v12 = vsel %vm2052_vm13, %v3783_v59, %v3843_v31  ;;  %v9463_v21 = vrot.slane %v7306_v17, 1  ;;  %v3786_v11 = vperm.slane %v2527_v63, 0 }
 0x27d   : > { %v2798_v16 = vsel %vm2056_vm15, %v2736_v34, %v2797_v4  ;;  %v3845_v3 = vsel %vm9465_vm0, %v3784_v52, %v3844_v12  ;;  %v3787_v24 = vperm.slane %v2528_v39, 0  ;;  %v3788_v36 = vperm.slane %v2529_v49, 0  ;;  %v1794_v39 = vpop.f32.mrf.mxu0 }
 0x27e   : > { %v2799_v13 = vsel %vm2058_vm3, %v2737_v15, %v2798_v16  ;;  %v1044_v51 = vpop.permute.xlu0 %1043  ;;  %v7434_v22 = vsel %vm9464_vm12, %v9463_v21, %v888_v60  ;;  %v3846_v23 = vsel %vm2056_vm15, %v3785_v61, %v3845_v3  ;;  %v9466_v60 = vrot.slane %v7306_v17, 2  ;;  %v9469_v16 = vld [vmem:[#allocation75_spill] sm:$0xff] }
 0x27f   : > { %v2800_v28 = vsel %vm2060_vm1, %v2738_v42, %v2799_v13  ;;  %v3847_v34 = vsel %vm2058_vm3, %v3786_v11, %v3846_v23  ;;  %vm9467_vm4 = vcmask 1040384   ;;  %vm9470_vm12 = vcmask 31744   ;;  %v9472_v23 = vld [vmem:[#allocation71_spill] sm:$0xff] }
 0x280   : > { %v2801_v32 = vsel %vm2062_vm14, %v2739_v9, %v2800_v28  ;;  %1133 = vrot.lane.b32.xlu2 %v9378_v19, %s5674_s10  ;;  %v7448_v63 = vsel %vm610_vm2, %v9466_v60, %v989_v56  ;;  %v3848_v27 = vsel %vm2060_vm1, %v3787_v24, %v3847_v34  ;;  %vm9468_vm11 = vmmov %vm9467_vm4  ;;  %v1402_v31 = vsel %vm9470_vm12, %v9388_v57, %v9469_v16 }
 0x281   : > { %v2839_v53 = vrot.slane %v2801_v32, 7  ;;  %v7458_v37 = vsel %vm2062_vm14, %v3788_v36, %v3848_v27  ;;  %vm9471_vm0 = vcmask 1046528   ;;  %v1435_v12 = vsel %vm1408_vm6, %v1402_v31, %v7407_v6 }
 0x282   : > { %1241 = vrot.lane.b32.xlu1 %v7434_v22, %s5676_s12  ;;  %v7451_v35 = vpop.permute.xlu2 %944  ;;  %v1468_v28 = vsel %vm1441_vm5, %v1435_v12, %v7414_v14  ;;  %v1795_v27 = vadd.f32 %v1794_v39, %v6796_v18 }
 0x283   : > { %v7454_v43 = vsel %vm9467_vm4, 0.0, %v2839_v53  ;;  %v2863_v49 = vsel %vm9468_vm11, %v2839_v53, 0.0  ;;  %v1501_v11 = vsel %vm1474_vm7, %v1468_v28, %v943_v40  ;;  %vm9473_vm4 = vmmov %vm9470_vm12  ;;  %vm9475_vm11 = vcmask 261120  }
 0x284   : > { %v931_v59 = vpop.permute.xlu1 %930  ;;  %v2891_v52 = vrot.slane %v2863_v49, 1  ;;  %v2936_v15 = vrot.slane %v7454_v43, 2  ;;  %v2937_v4 = vrot.slane %v2863_v49, 2  ;;  %1337 = vrot.lane.b32.xlu0 %v7448_v63, %s5677_s13  ;;  %v2890_v56 = vrot.slane %v7454_v43, 1 }
 0x285   : > { %v1534_v3 = vsel %vm1507_vm8, %v1501_v11, %v1044_v51  ;;  %v1797_v32 = vpop.f32.mrf.mxu0  ;;  %vm9476_vm12 = vcmask 293888  }
 0x286   : > { %v7465_v42 = vsel %vm610_vm2, %v2936_v15, %v2937_v4  ;;  %v1032_v13 = vpop.permute.xlu0 %1031  ;;  %v7475_v61 = vsel %vm9471_vm0, %v2890_v56, %v2891_v52  ;;  %v1567_v14 = vsel %vm1540_vm9, %v1534_v3, %v7386_v0  ;;  %vm9477_vm0 = vmmov %vm9475_vm11 }
 0x287   : > { %v5193_v9 = vpack.i.bf16 %v7465_v42, %v7255_v10  ;;  %4976 = vmatmul.msk.f32.gmra.mxu2 %vm1474_vm7, %v7465_v42  ;;  %v7481_v21 = vpack.i.bf16 %v7475_v61, %v7267_v44 }
 0x288   : > { %751 = vrot.lane.b32.xlu2 %v7053_v26, %s9261_s7  ;;  %v1396_v26 = vsel %vm9473_vm4, %v9370_v46, %v9472_v23  ;;  %vm9478_vm4 = vmmov %vm9476_vm12 }
 0x28a   : > { %1229 = vrot.lane.b32.xlu1 %v9381_v33, %s5676_s12  ;;  %v7491_v24 = vpop.permute.xlu2 %932  ;;  %v9474_v33 = vld [vmem:[#allocation82_spill] sm:$0xff] }
 0x28b   : > { %v1429_v51 = vsel %vm1408_vm6, %v1396_v26, %v9474_v33  ;;  %v9484_v33 = vld [vmem:[#allocation89_spill] sm:$0xff] }
 0x28c   : > { %v1236_v6 = vpop.permute.xlu1 %1235  ;;  %1325 = vrot.lane.b32.xlu0 %v6869_v41, %s5677_s13  ;;  %v1462_v34 = vsel %vm1441_vm5, %v1429_v51, %v7356_v50 }
 0x28d   : > { %v1600_v40 = vsel %vm9260_vm10, %v1567_v14, %v1236_v6  ;;  %v1495_v41 = vsel %vm1474_vm7, %v1462_v34, %v931_v59 }
 0x28e   : > { %v1332_v53 = vpop.permute.xlu0 %1331  ;;  %v1528_v46 = vsel %vm1507_vm8, %v1495_v41, %v1032_v13 }
 0x28f   : > { %v1633_v36 = vsel %vm9475_vm11, %v1600_v40, %v1332_v53  ;;  %v1561_v59 = vsel %vm1540_vm9, %v1528_v46, %v7405_v8  ;;  %vm9481_vm11 = vcmask 31744   ;;  %v9482_v53 = vld [vmem:[#allocation67_spill] sm:$0xff] }
 0x290   : > { %950 = vrot.lane.b32.xlu2 %v7332_v45, %s5673_s9  ;;  %4905 = vmatmul.msk.f32.gmra.mxu3 %vm9476_vm12, %v1633_v36  ;;  %vm9483_vm12 = vmmov %vm9481_vm11 }
 0x292   : > { %848 = vrot.lane.b32.xlu1 %v7309_v29, %s5672_s8  ;;  %v7513_v60 = vpop.permute.xlu2 %1237 }
 0x293   : > { %v1800_v0 = vpop.f32.mrf.mxu0 }
 0x294   : > { %v7517_v49 = vadd.f32 %v1800_v0, %v6796_v18  ;;  %v1224_v50 = vpop.permute.xlu1 %1223  ;;  %836 = vrot.lane.b32.xlu0 %v9388_v57, %s5672_s8 }
 0x295   : > { %v1594_v29 = vsel %vm9260_vm10, %v1561_v59, %v1224_v50  ;;  %v9486_v59 = vld [vmem:[#allocation49_spill] sm:$0xff] }
 0x296   : > { %v1860_v45 = vmax.f32 %v1795_v27, %v7517_v49  ;;  %v1320_v52 = vpop.permute.xlu0 %1319 }
 0x297   : > { %v1627_v15 = vsel %vm9477_vm0, %v1594_v29, %v1320_v52  ;;  %vm9485_vm0 = vcmask 1043459  }
 0x298   : > { %v1874_v4 = vmax.f32 %v1860_v45, %v7314_v62  ;;  %938 = vrot.lane.b32.xlu2 %v9448_v20, %s5673_s9  ;;  %4899 = vmatmul.msk.f32.gmra.mxu0 %vm9478_vm4, %v1627_v15  ;;  %v9479_v62 = vld [vmem:[#allocation6_spill] sm:$0xff]  ;;  %vm9487_vm4 = vcmask 1040384  }
 0x29a   : > { %1051 = vrot.lane.b32.xlu1 %v7342_v58, %s5675_s11  ;;  %v7532_v57 = vpop.permute.xlu2 %1225  ;;  %v1918_v56 = vrot.slane %v1874_v4, 2  ;;  %v1919_v16 = vrot.slane %v1874_v4, 4  ;;  %v2017_v20 = vperm.slane %v1874_v4, 1  ;;  %v1798_v58 = vadd.f32 %v1797_v32, %v6796_v18 }
 0x29b   : > { %v1920_v6 = vrot.slane %v1874_v4, 6  ;;  %v1403_v32 = vsel %vm9483_vm12, %v9378_v19, %v9482_v53  ;;  %v4935_v0 = vrot.slane %v1874_v4, 9  ;;  %vm9489_vm12 = vcmask 293888  }
 0x29c   : > { %v843_v39 = vpop.permute.xlu1 %842  ;;  %1147 = vrot.lane.b32.xlu0 %v5763_v2, %s5674_s10  ;;  %v2018_v31 = vperm.slane %v1918_v56, 1  ;;  %v2019_v28 = vperm.slane %v1919_v16, 1  ;;  %v1436_v41 = vsel %vm1408_vm6, %v1403_v32, %v7421_v48  ;;  %v4936_v27 = vrot.slane %v1918_v56, 9 }
 0x29d   : > { %v2020_v46 = vperm.slane %v1920_v6, 1  ;;  %v4938_v29 = vrot.slane %v1920_v6, 9  ;;  %v1469_v52 = vsel %vm1441_vm5, %v1436_v41, %v843_v39 }
 0x29e   : > { %v831_v8 = vpop.permute.xlu0 %830  ;;  %v2076_v14 = vsel %vm2052_vm13, %v2018_v31, %v2017_v20 }
 0x29f   : > { %v2077_v36 = vsel %vm9485_vm0, %v2019_v28, %v2076_v14  ;;  %v2339_v28 = vmax.f32 %v1918_v56, %v4936_v27  ;;  %vm9490_vm0 = vcmask 1041409  }
 0x2a0   : > { %1243 = vrot.lane.b32.xlu2 %v9479_v62, %s5676_s12 }
 0x2a2   : > { %1039 = vrot.lane.b32.xlu1 %v6970_v7, %s5675_s11  ;;  %v7540_v12 = vpop.permute.xlu2 %844  ;;  %v9480_v7 = vld [vmem:[#allocation60_spill] sm:$0xff] }
 0x2a3   : > { %v1803_v13 = vpop.f32.mrf.mxu0  ;;  %v1397_v26 = vsel %vm9481_vm11, %v9373_v54, %v9480_v7  ;;  %v4937_v54 = vrot.slane %v1919_v16, 9  ;;  %v1502_v7 = vsel %vm1474_vm7, %v1469_v52, %v7451_v35  ;;  %vm9488_vm11 = vcmask 261120  }
 0x2a4   : > { %v7544_v11 = vadd.f32 %v1803_v13, %v6796_v18  ;;  %v1046_v3 = vpop.permute.xlu1 %1045  ;;  %1135 = vrot.lane.b32.xlu0 %v9395_v30, %s5674_s10  ;;  %v1430_v51 = vsel %vm1408_vm6, %v1397_v26, %v9484_v33  ;;  %v2341_v33 = vmax.f32 %v1920_v6, %v4938_v29 }
 0x2a5   : > { %v1463_v14 = vsel %vm1441_vm5, %v1430_v51, %v831_v8  ;;  %v2340_v32 = vmax.f32 %v1919_v16, %v4937_v54 }
 0x2a6   : > { %v1861_v23 = vmax.f32 %v1798_v58, %v7544_v11  ;;  %v1142_v40 = vpop.permute.xlu0 %1141  ;;  %v2338_v58 = vmax.f32 %v1874_v4, %v4935_v0 }
 0x2a8   : > { %v1875_v34 = vmax.f32 %v1861_v23, %v7360_v5  ;;  %1231 = vrot.lane.b32.xlu2 %v9396_v25, %s5676_s12  ;;  %v2078_v5 = vsel %vm2056_vm15, %v2020_v46, %v2077_v36  ;;  %v1535_v36 = vsel %vm1507_vm8, %v1502_v7, %v1046_v3 }
 0x2a9   : > { %v1568_v8 = vsel %vm1540_vm9, %v1535_v36, %v1142_v40 }
 0x2aa   : > { %v1921_v50 = vrot.slane %v1875_v34, 2  ;;  %v1922_v45 = vrot.slane %v1875_v34, 4  ;;  %v2021_v19 = vperm.slane %v1875_v34, 1  ;;  %1339 = vrot.lane.b32.xlu1 %v9486_v59, %s5677_s13  ;;  %v7568_v15 = vpop.permute.xlu2 %1047  ;;  %v1923_v48 = vrot.slane %v1875_v34, 6 }
 0x2ab   : > { %v4939_v25 = vrot.slane %v1875_v34, 9 }
 0x2ac   : > { %v2022_v31 = vperm.slane %v1921_v50, 1  ;;  %v2023_v62 = vperm.slane %v1922_v45, 1  ;;  %v2079_v20 = vsel %vm2058_vm3, %v2021_v19, %v2078_v5  ;;  %v1034_v13 = vpop.permute.xlu1 %1033  ;;  %753 = vrot.lane.b32.xlu0 %v7211_v55, %s9261_s7  ;;  %v4940_v23 = vrot.slane %v1921_v50, 9 }
 0x2ad   : > { %v4941_v26 = vrot.slane %v1922_v45, 9  ;;  %v4942_v53 = vrot.slane %v1923_v48, 9  ;;  %v2342_v56 = vmax.f32 %v1875_v34, %v4939_v25  ;;  %v1496_v55 = vsel %vm1474_vm7, %v1463_v14, %v7491_v24 }
 0x2ae   : > { %v2080_v39 = vsel %vm2060_vm1, %v2022_v31, %v2079_v20  ;;  %v1130_v41 = vpop.permute.xlu0 %1129  ;;  %v2343_v35 = vmax.f32 %v1921_v50, %v4940_v23 }
 0x2af   : > { %v2081_v4 = vsel %vm2062_vm14, %v2023_v62, %v2080_v39  ;;  %v2344_v3 = vmax.f32 %v1922_v45, %v4941_v26  ;;  %v2345_v0 = vmax.f32 %v1923_v48, %v4942_v53 }
 0x2b0   : > { %v2117_v51 = vsel %vm9487_vm4, -inf, %v2081_v4  ;;  %850 = vrot.lane.b32.xlu2 %v7306_v17, %s5672_s8  ;;  %v1601_v17 = vsel %vm9260_vm10, %v1568_v8, %v7513_v60  ;;  %v1529_v60 = vsel %vm1507_vm8, %v1496_v55, %v1034_v13  ;;  %vm9494_vm4 = vcmask 1046528   ;;  %s5679_s8 = smov 48  }
 0x2b1   : > { %v2395_v46 = vrot.slane %v2117_v51, 2  ;;  %v2396_v16 = vrot.slane %v2117_v51, 4  ;;  %v2397_v6 = vrot.slane %v2117_v51, 6  ;;  %v2422_v34 = vrot.slane %v2117_v51, 1 }
 0x2b2   : > { %1327 = vrot.lane.b32.xlu1 %v7002_v38, %s5677_s13  ;;  %v2530_v27 = vmax.f32 %v2338_v58, %v2117_v51  ;;  %v7587_v40 = vpop.permute.xlu2 %1035  ;;  %v1562_v26 = vsel %vm1540_vm9, %v1529_v60, %v1130_v41  ;;  %v9502_v60 = vrot.slane %v5763_v2, 2 }
 0x2b3   : > { %v2423_v54 = vrot.slane %v2395_v46, 1  ;;  %v2424_v24 = vrot.slane %v2396_v16, 1  ;;  %v2425_v19 = vrot.slane %v2397_v6, 1  ;;  %v2532_v59 = vmax.f32 %v2340_v32, %v2395_v46  ;;  %v9491_v46 = vld [vmem:[#allocation5_spill] sm:$0xff] }
 0x2b4   : > { %v1334_v29 = vpop.permute.xlu1 %1333  ;;  %v2531_v50 = vmax.f32 %v2339_v28, %v2422_v34  ;;  %v2534_v52 = vmax.f32 %v2342_v56, %v2396_v16  ;;  %v7591_v5 = vmax.f32 %v2344_v3, %v2397_v6  ;;  %952 = vrot.lane.b32.xlu0 %v7434_v22, %s5673_s9  ;;  %v2612_v62 = vmax.f32 %v2530_v27, 0.0  ;;  %v9496_v34 = vld [vmem:[#allocation7_spill] sm:$0xff] }
 0x2b5   : > { %v1634_v38 = vsel %vm9488_vm11, %v1601_v17, %v1334_v29  ;;  %v2533_v45 = vmax.f32 %v2341_v33, %v2423_v54  ;;  %v2535_v48 = vmax.f32 %v2343_v35, %v2424_v24  ;;  %v7596_v31 = vmax.f32 %v2345_v0, %v2425_v19 }
 0x2b6   : > { %4906 = vmatmul.msk.f32.gmra.mxu3 %vm9489_vm12, %v1634_v38  ;;  %v2613_v20 = vmax.f32 %v2531_v50, 0.0  ;;  %v2614_v25 = vmax.f32 %v2532_v59, 0.0  ;;  %v2616_v58 = vmax.f32 %v2534_v52, 0.0  ;;  %v748_v28 = vpop.permute.xlu0 %747  ;;  %v2740_v39 = vperm.slane %v2612_v62, 0  ;;  %v9499_v38 = vld [vmem:[#allocation14_spill] sm:$0xff] }
 0x2b7   : > { %v2615_v14 = vmax.f32 %v2533_v45, 0.0  ;;  %v2617_v23 = vmax.f32 %v2535_v48, 0.0  ;;  %v2618_v53 = vmax.f32 %v7591_v5, 0.0  ;;  %v2619_v33 = vmax.f32 %v7596_v31, 0.0 }
 0x2b8   : > { %v2741_v7 = vperm.slane %v2613_v20, 0  ;;  %v2742_v22 = vperm.slane %v2614_v25, 0  ;;  %1149 = vrot.lane.b32.xlu2 %v5758_v1, %s5674_s10  ;;  %v2744_v13 = vperm.slane %v2616_v58, 0  ;;  %v3789_v4 = vperm.slane %v2530_v27, 0  ;;  %s5680_s10 = smov 80  }
 0x2b9   : > { %v2743_v32 = vperm.slane %v2615_v14, 0  ;;  %v3790_v41 = vperm.slane %v2531_v50, 0  ;;  %v3791_v55 = vperm.slane %v2532_v59, 0  ;;  %v3792_v51 = vperm.slane %v2533_v45, 0 }
 0x2ba   : > { %1053 = vrot.lane.b32.xlu1 %v7448_v63, %s5675_s11  ;;  %v2802_v36 = vsel %vm9490_vm0, %v2741_v7, %v2740_v39  ;;  %v7608_v56 = vpop.permute.xlu2 %1335  ;;  %v1595_v35 = vsel %vm9260_vm10, %v1562_v26, %v7532_v57  ;;  %v9492_v16 = vrot.slane %v9491_v46, 1  ;;  %v9493_v63 = vrot.slane %v5763_v2, 1  ;;  %v9503_v26 = vld [vmem:[#allocation50_spill] sm:$0xff]  ;;  %s5681_s11 = smov 112  }
 0x2bb   : > { %v2803_v8 = vsel %vm2052_vm13, %v2742_v22, %v2802_v36  ;;  %v2745_v3 = vperm.slane %v2617_v23, 0  ;;  %vm9495_vm11 = vcmask 1043459   ;;  %vm9497_vm12 = vcmask 261120  }
 0x2bc   : > { %v1322_v1 = vpop.permute.xlu1 %1321  ;;  %v7618_v6 = vsel %vm9494_vm4, %v9493_v63, %v9492_v16  ;;  %v2804_v0 = vsel %vm9495_vm11, %v2743_v32, %v2803_v8  ;;  %1245 = vrot.lane.b32.xlu0 %v9496_v34, %s5676_s12  ;;  %v2746_v54 = vperm.slane %v2618_v53, 0  ;;  %v3850_v57 = vsel %vm9490_vm0, %v3790_v41, %v3789_v4  ;;  %vm9500_vm4 = vmmov %vm9495_vm11  ;;  %v9504_v32 = vld [vmem:[#allocation15_spill] sm:$0xff]  ;;  %v9509_v16 = vld [vmem:[#allocation10_spill] sm:$0xff]  ;;  %v1806_v34 = vpop.f32.mrf.mxu0  ;;  %s5682_s12 = smov 96  }
 0x2bd   : > { %v1628_v27 = vsel %vm9497_vm12, %v1595_v35, %v1322_v1  ;;  %v2805_v24 = vsel %vm2056_vm15, %v2744_v13, %v2804_v0  ;;  %vm9498_vm10 = vcmask 293888   ;;  %v2747_v19 = vperm.slane %v2619_v33, 0  ;;  %v9510_v63 = vld [vmem:[#allocation12_spill] sm:$0xff] }
 0x2be   : > { %4900 = vmatmul.msk.f32.gmra.mxu0 %vm9498_vm10, %v1628_v27  ;;  %v2806_v59 = vsel %vm2058_vm3, %v2745_v3, %v2805_v24  ;;  %v3793_v29 = vperm.slane %v2534_v52, 0  ;;  %v3851_v17 = vsel %vm2052_vm13, %v3791_v55, %v3850_v57  ;;  %v947_v50 = vpop.permute.xlu0 %946  ;;  %v5153_v45 = vpack.i.bf16 %v9499_v38, %v7618_v6  ;;  %v9507_v55 = vld [vmem:[#allocation76_spill] sm:$0xff] }
 0x2bf   : > { %v2807_v62 = vsel %vm2060_vm1, %v2746_v54, %v2806_v59  ;;  %v3794_v20 = vperm.slane %v2535_v48, 0  ;;  %v3852_v25 = vsel %vm9500_vm4, %v3792_v51, %v3851_v17  ;;  %v9501_v58 = vrot.slane %v9491_v46, 2  ;;  %v9514_v59 = vld [vmem:[#allocation25_spill] sm:$0xff] }
 0x2c0   : > { %v2808_v52 = vsel %vm2062_vm14, %v2747_v19, %v2807_v62  ;;  %v3795_v23 = vperm.slane %v7591_v5, 0  ;;  %v3853_v39 = vsel %vm2056_vm15, %v3793_v29, %v3852_v25  ;;  %5154 = vrot.lane.b32.xlu2 %v5153_v45, %s5673_s9  ;;  %v3796_v48 = vperm.slane %v7596_v31, 0  ;;  %v9513_v19 = vld [vmem:[#allocation72_spill] sm:$0xff] }
 0x2c1   : > { %v7638_v14 = vsel %vm610_vm2, %v9502_v60, %v9501_v58  ;;  %v2840_v7 = vrot.slane %v2808_v52, 7  ;;  %v3854_v22 = vsel %vm2058_vm3, %v3794_v20, %v3853_v39  ;;  %vm9505_vm10 = vcmask 1040384  }
 0x2c2   : > { %1341 = vrot.lane.b32.xlu1 %v9503_v26, %s5677_s13  ;;  %v3855_v53 = vsel %vm2060_vm1, %v3795_v23, %v3854_v22  ;;  %v5158_v33 = vpack.i.bf16 %v9504_v32, %v7638_v14  ;;  %v1324_v13 = vpop.permute.xlu2 %1323  ;;  %vm9506_vm11 = vmmov %vm9505_vm10  ;;  %vm9508_vm12 = vcmask 31744   ;;  %v5163_v3 = vpack.i.bf16 %v9510_v63, %v9509_v16 }
 0x2c3   : > { %v7652_v5 = vsel %vm9505_vm10, 0.0, %v2840_v7  ;;  %v2864_v36 = vsel %vm9506_vm11, %v2840_v7, 0.0  ;;  %v7656_v4 = vsel %vm2062_vm14, %v3796_v48, %v3855_v53  ;;  %v1404_v51 = vsel %vm9508_vm12, %v9395_v30, %v9507_v55  ;;  %vm9515_vm0 = vmmov %vm9508_vm12 }
 0x2c4   : > { %v833_v31 = vpop.permute.xlu1 %832  ;;  %v2939_v8 = vrot.slane %v7652_v5, 2  ;;  %v2940_v41 = vrot.slane %v2864_v36, 2  ;;  %5159 = vrot.lane.b32.xlu0 %v5158_v33, %s5677_s13  ;;  %v1437_v35 = vsel %vm1408_vm6, %v1404_v51, %v748_v28  ;;  %v9511_v0 = vpack.i.bf16 %v7267_v44, %v9499_v38  ;;  %v9517_v38 = vld [vmem:[#allocation90_spill] sm:$0xff]  ;;  %v1809_v62 = vpop.f32.mrf.mxu0 }
 0x2c5   : > { %v1470_v30 = vsel %vm1441_vm5, %v1437_v35, %v7540_v12  ;;  %v9512_v24 = vpack.i.bf16 %v7255_v10, %v9504_v32  ;;  %v1398_v29 = vsel %vm9515_vm0, %v9514_v59, %v9513_v19  ;;  %vm9516_vm4 = vcmask 228352  }
 0x2c6   : > { %v7664_v1 = vsel %vm610_vm2, %v2939_v8, %v2940_v41  ;;  %v935_v46 = vpop.permute.xlu0 %934  ;;  %v1503_v28 = vsel %vm1474_vm7, %v1470_v30, %v947_v50  ;;  %v5178_v50 = vpack.i.bf16 %v7454_v43, %v9510_v63  ;;  %v1431_v45 = vsel %vm1408_vm6, %v1398_v29, %v9517_v38  ;;  %vm9520_vm12 = vmmov %vm9516_vm4  ;;  %v9527_v29 = vld [vmem:[#allocation73_spill] sm:$0xff] }
 0x2c7   : > { %4977 = vmatmul.msk.f32.gmra.mxu2 %vm1474_vm7, %v7664_v1  ;;  %v1536_v44 = vsel %vm1507_vm8, %v1503_v28, %v7568_v15  ;;  %vm9518_vm10 = vcmask 261120   ;;  %v1464_v20 = vsel %vm1441_vm5, %v1431_v45, %v833_v31  ;;  %vm9519_vm11 = vcmask 293888  }
 0x2c8   : > { %5169 = vrot.lane.b32.xlu2 %v9511_v0, %s5678_s5  ;;  %v1497_v25 = vsel %vm1474_vm7, %v1464_v20, %v935_v46  ;;  %v2894_v58 = vrot.slane %v2864_v36, 1  ;;  %v2893_v52 = vrot.slane %v7652_v5, 1  ;;  %v5198_v48 = vpack.i.bf16 %v7652_v5, %v7454_v43  ;;  %v9524_v0 = vld [vmem:[#allocation77_spill] sm:$0xff] }
 0x2c9   : > { %vm9521_vm0 = vcmask 1046528   ;;  %v1807_v36 = vadd.f32 %v1806_v34, %v6796_v18  ;;  %v5208_v10 = vpack.i.bf16 %v7664_v1, %v7465_v42  ;;  %v9525_v34 = vld [vmem:[#allocation37_spill] sm:$0xff] }
 0x2ca   : > { %5164 = vrot.lane.b32.xlu1 %v5163_v3, %s5679_s8  ;;  %v7679_v27 = vpop.permute.xlu2 %834  ;;  %v7714_v26 = vsel %vm9521_vm0, %v2893_v52, %v2894_v58  ;;  %vm9531_vm0 = vcmask 1043459  }
 0x2cc   : > { %v1144_v54 = vpop.permute.xlu1 %1143  ;;  %5174 = vrot.lane.b32.xlu0 %v9512_v24, %s5680_s10  ;;  %v1810_v24 = vadd.f32 %v1809_v62, %v6796_v18 }
 0x2cd   : > { %v1569_v57 = vsel %vm1540_vm9, %v1536_v44, %v1144_v54 }
 0x2ce   : > { %v1240_v12 = vpop.permute.xlu0 %1239 }
 0x2cf   : > { %v1602_v17 = vsel %vm9516_vm4, %v1569_v57, %v1240_v12  ;;  %vm9522_vm4 = vmmov %vm9518_vm10 }
 0x2d0   : > { %5184 = vrot.lane.b32.xlu2 %v7481_v21, %s5681_s11  ;;  %v1635_v15 = vsel %vm9518_vm10, %v1602_v17, %v7608_v56  ;;  %v1530_v56 = vsel %vm1507_vm8, %v1497_v25, %v7587_v40  ;;  %vm9523_vm10 = vmmov %vm9519_vm11  ;;  %v9528_v17 = vld [vmem:[#allocation24_spill] sm:$0xff] }
 0x2d1   : > { %4907 = vmatmul.msk.f32.gmra.mxu3 %vm9519_vm11, %v1635_v15  ;;  %vm9526_vm11 = vcmask 31744   ;;  %v9530_v15 = vld [vmem:[#allocation84_spill] sm:$0xff] }
 0x2d2   : > { %5179 = vrot.lane.b32.xlu1 %v5178_v50, %s5682_s12  ;;  %v1146_v23 = vpop.permute.xlu2 %1145  ;;  %v1405_v30 = vsel %vm9526_vm11, %v9525_v34, %v9524_v0 }
 0x2d3   : > { %v1812_v32 = vpop.f32.mrf.mxu0 }
 0x2d4   : > { %v1132_v60 = vpop.permute.xlu1 %1131  ;;  %5189 = vrot.lane.b32.xlu0 %v7481_v21, %s5673_s9  ;;  %v5203_v21 = vpack.i.bf16 %v7714_v26, %v7475_v61  ;;  %v7726_v33 = vadd.f32 %v1812_v32, %v6796_v18 }
 0x2d5   : > { %v1563_v39 = vsel %vm1540_vm9, %v1530_v56, %v1132_v60 }
 0x2d6   : > { %v1228_v7 = vpop.permute.xlu0 %1227 }
 0x2d7   : > { %v1596_v22 = vsel %vm9520_vm12, %v1563_v39, %v1228_v7  ;;  %vm9529_vm12 = vmmov %vm9526_vm11  ;;  %vm9534_vm11 = vcmask 293888  }
 0x2d8   : > { %5199 = vrot.lane.b32.xlu2 %v5198_v48, %s5679_s8  ;;  %v1629_v53 = vsel %vm9522_vm4, %v1596_v22, %v1324_v13  ;;  %v1399_v50 = vsel %vm9529_vm12, %v9528_v17, %v9527_v29  ;;  %vm9532_vm4 = vcmask 228352   ;;  %vm9535_vm12 = vcmask 1040384  }
 0x2d9   : > { %4901 = vmatmul.msk.f32.gmra.mxu0 %vm9523_vm10, %v1629_v53  ;;  %v1432_v62 = vsel %vm1408_vm6, %v1399_v50, %v9530_v15  ;;  %vm9533_vm10 = vcmask 261120  }
 0x2da   : > { %5194 = vrot.lane.b32.xlu1 %v5193_v9, %s5677_s13  ;;  %v7730_v13 = vpop.permute.xlu2 %1133  ;;  %v1862_v9 = vmax.f32 %v1807_v36, %v7726_v33  ;;  %v1465_v58 = vsel %vm1441_vm5, %v1432_v62, %v7679_v27 }
 0x2dc   : > { %v750_v40 = vpop.permute.xlu1 %749  ;;  %5204 = vrot.lane.b32.xlu0 %v5203_v21, %s5678_s5  ;;  %v1876_v61 = vmax.f32 %v1862_v9, %v7517_v49 }
 0x2dd   : > { %v1438_v57 = vsel %vm1408_vm6, %v1405_v30, %v750_v40 }
 0x2de   : > { %v847_v31 = vpop.permute.xlu0 %846  ;;  %v1924_v55 = vrot.slane %v1876_v61, 2  ;;  %v1925_v35 = vrot.slane %v1876_v61, 4  ;;  %v2024_v28 = vperm.slane %v1876_v61, 1  ;;  %v1926_v12 = vrot.slane %v1876_v61, 6 }
 0x2df   : > { %v1471_v59 = vsel %vm1441_vm5, %v1438_v57, %v847_v31  ;;  %v4943_v52 = vrot.slane %v1876_v61, 9 }
 0x2e0   : > { %v2025_v3 = vperm.slane %v1924_v55, 1  ;;  %v2026_v44 = vperm.slane %v1925_v35, 1  ;;  %v2027_v7 = vperm.slane %v1926_v12, 1  ;;  %v4944_v48 = vrot.slane %v1924_v55, 9 }
 0x2e1   : > { %v4945_v22 = vrot.slane %v1925_v35, 9  ;;  %v4946_v53 = vrot.slane %v1926_v12, 9 }
 0x2e2   : > { %5209 = vrot.lane.b32.xlu1 %v5208_v10, %s5680_s10  ;;  %v7737_v51 = vpop.permute.xlu2 %751  ;;  %v2082_v19 = vsel %vm2052_vm13, %v2025_v3, %v2024_v28 }
 0x2e3   : > { %v2083_v60 = vsel %vm9531_vm0, %v2026_v44, %v2082_v19  ;;  %v2348_v44 = vmax.f32 %v1925_v35, %v4945_v22  ;;  %v2349_v57 = vmax.f32 %v1926_v12, %v4946_v53  ;;  %vm9536_vm0 = vmmov %vm9532_vm4 }
 0x2e4   : > { %v949_v8 = vpop.permute.xlu1 %948  ;;  %v2084_v27 = vsel %vm2056_vm15, %v2027_v7, %v2083_v60 }
 0x2e5   : > { %v1504_v38 = vsel %vm1474_vm7, %v1471_v59, %v949_v8 }
 0x2e6   : > { %v1050_v41 = vpop.permute.xlu0 %1049 }
 0x2e7   : > { %v1537_v20 = vsel %vm1507_vm8, %v1504_v38, %v1050_v41 }
 0x2e8   : > { %v1570_v36 = vsel %vm1540_vm9, %v1537_v20, %v1146_v23 }
 0x2ea   : > { %v7757_v25 = vpop.permute.xlu2 %950 }
 0x2ec   : > { %v937_v46 = vpop.permute.xlu1 %936 }
 0x2ed   : > { %v1498_v31 = vsel %vm1474_vm7, %v1465_v58, %v937_v46 }
 0x2ee   : > { %v1815_v42 = vpop.f32.mrf.mxu0  ;;  %v1038_v54 = vpop.permute.xlu0 %1037 }
 0x2ef   : > { %v7745_v49 = vadd.f32 %v1815_v42, %v6796_v18  ;;  %v1531_v30 = vsel %vm1507_vm8, %v1498_v31, %v1038_v54  ;;  %v2346_v42 = vmax.f32 %v1876_v61, %v4943_v52 }
 0x2f0   : > { %v1564_v54 = vsel %vm1540_vm9, %v1531_v30, %v7730_v13 }
 0x2f1   : > { %v1863_v45 = vmax.f32 %v1810_v24, %v7745_v49  ;;  %v2347_v24 = vmax.f32 %v1924_v55, %v4944_v48 }
 0x2f3   : > { %v1877_v56 = vmax.f32 %v1863_v45, %v7544_v11  ;;  %v7776_v45 = vpop.permute.xlu2 %938 }
 0x2f4   : > { %v1242_v39 = vpop.permute.xlu1 %1241 }
 0x2f5   : > { %v1927_v32 = vrot.slane %v1877_v56, 2  ;;  %v1928_v21 = vrot.slane %v1877_v56, 4  ;;  %v2028_v40 = vperm.slane %v1877_v56, 1  ;;  %v1929_v10 = vrot.slane %v1877_v56, 6 }
 0x2f6   : > { %v1603_v9 = vsel %vm9532_vm4, %v1570_v36, %v1242_v39  ;;  %v1338_v8 = vpop.permute.xlu0 %1337  ;;  %v4947_v0 = vrot.slane %v1877_v56, 9  ;;  %vm9537_vm4 = vmmov %vm9533_vm10 }
 0x2f7   : > { %v2029_v41 = vperm.slane %v1927_v32, 1  ;;  %v2030_v11 = vperm.slane %v1928_v21, 1  ;;  %v2085_v3 = vsel %vm2058_vm3, %v2028_v40, %v2084_v27  ;;  %v4948_v34 = vrot.slane %v1927_v32, 9 }
 0x2f8   : > { %v1636_v28 = vsel %vm9533_vm10, %v1603_v9, %v1338_v8  ;;  %v4949_v46 = vrot.slane %v1928_v21, 9  ;;  %v4950_v29 = vrot.slane %v1929_v10, 9  ;;  %v2350_v17 = vmax.f32 %v1877_v56, %v4947_v0  ;;  %vm9538_vm10 = vmmov %vm9534_vm11 }
 0x2f9   : > { %v2086_v23 = vsel %vm2060_vm1, %v2029_v41, %v2085_v3  ;;  %4908 = vmatmul.msk.f32.gmra.mxu3 %vm9534_vm11, %v1636_v28  ;;  %v2351_v38 = vmax.f32 %v1927_v32, %v4948_v34  ;;  %vm9539_vm11 = vcmask 1041409  }
 0x2fa   : > { %v2087_v19 = vsel %vm2062_vm14, %v2030_v11, %v2086_v23  ;;  %v2352_v20 = vmax.f32 %v1928_v21, %v4949_v46  ;;  %v2353_v7 = vmax.f32 %v1929_v10, %v4950_v29 }
 0x2fb   : > { %v2118_v59 = vsel %vm9535_vm12, -inf, %v2087_v19  ;;  %vm9540_vm12 = vcmask 1043459  }
 0x2fc   : > { %v1230_v50 = vpop.permute.xlu1 %1229  ;;  %v2399_v61 = vrot.slane %v2118_v59, 4  ;;  %v2398_v15 = vrot.slane %v2118_v59, 2  ;;  %v2400_v62 = vrot.slane %v2118_v59, 6  ;;  %v2426_v35 = vrot.slane %v2118_v59, 1 }
 0x2fd   : > { %v1597_v55 = vsel %vm9536_vm0, %v1564_v54, %v1230_v50  ;;  %v2538_v12 = vmax.f32 %v2346_v42, %v2118_v59  ;;  %v2585_v54 = vld [vmem:[%s9137_s2 + $0x78] sm:$0xff]  ;;  %vm9541_vm0 = vmmov %vm9539_vm11 }
 0x2fe   : > { %v2428_v58 = vrot.slane %v2399_v61, 1  ;;  %v2542_v60 = vmax.f32 %v2350_v17, %v2399_v61  ;;  %v1326_v52 = vpop.permute.xlu0 %1325  ;;  %v2427_v39 = vrot.slane %v2398_v15, 1  ;;  %v2429_v56 = vrot.slane %v2400_v62, 1  ;;  %3181 = vmatpush.msra.mxu1 %v2585_v54 }
 0x2ff   : > { %v1630_v48 = vsel %vm9537_vm4, %v1597_v55, %v1326_v52  ;;  %v2539_v13 = vmax.f32 %v2347_v24, %v2426_v35  ;;  %v2540_v22 = vmax.f32 %v2348_v44, %v2398_v15  ;;  %v2544_v21 = vmax.f32 %v2352_v20, %v2400_v62  ;;  %v7784_v24 = vpop.permute.xlu2 %1243  ;;  %vm9542_vm4 = vmmov %vm9540_vm12 }
 0x300   : > { %v2624_v53 = vmax.f32 %v2542_v60, 0.0  ;;  %4902 = vmatmul.msk.f32.gmra.mxu0 %vm9538_vm10, %v1630_v48  ;;  %v2541_v32 = vmax.f32 %v2349_v57, %v2427_v39  ;;  %v2543_v40 = vmax.f32 %v2351_v38, %v2428_v58  ;;  %v2545_v36 = vmax.f32 %v2353_v7, %v2429_v56  ;;  %v2584_v38 = vld [vmem:[%s9137_s2 + $0x70] sm:$0xff] }
 0x301   : > { %v2620_v31 = vmax.f32 %v2538_v12, 0.0  ;;  %v2621_v27 = vmax.f32 %v2539_v13, 0.0  ;;  %v2622_v9 = vmax.f32 %v2540_v22, 0.0  ;;  %v2626_v34 = vmax.f32 %v2544_v21, 0.0  ;;  %3182 = vmatpush.msra.mxu1 %v2584_v38 }
 0x302   : > { %v2623_v8 = vmax.f32 %v2541_v32, 0.0  ;;  %v2625_v11 = vmax.f32 %v2543_v40, 0.0  ;;  %v2752_v28 = vperm.slane %v2624_v53, 0  ;;  %v2627_v42 = vmax.f32 %v2545_v36, 0.0  ;;  %v2583_v53 = vld [vmem:[%s9137_s2 + $0x68] sm:$0xff] }
 0x303   : > { %v2748_v3 = vperm.slane %v2620_v31, 0  ;;  %v2749_v10 = vperm.slane %v2621_v27, 0  ;;  %v2750_v0 = vperm.slane %v2622_v9, 0  ;;  %v3798_v46 = vperm.slane %v2539_v13, 0  ;;  %3183 = vmatpush.msra.mxu1 %v2583_v53 }
 0x304   : > { %v7781_v41 = vpop.permute.xlu1 %848  ;;  %v2751_v30 = vperm.slane %v2623_v8, 0  ;;  %v3797_v19 = vperm.slane %v2538_v12, 0  ;;  %v3799_v59 = vperm.slane %v2540_v22, 0  ;;  %v3800_v29 = vperm.slane %v2541_v32, 0 }
 0x305   : > { %v2809_v23 = vsel %vm9539_vm11, %v2749_v10, %v2748_v3  ;;  %v2753_v17 = vperm.slane %v2625_v11, 0  ;;  %v2754_v61 = vperm.slane %v2626_v34, 0  ;;  %v2755_v20 = vperm.slane %v2627_v42, 0  ;;  %v2581_v10 = vld [vmem:[%s9137_s2 + $0x58] sm:$0xff]  ;;  %v9545_v42 = vld [vmem:[#allocation70_spill] sm:$0xff] }
 0x306   : > { %v7786_v44 = vpop.permute.xlu0 %836  ;;  %v2810_v57 = vsel %vm2052_vm13, %v2750_v0, %v2809_v23  ;;  %v3857_v62 = vsel %vm9541_vm0, %v3798_v46, %v3797_v19  ;;  %v3801_v35 = vperm.slane %v2542_v60, 0  ;;  %v3802_v52 = vperm.slane %v2543_v40, 0  ;;  %v2582_v60 = vld [vmem:[%s9137_s2 + $0x60] sm:$0xff]  ;;  %v9546_v23 = vld [vmem:[#allocation42_spill] sm:$0xff] }
 0x307   : > { %v2811_v50 = vsel %vm9540_vm12, %v2751_v30, %v2810_v57  ;;  %v3858_v12 = vsel %vm2052_vm13, %v3799_v59, %v3857_v62  ;;  %v3803_v48 = vperm.slane %v2544_v21, 0  ;;  %v3804_v32 = vperm.slane %v2545_v36, 0  ;;  %3184 = vmatpush.msra.mxu1 %v2582_v60  ;;  %v1232_v0 = vpop.permute.xlu2 %1231  ;;  %v9549_v62 = vld [vmem:[#allocation64_spill] sm:$0xff] }
 0x308   : > { %v2812_v15 = vsel %vm2056_vm15, %v2752_v28, %v2811_v50  ;;  %v3859_v39 = vsel %vm9542_vm4, %v3800_v29, %v3858_v12  ;;  %vm9543_vm10 = vcmask 1040384   ;;  %v2580_v28 = vld [vmem:[%s9137_s2 + $0x50] sm:$0xff]  ;;  %vm9547_vm12 = vcmask 31744   ;;  %v2573_v60 = vld [vmem:[%s9137_s2 + $0x18] sm:$0xff] }
 0x309   : > { %v2813_v55 = vsel %vm2058_vm3, %v2753_v17, %v2812_v15  ;;  %v3860_v13 = vsel %vm2056_vm15, %v3801_v35, %v3859_v39  ;;  %vm9544_vm11 = vmmov %vm9543_vm10  ;;  %v1406_v46 = vsel %vm9547_vm12, %v9546_v23, %v9545_v42  ;;  %3185 = vmatpush.msra.mxu1 %v2581_v10  ;;  %vm9548_vm0 = vcmask 1046528   ;;  %v9552_v35 = vld [vmem:[#allocation9_spill] sm:$0xff]  ;;  %v2577_v39 = vld [vmem:[%s9137_s2 + $0x38] sm:$0xff] }
 0x30a   : > { %v2814_v58 = vsel %vm2060_vm1, %v2754_v61, %v2813_v55  ;;  %v3861_v40 = vsel %vm2058_vm3, %v3802_v52, %v3860_v13  ;;  %v1439_v57 = vsel %vm1408_vm6, %v1406_v46, %v7737_v51  ;;  %v2579_v51 = vld [vmem:[%s9137_s2 + $0x48] sm:$0xff]  ;;  %vm9551_vm4 = vmmov %vm9547_vm12  ;;  %vm9555_vm12 = vcmask 293888  }
 0x30b   : > { %v2815_v7 = vsel %vm2062_vm14, %v2755_v20, %v2814_v58  ;;  %v3862_v31 = vsel %vm2060_vm1, %v3803_v48, %v3861_v40  ;;  %v1472_v29 = vsel %vm1441_vm5, %v1439_v57, %v7781_v41  ;;  %3186 = vmatpush.msra.mxu1 %v2580_v28  ;;  %v2578_v41 = vld [vmem:[%s9137_s2 + $0x40] sm:$0xff]  ;;  %v9550_v20 = vld [vmem:[#allocation27_spill] sm:$0xff] }
 0x30c   : > { %v1052_v56 = vpop.permute.xlu1 %1051  ;;  %v2841_v22 = vrot.slane %v2815_v7, 7  ;;  %v7817_v8 = vsel %vm2062_vm14, %v3804_v32, %v3862_v31  ;;  %v1505_v54 = vsel %vm1474_vm7, %v1472_v29, %v7757_v25  ;;  %v1400_v55 = vsel %vm9551_vm4, %v9550_v20, %v9549_v62  ;;  %v2572_v40 = vld [vmem:[%s9137_s2 + $0x10] sm:$0xff] }
 0x30d   : > { %3187 = vmatpush.msra.mxu1 %v2579_v51  ;;  %v1433_v12 = vsel %vm1408_vm6, %v1400_v55, %v9552_v35 }
 0x30e   : > { %v1148_v27 = vpop.permute.xlu0 %1147  ;;  %v7813_v21 = vsel %vm9543_vm10, 0.0, %v2841_v22  ;;  %v2865_v9 = vsel %vm9544_vm11, %v2841_v22, 0.0  ;;  %v1466_v58 = vsel %vm1441_vm5, %v1433_v12, %v7786_v44  ;;  %vm9553_vm10 = vcmask 228352   ;;  %v2574_v22 = vld [vmem:[%s9137_s2 + $0x20] sm:$0xff] }
 0x30f   : > { %v5213_v11 = vpack.i.bf16 %v7813_v21, %v7652_v5  ;;  %v2897_v3 = vrot.slane %v2865_v9, 1  ;;  %v2942_v36 = vrot.slane %v7813_v21, 2  ;;  %v2943_v34 = vrot.slane %v2865_v9, 2  ;;  %3188 = vmatpush.msra.mxu1 %v2578_v41  ;;  %v851_v25 = vpop.permute.xlu2 %850  ;;  %v2571_v9 = vld [vmem:[%s9137_s2 + $0x8] sm:$0xff] }
 0x310   : > { %v2896_v30 = vrot.slane %v7813_v21, 1  ;;  %vm9554_vm11 = vcmask 261120   ;;  %v1499_v44 = vsel %vm1474_vm7, %v1466_v58, %v7776_v45 }
 0x311   : > { %5214 = vrot.lane.b32.xlu2 %v5213_v11, %s5682_s12  ;;  %v7836_v19 = vsel %vm610_vm2, %v2942_v36, %v2943_v34  ;;  %3189 = vmatpush.msra.mxu1 %v2577_v39  ;;  %vm9557_vm4 = vmmov %vm9554_vm11  ;;  %v9559_v36 = vld [vmem:[#allocation78_spill] sm:$0xff] }
 0x312   : > { %v7839_v59 = vsel %vm9548_vm0, %v2896_v30, %v2897_v3  ;;  %4978 = vmatmul.msk.f32.gmra.mxu2 %vm1474_vm7, %v7836_v19  ;;  %v5228_v61 = vpack.i.bf16 %v7836_v19, %v7664_v1  ;;  %vm9556_vm0 = vmmov %vm9553_vm10  ;;  %v2570_v3 = vld [vmem:[%s9137_s2] sm:$0xff] }
 0x313   : > { %v5223_v50 = vpack.i.bf16 %v7839_v59, %v7714_v26  ;;  %v1538_v26 = vsel %vm1507_vm8, %v1505_v54, %v1052_v56  ;;  %v2576_v56 = vld [vmem:[%s9137_s2 + $0x30] sm:$0xff] }
 0x314   : > { %v1040_v17 = vpop.permute.xlu1 %1039  ;;  %v1571_v15 = vsel %vm1540_vm9, %v1538_v26, %v1148_v27  ;;  %3190 = vmatpush.msra.mxu1 %v2576_v56 }
 0x315   : > { %5224 = vrot.lane.b32.xlu1 %v5223_v50, %s5673_s9  ;;  %5219 = vrot.lane.b32.xlu0 %v5223_v50, %s5681_s11  ;;  %v1604_v1 = vsel %vm9553_vm10, %v1571_v15, %v7784_v24  ;;  %v2575_v24 = vld [vmem:[%s9137_s2 + $0x28] sm:$0xff]  ;;  %v1532_v13 = vsel %vm1507_vm8, %v1499_v44, %v1040_v17  ;;  %vm9558_vm10 = vmmov %vm9555_vm12 }
 0x316   : > { %v1136_v38 = vpop.permute.xlu0 %1135  ;;  %3191 = vmatpush.msra.mxu1 %v2575_v24 }
 0x317   : > { %v1565_v53 = vsel %vm1540_vm9, %v1532_v13, %v1136_v38  ;;  %v1150_v31 = vpop.permute.xlu2 %1149 }
 0x318   : > { %3192 = vmatpush.msra.mxu1 %v2574_v22  ;;  %v1598_v32 = vsel %vm9556_vm0, %v1565_v53, %v1232_v0 }
 0x319   : > { %5229 = vrot.lane.b32.xlu2 %v5228_v61, %s5677_s13 }
 0x31a   : > { %3193 = vmatpush.msra.mxu1 %v2573_v60 }
 0x31c   : > { %v1340_v52 = vpop.permute.xlu1 %1339  ;;  %3194 = vmatpush.msra.mxu1 %v2572_v40 }
 0x31d   : > { %v1637_v7 = vsel %vm9554_vm11, %v1604_v1, %v1340_v52  ;;  %vm9560_vm11 = vcmask 31744  }
 0x31e   : > { %4909 = vmatmul.msk.f32.gmra.mxu3 %vm9555_vm12, %v1637_v7  ;;  %v754_v48 = vpop.permute.xlu0 %753  ;;  %3195 = vmatpush.msra.mxu1 %v2571_v9  ;;  %v1407_v10 = vsel %vm9560_vm11, %v9400_v47, %v9559_v36  ;;  %vm9561_vm12 = vmmov %vm9556_vm0  ;;  %vm3155_vm11 = vcmask 916480  }
 0x31f   : > { %v1440_v0 = vsel %vm1408_vm6, %v1407_v10, %v754_v48  ;;  %v5155_v28 = vpop.permute.xlu2 %5154  ;;  %vm9562_vm0 = vmmov %vm9557_vm4 }
 0x320   : > { %3196 = vmatpush.msra.mxu1 %v2570_v3  ;;  %v1473_v30 = vsel %vm1441_vm5, %v1440_v0, %v851_v25  ;;  %v5156_v41 = vunpack.i.l.bf16 %v5155_v28  ;;  %vm3119_vm5 = vcmask 392192   ;;  %vm9564_vm6 = vmmov %vm9562_vm0  ;;  %v5157_v20 = vunpack.i.h.bf16 %v5155_v28 }
 0x322   : > { %v3103_v15 = vsel %vm1474_vm7, %v5763_v2, %v5156_v41  ;;  %v3104_v7 = vsel %vm1474_vm7, %v9509_v16, %v5157_v20 }
 0x324   : > { %v1328_v45 = vpop.permute.xlu1 %1327 }
 0x325   : > { %v1631_v27 = vsel %vm9557_vm4, %v1598_v32, %v1328_v45  ;;  %vm9563_vm4 = vmmov %vm9558_vm10 }
 0x326   : > { %4903 = vmatmul.msk.f32.gmra.mxu0 %vm9558_vm10, %v1631_v27  ;;  %v953_v11 = vpop.permute.xlu0 %952  ;;  %vm3146_vm10 = vcmask 785408  }
 0x327   : > { %v1506_v42 = vsel %vm1474_vm7, %v1473_v30, %v953_v11  ;;  %v5170_v51 = vpop.permute.xlu2 %5169  ;;  %v1818_v11 = vpop.f32.mrf.mxu0 }
 0x328   : > { %v5171_v12 = vunpack.i.l.bf16 %v5170_v51  ;;  %v5172_v45 = vunpack.i.h.bf16 %v5170_v51  ;;  %v1819_v0 = vadd.f32 %v1818_v11, %v6796_v18 }
 0x32c   : > { %v1054_v34 = vpop.permute.xlu1 %1053 }
 0x32d   : > { %v1539_v46 = vsel %vm1507_vm8, %v1506_v42, %v1054_v34  ;;  %vm3128_vm8 = vcmask 523264  }
 0x32e   : > { %v1246_v23 = vpop.permute.xlu0 %1245  ;;  %v1572_v57 = vsel %vm1540_vm9, %v1539_v46, %v1150_v31  ;;  %vm3137_vm9 = vcmask 654336   ;;  %v7940_v46 = vpop.f32.mrf.mxu3 }
 0x32f   : > { %v1605_v29 = vsel %vm9561_vm12, %v1572_v57, %v1246_v23  ;;  %v5185_v25 = vpop.permute.xlu2 %5184  ;;  %vm9565_vm12 = vmmov %vm9562_vm0 }
 0x330   : > { %v5186_v44 = vunpack.i.l.bf16 %v5185_v25  ;;  %v5187_v27 = vunpack.i.h.bf16 %v5185_v25 }
 0x334   : > { %v1342_v17 = vpop.permute.xlu1 %1341 }
 0x335   : > { %v1638_v50 = vsel %vm9562_vm0, %v1605_v29, %v1342_v17 }
 0x336   : > { %4910 = vmatmul.msk.f32.gmra.mxu3 %vm9563_vm4, %v1638_v50  ;;  %v5160_v47 = vpop.permute.xlu0 %5159  ;;  %vm9566_vm4 = vmmov %vm9562_vm0 }
 0x337   : > { %v5161_v38 = vunpack.i.l.bf16 %v5160_v47  ;;  %v5162_v58 = vunpack.i.h.bf16 %v5160_v47  ;;  %v5200_v51 = vpop.permute.xlu2 %5199 }
 0x339   : > { %v7918_v62 = vsel %vm9564_vm6, %v3103_v15, %v5161_v38  ;;  %v3112_v24 = vsel %vm9565_vm12, %v3104_v7, %v5162_v58  ;;  %vm9567_vm6 = vcmask 1043459   ;;  %vm9568_vm12 = vcmask 1040384  }
 0x33b   : > { %v1821_v3 = vpop.f32.mrf.mxu0 }
 0x33c   : > { %v5165_v54 = vpop.permute.xlu1 %5164  ;;  %v1822_v38 = vadd.f32 %v1821_v3, %v6796_v18 }
 0x33d   : > { %v5166_v26 = vunpack.i.l.bf16 %v5165_v54  ;;  %v5167_v52 = vunpack.i.h.bf16 %v5165_v54 }
 0x33e   : > { %v5175_v61 = vpop.permute.xlu0 %5174 }
 0x33f   : > { %v3120_v55 = vsel %vm3119_vm5, %v7918_v62, %v5166_v26  ;;  %v5176_v35 = vunpack.i.l.bf16 %v5175_v61  ;;  %v3121_v22 = vsel %vm3119_vm5, %v3112_v24, %v5167_v52  ;;  %v5177_v53 = vunpack.i.h.bf16 %v5175_v61  ;;  %v7952_v52 = vpop.f32.mrf.mxu3 }
 0x340   : > { %v3129_v56 = vsel %vm3128_vm8, %v3120_v55, %v5171_v12  ;;  %v3130_v40 = vsel %vm3128_vm8, %v3121_v22, %v5172_v45 }
 0x341   : > { %v3138_v48 = vsel %vm3137_vm9, %v3129_v56, %v5176_v35  ;;  %v3139_v31 = vsel %vm3137_vm9, %v3130_v40, %v5177_v53 }
 0x344   : > { %v5180_v1 = vpop.permute.xlu1 %5179 }
 0x345   : > { %v5181_v39 = vunpack.i.l.bf16 %v5180_v1  ;;  %v5182_v32 = vunpack.i.h.bf16 %v5180_v1  ;;  %v5201_v1 = vunpack.i.l.bf16 %v5200_v51 }
 0x346   : > { %v5190_v30 = vpop.permute.xlu0 %5189 }
 0x347   : > { %v3147_v13 = vsel %vm3146_vm10, %v3138_v48, %v5181_v39  ;;  %v3148_v16 = vsel %vm3146_vm10, %v3139_v31, %v5182_v32  ;;  %v5192_v57 = vunpack.i.h.bf16 %v5190_v30  ;;  %v5191_v29 = vunpack.i.l.bf16 %v5190_v30 }
 0x348   : > { %v3156_v60 = vsel %vm3155_vm11, %v3147_v13, %v5186_v44  ;;  %v3157_v9 = vsel %vm3155_vm11, %v3148_v16, %v5187_v27 }
 0x349   : > { %3197 = vmatmul.f32.vlgmr.msra.gmra.mxu1 %v3156_v60  ;;  %v3106_v15 = vsel %vm1474_vm7, %v7454_v43, %v5192_v57 }
 0x34c   : > { %v5195_v42 = vpop.permute.xlu1 %5194 }
 0x34d   : > { %v5196_v50 = vunpack.i.l.bf16 %v5195_v42  ;;  %v5197_v41 = vunpack.i.h.bf16 %v5195_v42 }
 0x34e   : > { %v5205_v54 = vpop.permute.xlu0 %5204 }
 0x34f   : > { %v5206_v12 = vunpack.i.l.bf16 %v5205_v54  ;;  %v3114_v39 = vsel %vm9566_vm4, %v3106_v15, %v5197_v41  ;;  %v5207_v7 = vunpack.i.h.bf16 %v5205_v54  ;;  %vm9570_vm4 = vmmov %vm9567_vm6 }
 0x351   : > { %3200 = vmatmul.f32.gmra.mxu1 %v3157_v9 }
 0x354   : > { %v7955_v56 = vpop.permute.xlu1 %5209 }
 0x355   : > { %v5211_v53 = vunpack.i.l.bf16 %v7955_v56  ;;  %v5212_v42 = vunpack.i.h.bf16 %v7955_v56 }
 0x356   : > { %v1824_v36 = vpop.f32.mrf.mxu0 }
 0x357   : > { %v7935_v10 = vadd.f32 %v1824_v36, %v6796_v18 }
 0x359   : > { %v1864_v34 = vmax.f32 %v1819_v0, %v7935_v10 }
 0x35b   : > { %v1878_v28 = vmax.f32 %v1864_v34, %v7726_v33  ;;  %v3105_v33 = vsel %vm1474_vm7, %v9510_v63, %v5191_v29  ;;  %v5202_v63 = vunpack.i.h.bf16 %v5200_v51 }
 0x35c   : > { %v3113_v35 = vsel %vm9562_vm0, %v3105_v33, %v5196_v50  ;;  %v7968_v50 = vpop.f32.mrf.mxu3  ;;  %vm9569_vm0 = vcmask 1041409  }
 0x35d   : > { %v1930_v23 = vrot.slane %v1878_v28, 2  ;;  %v1931_v17 = vrot.slane %v1878_v28, 4  ;;  %v2031_v26 = vperm.slane %v1878_v28, 1  ;;  %v1932_v25 = vrot.slane %v1878_v28, 6 }
 0x35e   : > { %v3122_v44 = vsel %vm3119_vm5, %v3113_v35, %v5201_v1  ;;  %v3123_v13 = vsel %vm3119_vm5, %v3114_v39, %v5202_v63  ;;  %v4951_v45 = vrot.slane %v1878_v28, 9 }
 0x35f   : > { %v2032_v47 = vperm.slane %v1930_v23, 1  ;;  %v2033_v20 = vperm.slane %v1931_v17, 1  ;;  %v3131_v22 = vsel %vm3128_vm8, %v3122_v44, %v5206_v12  ;;  %v2034_v60 = vperm.slane %v1932_v25, 1 }
 0x360   : > { %v4952_v27 = vrot.slane %v1930_v23, 9  ;;  %v4953_v9 = vrot.slane %v1931_v17, 9  ;;  %v4954_v36 = vrot.slane %v1932_v25, 9  ;;  %v3132_v30 = vsel %vm3128_vm8, %v3123_v13, %v5207_v7 }
 0x361   : > { %v2088_v58 = vsel %vm2052_vm13, %v2032_v47, %v2031_v26  ;;  %v2354_v47 = vmax.f32 %v1878_v28, %v4951_v45 }
 0x362   : > { %v2089_v48 = vsel %vm9567_vm6, %v2033_v20, %v2088_v58  ;;  %v2355_v26 = vmax.f32 %v1930_v23, %v4952_v27  ;;  %v2356_v20 = vmax.f32 %v1931_v17, %v4953_v9  ;;  %v2357_v35 = vmax.f32 %v1932_v25, %v4954_v36  ;;  %vm9571_vm6 = vmmov %vm9569_vm0 }
 0x363   : > { %v2090_v3 = vsel %vm2056_vm15, %v2034_v60, %v2089_v48 }
 0x364   : > { %v7976_v27 = vpop.f32.mrf.mxu3 }
 0x36b   : > { %v5215_v32 = vpop.permute.xlu2 %5214 }
 0x36c   : > { %v5216_v57 = vunpack.i.l.bf16 %v5215_v32  ;;  %v5217_v12 = vunpack.i.h.bf16 %v5215_v32 }
 0x37d   : > { %v1827_v61 = vpop.f32.mrf.mxu0 }
 0x37e   : > { %v7948_v55 = vadd.f32 %v1827_v61, %v6796_v18 }
 0x380   : > { %v1865_v43 = vmax.f32 %v1822_v38, %v7948_v55  ;;  %v3140_v38 = vsel %vm3137_vm9, %v3131_v22, %v5211_v53 }
 0x381   : > { %v3149_v28 = vsel %vm3146_vm10, %v3140_v38, %v5216_v57 }
 0x382   : > { %v1879_v24 = vmax.f32 %v1865_v43, %v7745_v49 }
 0x384   : > { %v1933_v40 = vrot.slane %v1879_v24, 2  ;;  %v1934_v31 = vrot.slane %v1879_v24, 4  ;;  %v2035_v16 = vperm.slane %v1879_v24, 1  ;;  %v1935_v11 = vrot.slane %v1879_v24, 6 }
 0x385   : > { %v4955_v29 = vrot.slane %v1879_v24, 9 }
 0x386   : > { %v2036_v0 = vperm.slane %v1933_v40, 1  ;;  %v2037_v49 = vperm.slane %v1934_v31, 1  ;;  %v2091_v34 = vsel %vm2058_vm3, %v2035_v16, %v2090_v3  ;;  %v4956_v41 = vrot.slane %v1933_v40, 9 }
 0x387   : > { %v5220_v54 = vpop.permute.xlu0 %5219  ;;  %v4957_v15 = vrot.slane %v1934_v31, 9  ;;  %v4958_v33 = vrot.slane %v1935_v11, 9  ;;  %v2358_v1 = vmax.f32 %v1879_v24, %v4955_v29 }
 0x388   : > { %v2092_v51 = vsel %vm2060_vm1, %v2036_v0, %v2091_v34  ;;  %v5221_v56 = vunpack.i.l.bf16 %v5220_v54  ;;  %v2359_v43 = vmax.f32 %v1933_v40, %v4956_v41  ;;  %v5222_v45 = vunpack.i.h.bf16 %v5220_v54 }
 0x389   : > { %v2093_v61 = vsel %vm2062_vm14, %v2037_v49, %v2092_v51  ;;  %v2360_v48 = vmax.f32 %v1934_v31, %v4957_v15  ;;  %v2361_v23 = vmax.f32 %v1935_v11, %v4958_v33  ;;  %v3141_v31 = vsel %vm3137_vm9, %v3132_v30, %v5212_v42 }
 0x38a   : > { %v2119_v58 = vsel %vm9568_vm12, -inf, %v2093_v61  ;;  %v3158_v22 = vsel %vm3155_vm11, %v3149_v28, %v5221_v56  ;;  %v3150_v34 = vsel %vm3146_vm10, %v3141_v31, %v5217_v12  ;;  %v1845_v56 = vpop.f32.mrf.mxu3  ;;  %vm9572_vm12 = vmmov %vm9570_vm4 }
 0x38b   : > { %v2402_v39 = vrot.slane %v2119_v58, 4  ;;  %v2401_v63 = vrot.slane %v2119_v58, 2  ;;  %v2403_v7 = vrot.slane %v2119_v58, 6  ;;  %v2430_v44 = vrot.slane %v2119_v58, 1  ;;  %3203 = vmatmul.f32.gmra.mxu1 %v3158_v22 }
 0x38c   : > { %v2546_v60 = vmax.f32 %v2354_v47, %v2119_v58  ;;  %v3159_v54 = vsel %vm3155_vm11, %v3150_v34, %v5222_v45 }
 0x38d   : > { %v2432_v13 = vrot.slane %v2402_v39, 1  ;;  %v2550_v53 = vmax.f32 %v2358_v1, %v2402_v39  ;;  %v2431_v17 = vrot.slane %v2401_v63, 1  ;;  %v2433_v25 = vrot.slane %v2403_v7, 1 }
 0x38e   : > { %v2547_v24 = vmax.f32 %v2355_v26, %v2430_v44  ;;  %v2548_v32 = vmax.f32 %v2356_v20, %v2401_v63  ;;  %v2552_v9 = vmax.f32 %v2360_v48, %v2403_v7  ;;  %v2628_v36 = vmax.f32 %v2546_v60, 0.0 }
 0x38f   : > { %v2551_v16 = vmax.f32 %v2359_v43, %v2432_v13  ;;  %v2549_v40 = vmax.f32 %v2357_v35, %v2431_v17  ;;  %v2553_v3 = vmax.f32 %v2361_v23, %v2433_v25  ;;  %v2632_v49 = vmax.f32 %v2550_v53, 0.0 }
 0x390   : > { %v2629_v11 = vmax.f32 %v2547_v24, 0.0  ;;  %v2630_v0 = vmax.f32 %v2548_v32, 0.0  ;;  %v2756_v47 = vperm.slane %v2628_v36, 0  ;;  %v2634_v38 = vmax.f32 %v2552_v9, 0.0 }
 0x391   : > { %v2631_v57 = vmax.f32 %v2549_v40, 0.0  ;;  %v2633_v29 = vmax.f32 %v2551_v16, 0.0  ;;  %v2635_v26 = vmax.f32 %v2553_v3, 0.0  ;;  %v3805_v33 = vperm.slane %v2546_v60, 0 }
 0x392   : > { %v2757_v51 = vperm.slane %v2629_v11, 0  ;;  %v2758_v41 = vperm.slane %v2630_v0, 0  ;;  %v3806_v20 = vperm.slane %v2547_v24, 0  ;;  %v3807_v30 = vperm.slane %v2548_v32, 0 }
 0x393   : > { %v2759_v61 = vperm.slane %v2631_v57, 0  ;;  %v2760_v42 = vperm.slane %v2632_v49, 0  ;;  %3206 = vmatmul.f32.gmra.mxu1 %v3159_v54  ;;  %v3808_v12 = vperm.slane %v2549_v40, 0  ;;  %v2761_v58 = vperm.slane %v2633_v29, 0 }
 0x394   : > { %v2816_v15 = vsel %vm9569_vm0, %v2757_v51, %v2756_v47  ;;  %v3864_v39 = vsel %vm9571_vm6, %v3806_v20, %v3805_v33  ;;  %v2762_v28 = vperm.slane %v2634_v38, 0  ;;  %v3809_v63 = vperm.slane %v2550_v53, 0 }
 0x395   : > { %v2817_v35 = vsel %vm2052_vm13, %v2758_v41, %v2816_v15  ;;  %v3865_v7 = vsel %vm2052_vm13, %v3807_v30, %v3864_v39  ;;  %v2763_v44 = vperm.slane %v2635_v26, 0  ;;  %v3810_v23 = vperm.slane %v2551_v16, 0 }
 0x396   : > { %v2818_v1 = vsel %vm9570_vm4, %v2759_v61, %v2817_v35  ;;  %v3866_v13 = vsel %vm9572_vm12, %v3808_v12, %v3865_v7  ;;  %v3811_v17 = vperm.slane %v2552_v9, 0  ;;  %v3812_v45 = vperm.slane %v2553_v3, 0 }
 0x397   : > { %v2819_v43 = vsel %vm2056_vm15, %v2760_v42, %v2818_v1  ;;  %v3867_v25 = vsel %vm2056_vm15, %v3809_v63, %v3866_v13  ;;  %vm9573_vm0 = vcmask 1040384   ;;  %v8006_v0 = vadd.f32 %v7968_v50, %v6796_v18 }
 0x398   : > { %v2820_v48 = vsel %vm2058_vm3, %v2761_v58, %v2819_v43  ;;  %v3868_v24 = vsel %vm2058_vm3, %v3810_v23, %v3867_v25  ;;  %vm9574_vm4 = vmmov %vm9573_vm0  ;;  %v1834_v29 = vadd.f32 %v7940_v46, %v6796_v18  ;;  %vm9575_vm6 = vcmask 1046528  }
 0x399   : > { %v2821_v22 = vsel %vm2060_vm1, %v2762_v28, %v2820_v48  ;;  %v3869_v53 = vsel %vm2060_vm1, %v3811_v17, %v3868_v24  ;;  %v1837_v41 = vadd.f32 %v7952_v52, %v6796_v18 }
 0x39a   : > { %v2822_v60 = vsel %vm2062_vm14, %v2763_v44, %v2821_v22  ;;  %v7995_v40 = vsel %vm2062_vm14, %v3812_v45, %v3869_v53  ;;  %v1867_v26 = vmax.f32 %v1834_v29, %v8006_v0 }
 0x39b   : > { %v2842_v32 = vrot.slane %v2822_v60, 7 }
 0x39c   : > { %v1881_v15 = vmax.f32 %v1867_v26, %v7948_v55 }
 0x39d   : > { %v7998_v16 = vsel %vm9573_vm0, 0.0, %v2842_v32  ;;  %v2866_v36 = vsel %vm9574_vm4, %v2842_v32, 0.0  ;;  %vm9576_vm4 = vmmov %vm9572_vm12 }
 0x39e   : > { %v5233_v9 = vpack.i.bf16 %v7998_v16, %v7813_v21  ;;  %v2900_v31 = vrot.slane %v2866_v36, 1  ;;  %v2945_v11 = vrot.slane %v7998_v16, 2  ;;  %v2946_v3 = vrot.slane %v2866_v36, 2 }
 0x39f   : > { %v2899_v34 = vrot.slane %v7998_v16, 1  ;;  %v1939_v20 = vrot.slane %v1881_v15, 2  ;;  %v1940_v42 = vrot.slane %v1881_v15, 4  ;;  %v1941_v58 = vrot.slane %v1881_v15, 6 }
 0x3a0   : > { %5234 = vrot.lane.b32.xlu0 %v5233_v9, %s5679_s8  ;;  %v8011_v57 = vsel %vm610_vm2, %v2945_v11, %v2946_v3  ;;  %v4963_v43 = vrot.slane %v1881_v15, 9  ;;  %v2042_v48 = vperm.slane %v1881_v15, 1 }
 0x3a1   : > { %v1848_v49 = vpop.f32.mrf.mxu3  ;;  %v5243_v47 = vpack.i.bf16 %v8011_v57, %v7836_v19  ;;  %4979 = vmatmul.msk.f32.gmra.mxu2 %vm1474_vm7, %v8011_v57  ;;  %v8020_v50 = vsel %vm9575_vm6, %v2899_v34, %v2900_v31  ;;  %v1843_v19 = vadd.f32 %v7976_v27, %v6796_v18  ;;  %v8038_v27 = vadd.f32 %v1845_v56, %v6796_v18 }
 0x3a2   : > { %v1849_v54 = vadd.f32 %v1848_v49, %v6796_v18  ;;  %v5238_v46 = vpack.i.bf16 %v8020_v50, %v7839_v59  ;;  %v4964_v63 = vrot.slane %v1939_v20, 9  ;;  %v4965_v55 = vrot.slane %v1940_v42, 9 }
 0x3a3   : > { %v1830_v51 = vpop.f32.mrf.mxu0  ;;  %5244 = vrot.lane.b32.xlu2 %v5243_v47, %s5680_s10  ;;  %v4966_v23 = vrot.slane %v1941_v58, 9  ;;  %v2043_v17 = vperm.slane %v1939_v20, 1  ;;  %v2044_v45 = vperm.slane %v1940_v42, 1  ;;  %v2366_v24 = vmax.f32 %v1881_v15, %v4963_v43 }
 0x3a4   : > { %v1831_v38 = vadd.f32 %v1830_v51, %v6796_v18  ;;  %5239 = vrot.lane.b32.xlu1 %v5238_v46, %s5678_s5  ;;  %v1868_v52 = vmax.f32 %v1843_v19, %v1849_v54  ;;  %v2367_v32 = vmax.f32 %v1939_v20, %v4964_v63  ;;  %v2368_v36 = vmax.f32 %v1940_v42, %v4965_v55 }
 0x3a5   : > { %v2369_v3 = vmax.f32 %v1941_v58, %v4966_v23  ;;  %vm9577_vm6 = vcmask 1041409  }
 0x3a6   : > { %v1866_v61 = vmax.f32 %v1831_v38, %v1837_v41  ;;  %v8035_v35 = vmax.f32 %v1868_v52, %v1837_v41 }
 0x3a8   : > { %v1880_v33 = vmax.f32 %v1866_v61, %v7935_v10  ;;  %v8041_v7 = vrot.slane %v8035_v35, 2  ;;  %v8048_v9 = vrot.slane %v8035_v35, 4  ;;  %v2045_v47 = vperm.slane %v8035_v35, 1 }
 0x3a9   : > { %v8058_v61 = vrot.slane %v8035_v35, 6 }
 0x3aa   : > { %v1936_v30 = vrot.slane %v1880_v33, 2  ;;  %v1937_v59 = vrot.slane %v1880_v33, 4  ;;  %v1938_v12 = vrot.slane %v1880_v33, 6  ;;  %v2038_v1 = vperm.slane %v1880_v33, 1 }
 0x3ab   : > { %v4959_v22 = vrot.slane %v1880_v33, 9  ;;  %v2046_v31 = vperm.slane %v8041_v7, 1  ;;  %v2047_v15 = vperm.slane %v8048_v9, 1 }
 0x3ac   : > { %v2039_v39 = vperm.slane %v1936_v30, 1  ;;  %v2040_v28 = vperm.slane %v1937_v59, 1  ;;  %v2041_v10 = vperm.slane %v1938_v12, 1  ;;  %v4960_v60 = vrot.slane %v1936_v30, 9 }
 0x3ad   : > { %v4961_v56 = vrot.slane %v1937_v59, 9  ;;  %v4962_v34 = vrot.slane %v1938_v12, 9  ;;  %v2362_v29 = vmax.f32 %v1880_v33, %v4959_v22  ;;  %v2100_v52 = vsel %vm2052_vm13, %v2046_v31, %v2045_v47 }
 0x3ae   : > { %v2094_v44 = vsel %vm2052_vm13, %v2039_v39, %v2038_v1  ;;  %v2363_v41 = vmax.f32 %v1936_v30, %v4960_v60  ;;  %v2101_v60 = vsel %vm9576_vm4, %v2047_v15, %v2100_v52 }
 0x3af   : > { %v2095_v13 = vsel %vm9572_vm12, %v2040_v28, %v2094_v44  ;;  %v2364_v54 = vmax.f32 %v1937_v59, %v4961_v56  ;;  %v2365_v33 = vmax.f32 %v1938_v12, %v4962_v34  ;;  %v2048_v12 = vperm.slane %v8058_v61, 1  ;;  %vm9578_vm12 = vmmov %vm9576_vm4 }
 0x3b0   : > { %v2096_v25 = vsel %vm2056_vm15, %v2041_v10, %v2095_v13  ;;  %v4968_v56 = vrot.slane %v8041_v7, 9  ;;  %v4969_v34 = vrot.slane %v8048_v9, 9  ;;  %vm9579_vm4 = vmmov %vm9573_vm0 }
 0x3b1   : > { %v2097_v53 = vsel %vm2058_vm3, %v2042_v48, %v2096_v25  ;;  %v4967_v48 = vrot.slane %v8035_v35, 9 }
 0x3b2   : > { %v2098_v11 = vsel %vm2060_vm1, %v2043_v17, %v2097_v53 }
 0x3b3   : > { %v2099_v49 = vsel %vm2062_vm14, %v2044_v45, %v2098_v11 }
 0x3b4   : > { %v2120_v51 = vsel %vm9573_vm0, -inf, %v2099_v49 }
 0x3b5   : > { %v2404_v38 = vrot.slane %v2120_v51, 2  ;;  %v2434_v46 = vrot.slane %v2120_v51, 1  ;;  %v8055_v26 = vmax.f32 %v2362_v29, %v2120_v51  ;;  %v2405_v19 = vrot.slane %v2120_v51, 4 }
 0x3b6   : > { %v2406_v20 = vrot.slane %v2120_v51, 6  ;;  %v2102_v29 = vsel %vm2056_vm15, %v2048_v12, %v2101_v60  ;;  %v2372_v60 = vmax.f32 %v8048_v9, %v4969_v34 }
 0x3b7   : > { %v2435_v42 = vrot.slane %v2404_v38, 1  ;;  %v8062_v58 = vmax.f32 %v2363_v41, %v2434_v46  ;;  %v8064_v1 = vmax.f32 %v2364_v54, %v2404_v38  ;;  %v2636_v59 = vmax.f32 %v8055_v26, 0.0 }
 0x3b8   : > { %v2436_v28 = vrot.slane %v2405_v19, 1  ;;  %v2437_v43 = vrot.slane %v2406_v20, 1  ;;  %v8072_v44 = vmax.f32 %v2366_v24, %v2405_v19  ;;  %v2370_v46 = vmax.f32 %v8035_v35, %v4967_v48 }
 0x3b9   : > { %v1851_v30 = vpop.f32.mrf.mxu3  ;;  %v8068_v63 = vmax.f32 %v2365_v33, %v2435_v42  ;;  %v2637_v55 = vmax.f32 %v8062_v58, 0.0  ;;  %v2638_v10 = vmax.f32 %v8064_v1, 0.0  ;;  %v2764_v45 = vperm.slane %v2636_v59, 0 }
 0x3ba   : > { %v1852_v39 = vadd.f32 %v1851_v30, %v6796_v18  ;;  %v8077_v13 = vmax.f32 %v2367_v32, %v2436_v28  ;;  %v8079_v18 = vmax.f32 %v2368_v36, %v2406_v20  ;;  %v8081_v17 = vmax.f32 %v2369_v3, %v2437_v43 }
 0x3bb   : > { %v2765_v22 = vperm.slane %v2637_v55, 0  ;;  %v2639_v25 = vmax.f32 %v8068_v63, 0.0  ;;  %v2766_v53 = vperm.slane %v2638_v10, 0  ;;  %v2640_v31 = vmax.f32 %v8072_v44, 0.0 }
 0x3bc   : > { %v1869_v23 = vmax.f32 %v8038_v27, %v1852_v39  ;;  %v2641_v27 = vmax.f32 %v8077_v13, 0.0  ;;  %v2642_v47 = vmax.f32 %v8079_v18, 0.0  ;;  %v2643_v51 = vmax.f32 %v8081_v17, 0.0 }
 0x3bd   : > { %v2767_v32 = vperm.slane %v2639_v25, 0  ;;  %v2823_v3 = vsel %vm9577_vm6, %v2765_v22, %v2764_v45  ;;  %v2768_v15 = vperm.slane %v2640_v31, 0  ;;  %v2371_v48 = vmax.f32 %v8041_v7, %v4968_v56  ;;  %vm9580_vm6 = vmmov %vm9573_vm0 }
 0x3be   : > { %v1883_v24 = vmax.f32 %v1869_v23, %v8006_v0  ;;  %v4970_v0 = vrot.slane %v8058_v61, 9  ;;  %v2824_v52 = vsel %vm2052_vm13, %v2766_v53, %v2823_v3  ;;  %v2769_v42 = vperm.slane %v2641_v27, 0 }
 0x3bf   : > { %v2825_v30 = vsel %vm9578_vm12, %v2767_v32, %v2824_v52  ;;  %v2770_v39 = vperm.slane %v2642_v47, 0  ;;  %v2771_v28 = vperm.slane %v2643_v51, 0  ;;  %v5000_v52 = vld [vmem:[%s9137_s2 + $0x118] sm:$0xff]  ;;  %vm9581_vm12 = vcmask 1046528  }
 0x3c0   : > { %v1945_v11 = vrot.slane %v1883_v24, 2  ;;  %v1946_v36 = vrot.slane %v1883_v24, 4  ;;  %v2049_v49 = vperm.slane %v1883_v24, 1  ;;  %v1947_v19 = vrot.slane %v1883_v24, 6  ;;  %3674 = vmatpush.msrb.mxu2 %v5000_v52 }
 0x3c1   : > { %v4971_v33 = vrot.slane %v1883_v24, 9  ;;  %v2826_v43 = vsel %vm2056_vm15, %v2768_v15, %v2825_v30  ;;  %v2373_v45 = vmax.f32 %v8058_v61, %v4970_v0 }
 0x3c2   : > { %v2050_v41 = vperm.slane %v1945_v11, 1  ;;  %v2051_v54 = vperm.slane %v1946_v36, 1  ;;  %v2103_v38 = vsel %vm2058_vm3, %v2049_v49, %v2102_v29  ;;  %v4972_v10 = vrot.slane %v1945_v11, 9 }
 0x3c3   : > { %v2827_v35 = vsel %vm2058_vm3, %v2769_v42, %v2826_v43  ;;  %v4973_v12 = vrot.slane %v1946_v36, 9  ;;  %v4974_v27 = vrot.slane %v1947_v19, 9  ;;  %v2374_v32 = vmax.f32 %v1883_v24, %v4971_v33 }
 0x3c4   : > { %v2104_v20 = vsel %vm2060_vm1, %v2050_v41, %v2103_v38  ;;  %v2828_v22 = vsel %vm2060_vm1, %v2770_v39, %v2827_v35  ;;  %v2375_v29 = vmax.f32 %v1945_v11, %v4972_v10 }
 0x3c5   : > { %v2105_v59 = vsel %vm2062_vm14, %v2051_v54, %v2104_v20  ;;  %v2829_v53 = vsel %vm2062_vm14, %v2771_v28, %v2828_v22  ;;  %v2376_v47 = vmax.f32 %v1946_v36, %v4973_v12  ;;  %v2377_v38 = vmax.f32 %v1947_v19, %v4974_v27  ;;  %v4999_v19 = vld [vmem:[%s9137_s2 + $0x110] sm:$0xff]  ;;  %v8153_v12 = vld [vmem:[%s9138_s3] sm:$0x1f] }
 0x3c6   : > { %v2121_v55 = vsel %vm9573_vm0, -inf, %v2105_v59  ;;  %v2843_v49 = vrot.slane %v2829_v53, 7  ;;  %v3198_v61 = vpop.f32.mrf.mxu1  ;;  %3675 = vmatpush.msrb.mxu2 %v4999_v19  ;;  %v3239_v53 = vpop.f32.mrf.mxu2  ;;  %vm9582_vm0 = vcmask 1041409  }
 0x3c7   : > { %v2408_v23 = vrot.slane %v2121_v55, 4  ;;  %v2407_v25 = vrot.slane %v2121_v55, 2  ;;  %v2438_v31 = vrot.slane %v2121_v55, 1  ;;  %v2409_v3 = vrot.slane %v2121_v55, 6 }
 0x3c8   : > { %v8109_v41 = vmax.f32 %v2370_v46, %v2121_v55  ;;  %v8112_v7 = vsel %vm9579_vm4, 0.0, %v2843_v49  ;;  %v2867_v56 = vsel %vm9580_vm6, %v2843_v49, 0.0  ;;  %vm9583_vm4 = vcmask 1043459   ;;  %vm9584_vm6 = vmmov %vm9582_vm0 }
 0x3c9   : > { %v2439_v51 = vrot.slane %v2407_v25, 1  ;;  %v2440_v9 = vrot.slane %v2408_v23, 1  ;;  %v8115_v34 = vmax.f32 %v2371_v48, %v2438_v31  ;;  %v5248_v0 = vpack.i.bf16 %v8112_v7, %v7998_v16 }
 0x3ca   : > { %v2903_v24 = vrot.slane %v2867_v56, 1  ;;  %v2948_v54 = vrot.slane %v8112_v7, 2  ;;  %v2949_v11 = vrot.slane %v2867_v56, 2  ;;  %v2902_v36 = vrot.slane %v8112_v7, 1 }
 0x3cb   : > { %v2441_v46 = vrot.slane %v2409_v3, 1  ;;  %v8121_v15 = vmax.f32 %v2372_v60, %v2407_v25  ;;  %v8126_v20 = vmax.f32 %v2374_v32, %v2408_v23  ;;  %5249 = vrot.lane.b32.xlu0 %v5248_v0, %s5682_s12  ;;  %v8130_v42 = vmax.f32 %v2373_v45, %v2439_v51 }
 0x3cc   : > { %v2950_v33 = vsel %vm610_vm2, %v2948_v54, %v2949_v11  ;;  %v8137_v30 = vsel %vm9581_vm12, %v2902_v36, %v2903_v24  ;;  %v8139_v59 = vmax.f32 %v2375_v29, %v2440_v9  ;;  %v2644_v39 = vmax.f32 %v8109_v41, 0.0  ;;  %vm9585_vm12 = vmmov %vm9583_vm4 }
 0x3cd   : > { %4980 = vmatmul.msk.f32.gmra.mxu2 %vm1474_vm7, %v2950_v33  ;;  %v2645_v28 = vmax.f32 %v8115_v34, 0.0  ;;  %v8143_v43 = vmax.f32 %v2376_v47, %v2409_v3  ;;  %v5258_v55 = vpack.i.bf16 %v8137_v30, %v8020_v50  ;;  %v8147_v10 = vmax.f32 %v2377_v38, %v2441_v46 }
 0x3ce   : > { %v2646_v35 = vmax.f32 %v8121_v15, 0.0  ;;  %v8156_v48 = vperm.slane %v8153_v12, 1  ;;  %v2647_v23 = vmax.f32 %v8130_v42, 0.0  ;;  %v2648_v22 = vmax.f32 %v8126_v20, 0.0  ;;  %v3201_v51 = vpop.f32.mrf.mxu1 }
 0x3cf   : > { %5259 = vrot.lane.b32.xlu2 %v5258_v55, %s5673_s9  ;;  %5254 = vrot.lane.b32.xlu1 %v5258_v55, %s5681_s11  ;;  %v2649_v50 = vmax.f32 %v8139_v59, 0.0  ;;  %v2772_v25 = vperm.slane %v2644_v39, 0  ;;  %v2773_v60 = vperm.slane %v2645_v28, 0  ;;  %v3814_v45 = vperm.slane %v8062_v58, 0  ;;  %v3242_v55 = vpop.f32.mrf.mxu2 }
 0x3d0   : > { %v5263_v31 = vpack.i.bf16 %v2950_v33, %v8011_v57  ;;  %v2650_v27 = vmax.f32 %v8143_v43, 0.0  ;;  %v2774_v32 = vperm.slane %v2646_v35, 0  ;;  %v2775_v49 = vperm.slane %v2647_v23, 0 }
 0x3d1   : > { %v2651_v3 = vmax.f32 %v8147_v10, 0.0  ;;  %v2830_v29 = vsel %vm9582_vm0, %v2773_v60, %v2772_v25  ;;  %v3815_v47 = vperm.slane %v8064_v1, 0  ;;  %v2776_v56 = vperm.slane %v2648_v22, 0 }
 0x3d2   : > { %v2831_v9 = vsel %vm2052_vm13, %v2774_v32, %v2830_v29  ;;  %v3813_v58 = vperm.slane %v8055_v26, 0  ;;  %v2777_v0 = vperm.slane %v2649_v50, 0  ;;  %v3816_v24 = vperm.slane %v8068_v63, 0 }
 0x3d3   : > { %5264 = vrot.lane.b32.xlu0 %v5263_v31, %s5677_s13  ;;  %v2832_v57 = vsel %vm9583_vm4, %v2775_v49, %v2831_v9  ;;  %v3199_v54 = vadd.f32 %v3198_v61, %v8156_v48  ;;  %v2778_v11 = vperm.slane %v2650_v27, 0  ;;  %v3202_v38 = vadd.f32 %v3201_v51, %v8156_v48 }
 0x3d4   : > { %v2833_v36 = vsel %vm2056_vm15, %v2776_v56, %v2832_v57  ;;  %v3871_v1 = vsel %vm9584_vm6, %v3814_v45, %v3813_v58  ;;  %v2779_v46 = vperm.slane %v2651_v3, 0  ;;  %v3817_v39 = vperm.slane %v8072_v44, 0 }
 0x3d5   : > { %v2834_v52 = vsel %vm2058_vm3, %v2777_v0, %v2833_v36  ;;  %v3872_v19 = vsel %vm2052_vm13, %v3815_v47, %v3871_v1  ;;  %v3818_v61 = vperm.slane %v8077_v13, 0  ;;  %v3240_v35 = vadd.f32 %v3239_v53, %v3199_v54 }
 0x3d6   : > { %v2835_v26 = vsel %vm2060_vm1, %v2778_v11, %v2834_v52  ;;  %v3873_v28 = vsel %vm9585_vm12, %v3816_v24, %v3872_v19  ;;  %v3243_v50 = vadd.f32 %v3242_v55, %v3202_v38  ;;  %v3819_v25 = vperm.slane %v8079_v18, 0 }
 0x3d7   : > { %v2836_v63 = vsel %vm2062_vm14, %v2779_v46, %v2835_v26  ;;  %v3874_v22 = vsel %vm2056_vm15, %v3817_v39, %v3873_v28  ;;  %v3820_v60 = vperm.slane %v8081_v17, 0  ;;  %vm9586_vm0 = vcmask 1040384  }
 0x3d8   : > { %v2844_v23 = vrot.slane %v2836_v63, 7  ;;  %v3875_v45 = vsel %vm2058_vm3, %v3818_v61, %v3874_v22  ;;  %vm9587_vm4 = vmmov %vm9586_vm0  ;;  %v3821_v31 = vperm.slane %v8109_v41, 0  ;;  %v3822_v53 = vperm.slane %v8115_v34, 0 }
 0x3d9   : > { %v3876_v17 = vsel %vm2060_vm1, %v3819_v25, %v3875_v45  ;;  %v3823_v29 = vperm.slane %v8121_v15, 0  ;;  %v3283_v47 = vmax.f32 %v3243_v50, 0.0  ;;  %vm9588_vm6 = vcmask 1046528  }
 0x3da   : > { %v2860_v44 = vsel %vm9586_vm0, 0.0, %v2844_v23  ;;  %v2868_v13 = vsel %vm9587_vm4, %v2844_v23, 0.0  ;;  %v8201_v41 = vsel %vm2062_vm14, %v3820_v60, %v3876_v17  ;;  %vm9589_vm12 = vcmask 1041409  }
 0x3db   : > { %3043 = vrot.lane.b32.xlu0 %v2950_v33, %s5680_s10  ;;  %v5268_v27 = vpack.i.bf16 %v2860_v44, %v8112_v7  ;;  %v3002_v32 = vrot.slane %v2868_v13, 1  ;;  %v3028_v49 = vrot.slane %v2860_v44, 2  ;;  %v3029_v3 = vrot.slane %v2868_v13, 2  ;;  %v3245_v13 = vpop.f32.mrf.mxu2 }
 0x3dc   : > { %v3001_v18 = vrot.slane %v2860_v44, 1  ;;  %v3824_v33 = vperm.slane %v8130_v42, 0  ;;  %v3878_v56 = vsel %vm9589_vm12, %v3822_v53, %v3821_v31  ;;  %v3282_v9 = vmax.f32 %v3240_v35, 0.0 }
 0x3dd   : > { %5269 = vrot.lane.b32.xlu1 %v5268_v27, %s5679_s8  ;;  %v3030_v51 = vsel %vm610_vm2, %v3028_v49, %v3029_v3  ;;  %v3825_v15 = vperm.slane %v8126_v20, 0  ;;  %v3879_v42 = vsel %vm2052_vm13, %v3823_v29, %v3878_v56  ;;  %v3826_v0 = vperm.slane %v8139_v59, 0  ;;  %vm9591_vm13 = vmmov %vm9587_vm4 }
 0x3de   : > { %4981 = vmatmul.msk.f32.gmra.mxu2 %vm1474_vm7, %v3030_v51  ;;  %v3003_v34 = vsel %vm9588_vm6, %v3001_v18, %v3002_v32  ;;  %vm9590_vm0 = vcmask 1043459   ;;  %v3299_v24 = vrot.slane %v3283_v47, 7  ;;  %v3827_v54 = vperm.slane %v8143_v43, 0 }
 0x3df   : > { %v5273_v58 = vpack.i.bf16 %v3003_v34, %v8137_v30  ;;  %v3880_v57 = vsel %vm9590_vm0, %v3824_v33, %v3879_v42  ;;  %v3828_v36 = vperm.slane %v8147_v10, 0  ;;  %v3298_v20 = vrot.slane %v3282_v9, 7 }
 0x3e0   : > { %v3881_v11 = vsel %vm2056_vm15, %v3825_v15, %v3880_v57  ;;  %v8222_v38 = vsel %vm9591_vm13, 0.0, %v3299_v24  ;;  %v3323_v43 = vsel %vm9587_vm4, %v3299_v24, 0.0  ;;  %vm9592_vm15 = vmmov %vm9587_vm4 }
 0x3e1   : > { %5274 = vrot.lane.b32.xlu2 %v5273_v58, %s5678_s5  ;;  %v3882_v30 = vsel %vm2058_vm3, %v3826_v0, %v3881_v11  ;;  %v8229_v10 = vsel %vm9592_vm15, 0.0, %v3298_v20  ;;  %v3390_v52 = vrot.slane %v3323_v43, 2  ;;  %v3389_v19 = vrot.slane %v8222_v38, 2  ;;  %vm9595_vm3 = vmmov %vm9588_vm6 }
 0x3e2   : > { %v3883_v1 = vsel %vm2060_vm1, %v3827_v54, %v3882_v30  ;;  %v5278_v46 = vpack.i.bf16 %v8222_v38, %v8229_v10  ;;  %vm9593_vm1 = vmmov %vm9587_vm4  ;;  %v3347_v39 = vrot.slane %v8222_v38, 1  ;;  %v3348_v63 = vrot.slane %v3323_v43, 1 }
 0x3e3   : > { %3045 = vrot.lane.b32.xlu0 %v3030_v51, %s5680_s10  ;;  %v8219_v59 = vsel %vm2062_vm14, %v3828_v36, %v3883_v1  ;;  %v3322_v26 = vsel %vm9593_vm1, %v3298_v20, 0.0  ;;  %v3391_v61 = vsel %vm610_vm2, %v3389_v19, %v3390_v52  ;;  %v3344_v28 = vrot.slane %v8229_v10, 1  ;;  %vm9594_vm14 = vmmov %vm9588_vm6  ;;  %v3248_v18 = vpop.f32.mrf.mxu2  ;;  %v5225_v52 = vpop.permute.xlu1 %5224 }
 0x3e4   : > { %v3345_v55 = vrot.slane %v3322_v26, 1  ;;  %v3349_v35 = vsel %vm9594_vm14, %v3347_v39, %v3348_v63  ;;  %v3386_v23 = vrot.slane %v8229_v10, 2  ;;  %v3387_v22 = vrot.slane %v3322_v26, 2  ;;  %vm9596_vm6 = vmmov %vm9593_vm1  ;;  %v5230_v19 = vpop.permute.xlu2 %5229 }
 0x3e5   : > { %3067 = vrot.lane.b32.xlu1 %v2860_v44, %s5682_s12  ;;  %vm9597_vm12 = vmmov %vm9593_vm1  ;;  %v5226_v39 = vunpack.i.l.bf16 %v5225_v52 }
 0x3e6   : > { %4982 = vmatmul.msk.f32.gmra.mxu2 %vm1474_vm7, %v7638_v14  ;;  %v3346_v50 = vsel %vm9595_vm3, %v3344_v28, %v3345_v55  ;;  %vm9598_vm0 = vmmov %vm9595_vm3  ;;  %v5231_v55 = vunpack.i.l.bf16 %v5230_v19 }
 0x3e7   : > { %v5283_v25 = vpack.i.bf16 %v3349_v35, %v3346_v50  ;;  %vm9599_vm13 = vmmov %vm9593_vm1 }
 0x3e8   : > { %vm9600_vm4 = vmmov %vm9593_vm1  ;;  %vm9602_vm1 = vcmask 261120  }
 0x3e9   : > { %3091 = vrot.lane.b32.xlu2 %v3003_v34, %s5681_s11  ;;  %vm9601_vm15 = vmmov %vm9598_vm0 }
 0x3ea   : > { %vm9603_vm14 = vmmov %vm9602_vm1 }
 0x3eb   : > { %5279 = vrot.lane.b32.xlu0 %v5278_v46, %s5679_s8  ;;  %vm9604_vm3 = vmmov %vm9602_vm1 }
 0x3ed   : > { %3069 = vrot.lane.b32.xlu1 %v5763_v2, %s5682_s12  ;;  %v3388_v2 = vsel %vm610_vm2, %v3386_v23, %v3387_v22 }
 0x3ee   : > { %5001 = vmatmul.msk.f32.vlgmr.msrb.gmra.mxu2 %vm1474_vm7, %v3391_v61  ;;  %v5288_v60 = vpack.i.bf16 %v3391_v61, %v3388_v2  ;;  %v3107_v61 = vsel %vm1474_vm7, %v7652_v5, %v5226_v39 }
 0x3ef   : > { %v3115_v50 = vsel %vm9602_vm1, %v3107_v61, %v5231_v55 }
 0x3f1   : > { %3093 = vrot.lane.b32.xlu2 %v7618_v6, %s5681_s11 }
 0x3f5   : > { %5284 = vrot.lane.b32.xlu1 %v5283_v25, %s5678_s5 }
 0x3f9   : > { %5289 = vrot.lane.b32.xlu2 %v5288_v60, %s5680_s10 }
 0x3fd   : > { %v5245_v23 = vpop.permute.xlu2 %5244 }
 0x401   : > { %5304 = vrot.lane.b32.xlu2 %v5283_v25, %s5673_s9  ;;  %v5227_v25 = vunpack.i.h.bf16 %v5225_v52  ;;  %v4996_v52 = vld [vmem:[%s9137_s2 + $0xf8] sm:$0xff] }
 0x408   : > { %v3204_v45 = vpop.f32.mrf.mxu1 }
 0x409   : > { %v3205_v44 = vadd.f32 %v3204_v45, %v8156_v48 }
 0x40b   : > { %v3246_v6 = vadd.f32 %v3245_v13, %v3205_v44  ;;  %v5246_v44 = vunpack.i.l.bf16 %v5245_v23 }
 0x40d   : > { %v3284_v31 = vmax.f32 %v3246_v6, 0.0  ;;  %v3108_v6 = vsel %vm1474_vm7, %v7813_v21, %v5227_v25  ;;  %v5247_v21 = vunpack.i.h.bf16 %v5245_v23  ;;  %v4993_v25 = vld [vmem:[%s9137_s2 + $0xe0] sm:$0xff] }
 0x40f   : > { %v3300_v53 = vrot.slane %v3284_v31, 7 }
 0x410   : > { %v3207_v27 = vpop.f32.mrf.mxu1 }
 0x411   : > { %v8254_v32 = vsel %vm9596_vm6, 0.0, %v3300_v53  ;;  %v3324_v49 = vsel %vm9597_vm12, %v3300_v53, 0.0  ;;  %v3208_v3 = vadd.f32 %v3207_v27, %v8156_v48  ;;  %v5232_v27 = vunpack.i.h.bf16 %v5230_v19  ;;  %vm9605_vm6 = vmmov %vm9602_vm1 }
 0x412   : > { %v3350_v17 = vrot.slane %v8254_v32, 1  ;;  %v3351_v29 = vrot.slane %v3324_v49, 1  ;;  %v5293_v33 = vpack.i.bf16 %v8254_v32, %v8222_v38  ;;  %v3392_v51 = vrot.slane %v8254_v32, 2  ;;  %v5235_v26 = vpop.permute.xlu0 %5234  ;;  %vm9606_vm12 = vmmov %vm9602_vm1 }
 0x413   : > { %v3249_v47 = vadd.f32 %v3248_v18, %v3208_v3  ;;  %v3393_v34 = vrot.slane %v3324_v49, 2  ;;  %v5236_v28 = vunpack.i.l.bf16 %v5235_v26  ;;  %v5237_v31 = vunpack.i.h.bf16 %v5235_v26 }
 0x414   : > { %5294 = vrot.lane.b32.xlu0 %v5293_v33, %s5682_s12  ;;  %v3352_v56 = vsel %vm9598_vm0, %v3350_v17, %v3351_v29  ;;  %v3116_v29 = vsel %vm9603_vm14, %v3108_v6, %v5232_v27  ;;  %vm9607_vm0 = vmmov %vm9602_vm1 }
 0x415   : > { %v3285_v9 = vmax.f32 %v3249_v47, 0.0  ;;  %v3394_v58 = vsel %vm610_vm2, %v3392_v51, %v3393_v34  ;;  %v5298_v15 = vpack.i.bf16 %v3352_v56, %v3349_v35  ;;  %v3124_v2 = vsel %vm3119_vm5, %v3115_v50, %v5236_v28  ;;  %v4994_v28 = vld [vmem:[%s9137_s2 + $0xe8] sm:$0xff]  ;;  %vm9609_vm1 = vmmov %vm9600_vm4 }
 0x416   : > { %5002 = vmatmul.msk.f32.gmra.mxu2 %vm1474_vm7, %v3394_v58  ;;  %v5240_v63 = vpop.permute.xlu1 %5239  ;;  %v3125_v33 = vsel %vm3119_vm5, %v3116_v29, %v5237_v31  ;;  %v4991_v31 = vld [vmem:[%s9137_s2 + $0xd0] sm:$0xff]  ;;  %vm9610_vm14 = vmmov %vm9609_vm1 }
 0x417   : > { %v3301_v42 = vrot.slane %v3285_v9, 7  ;;  %5299 = vrot.lane.b32.xlu1 %v5298_v15, %s5681_s11  ;;  %v5241_v35 = vunpack.i.l.bf16 %v5240_v63  ;;  %v5242_v49 = vunpack.i.h.bf16 %v5240_v63 }
 0x419   : > { %v8268_v0 = vsel %vm9599_vm13, 0.0, %v3301_v42  ;;  %v3325_v57 = vsel %vm9600_vm4, %v3301_v42, 0.0  ;;  %v3134_v47 = vsel %vm3128_vm8, %v3125_v33, %v5242_v49  ;;  %vm9608_vm13 = vmmov %vm9600_vm4 }
 0x41a   : > { %v3353_v24 = vrot.slane %v8268_v0, 1  ;;  %v3354_v54 = vrot.slane %v3325_v57, 1  ;;  %v3395_v11 = vrot.slane %v8268_v0, 2  ;;  %v3396_v36 = vrot.slane %v3325_v57, 2 }
 0x41b   : > { %v5313_v46 = vpack.i.bf16 %v8268_v0, %v8254_v32  ;;  %v3143_v9 = vsel %vm3137_vm9, %v3134_v47, %v5247_v21  ;;  %v4988_v47 = vld [vmem:[%s9137_s2 + $0xb8] sm:$0xff]  ;;  %v4986_v21 = vld [vmem:[%s9137_s2 + $0xa8] sm:$0xff] }
 0x41c   : > { %5309 = vrot.lane.b32.xlu0 %v5288_v60, %s5677_s13  ;;  %v3397_v30 = vsel %vm610_vm2, %v3395_v11, %v3396_v36  ;;  %v8276_v20 = vsel %vm9601_vm15, %v3353_v24, %v3354_v54  ;;  %v3133_v60 = vsel %vm3128_vm8, %v3124_v2, %v5241_v35 }
 0x41d   : > { %v8278_v1 = vpack.i.bf16 %v3397_v30, %v3394_v58  ;;  %v5318_v43 = vpack.i.bf16 %v8276_v20, %v3352_v56  ;;  %v3142_v53 = vsel %vm3137_vm9, %v3133_v60, %v5246_v44  ;;  %v4998_v58 = vld [vmem:[%s9137_s2 + $0x108] sm:$0xff] }
 0x41e   : > { %5003 = vmatmul.msk.f32.gmra.mxu2 %vm1474_vm7, %v3397_v30  ;;  %3619 = vmatpush.msrb.mxu3 %v4998_v58 }
 0x41f   : > { %5319 = vrot.lane.b32.xlu2 %v5318_v43, %s5678_s5  ;;  %5314 = vrot.lane.b32.xlu1 %v5313_v46, %s5679_s8  ;;  %v4997_v46 = vld [vmem:[%s9137_s2 + $0x100] sm:$0xff] }
 0x420   : > { %3620 = vmatpush.msrb.mxu3 %v4997_v46 }
 0x422   : > { %3621 = vmatpush.msrb.mxu3 %v4996_v52 }
 0x424   : > { %5324 = vrot.lane.b32.xlu0 %v8278_v1, %s5680_s10 }
 0x429   : > { %v5260_v18 = vpop.permute.xlu2 %5259 }
 0x42a   : > { %v5261_v42 = vunpack.i.l.bf16 %v5260_v18  ;;  %v5262_v61 = vunpack.i.h.bf16 %v5260_v18  ;;  %v4989_v18 = vld [vmem:[%s9137_s2 + $0xc0] sm:$0xff] }
 0x42c   : > { %5339 = vrot.lane.b32.xlu0 %v5318_v43, %s5673_s9  ;;  %v3109_v36 = vsel %vm1474_vm7, %v7998_v16, %v5261_v42  ;;  %v4995_v16 = vld [vmem:[%s9137_s2 + $0xf0] sm:$0xff]  ;;  %v3110_v60 = vsel %vm1474_vm7, %v8112_v7, %v5262_v61  ;;  %v4990_v7 = vld [vmem:[%s9137_s2 + $0xc8] sm:$0xff] }
 0x42d   : > { %3622 = vmatpush.msrb.mxu3 %v4995_v16 }
 0x42f   : > { %3623 = vmatpush.msrb.mxu3 %v4994_v28 }
 0x431   : > { %3624 = vmatpush.msrb.mxu3 %v4993_v25 }
 0x43b   : > { %v5275_v57 = vpop.permute.xlu2 %5274 }
 0x43c   : > { %v5276_v19 = vunpack.i.l.bf16 %v5275_v57 }
 0x43d   : > { %v5250_v22 = vpop.permute.xlu0 %5249 }
 0x43e   : > { %v5251_v45 = vunpack.i.l.bf16 %v5250_v22  ;;  %v5252_v51 = vunpack.i.h.bf16 %v5250_v22 }
 0x440   : > { %v3151_v3 = vsel %vm3146_vm10, %v3142_v53, %v5251_v45  ;;  %v3152_v15 = vsel %vm3146_vm10, %v3143_v9, %v5252_v51  ;;  %v4987_v51 = vld [vmem:[%s9137_s2 + $0xb0] sm:$0xff] }
 0x441   : > { %v5255_v13 = vpop.permute.xlu1 %5254  ;;  %v4983_v9 = vld [vmem:[%s9137_s2 + $0x90] sm:$0xff] }
 0x442   : > { %v5256_v5 = vunpack.i.l.bf16 %v5255_v13  ;;  %v5257_v34 = vunpack.i.h.bf16 %v5255_v13  ;;  %v4992_v13 = vld [vmem:[%s9137_s2 + $0xd8] sm:$0xff] }
 0x443   : > { %v3092_v55 = vpop.permute.xlu2 %3091  ;;  %3625 = vmatpush.msrb.mxu3 %v4992_v13 }
 0x444   : > { %v3160_v17 = vsel %vm3155_vm11, %v3151_v3, %v5256_v5  ;;  %v3161_v24 = vsel %vm3155_vm11, %v3152_v15, %v5257_v34  ;;  %v5277_v5 = vunpack.i.h.bf16 %v5275_v57  ;;  %v4985_v34 = vld [vmem:[%s9137_s2 + $0xa0] sm:$0xff] }
 0x445   : > { %3209 = vmatmul.f32.gmra.mxu1 %v3160_v17  ;;  %v5265_v56 = vpop.permute.xlu0 %5264  ;;  %3626 = vmatpush.msrb.mxu3 %v4991_v31 }
 0x446   : > { %v5266_v54 = vunpack.i.l.bf16 %v5265_v56  ;;  %v5267_v35 = vunpack.i.h.bf16 %v5265_v56  ;;  %v4984_v56 = vld [vmem:[%s9137_s2 + $0x98] sm:$0xff] }
 0x447   : > { %3627 = vmatpush.msrb.mxu3 %v4990_v7 }
 0x448   : > { %v3117_v43 = vsel %vm9604_vm3, %v3109_v36, %v5266_v54  ;;  %v3118_v44 = vsel %vm9605_vm6, %v3110_v60, %v5267_v35  ;;  %vm9611_vm3 = vmmov %vm9601_vm15 }
 0x449   : > { %3628 = vmatpush.msrb.mxu3 %v4989_v18  ;;  %vm9612_vm6 = vmmov %vm9609_vm1 }
 0x44b   : > { %v8351_v17 = vpop.permute.xlu2 %3093  ;;  %3629 = vmatpush.msrb.mxu3 %v4988_v47 }
 0x44d   : > { %3212 = vmatmul.f32.gmra.mxu1 %v3161_v24  ;;  %v3044_v26 = vpop.permute.xlu0 %3043  ;;  %3630 = vmatpush.msrb.mxu3 %v4987_v51 }
 0x44f   : > { %v5270_v11 = vpop.permute.xlu1 %5269  ;;  %3631 = vmatpush.msrb.mxu3 %v4986_v21 }
 0x450   : > { %v5271_v30 = vunpack.i.l.bf16 %v5270_v11  ;;  %v5272_v23 = vunpack.i.h.bf16 %v5270_v11 }
 0x451   : > { %3632 = vmatpush.msrb.mxu3 %v4985_v34 }
 0x452   : > { %v3126_v39 = vsel %vm3119_vm5, %v3117_v43, %v5271_v30  ;;  %v3127_v6 = vsel %vm3119_vm5, %v3118_v44, %v5272_v23 }
 0x453   : > { %v3135_v63 = vsel %vm3128_vm8, %v3126_v39, %v5276_v19  ;;  %v3136_v27 = vsel %vm3128_vm8, %v3127_v6, %v5277_v5  ;;  %3633 = vmatpush.msrb.mxu3 %v4984_v56  ;;  %v5290_v15 = vpop.permute.xlu2 %5289 }
 0x454   : > { %v3144_v50 = vsel %vm3137_vm9, %v3135_v63, %v3044_v26  ;;  %v5291_v43 = vunpack.i.l.bf16 %v5290_v15 }
 0x455   : > { %v3046_v53 = vpop.permute.xlu0 %3045  ;;  %3634 = vmatpush.msrb.mxu3 %v4983_v9 }
 0x456   : > { %v3145_v49 = vsel %vm3137_vm9, %v3136_v27, %v3046_v53  ;;  %v3251_v27 = vpop.f32.mrf.mxu2 }
 0x457   : > { %v3068_v22 = vpop.permute.xlu1 %3067 }
 0x458   : > { %v3153_v2 = vsel %vm3146_vm10, %v3144_v50, %v3068_v22 }
 0x459   : > { %v3162_v45 = vsel %vm3155_vm11, %v3153_v2, %v3092_v55 }
 0x45a   : > { %3215 = vmatmul.f32.gmra.mxu1 %v3162_v45  ;;  %v5292_v45 = vunpack.i.h.bf16 %v5290_v15 }
 0x45b   : > { %v5305_v46 = vpop.permute.xlu2 %5304 }
 0x45c   : > { %v5307_v39 = vunpack.i.h.bf16 %v5305_v46  ;;  %v5306_v16 = vunpack.i.l.bf16 %v5305_v46 }
 0x45d   : > { %v5280_v58 = vpop.permute.xlu0 %5279 }
 0x45e   : > { %v5281_v57 = vunpack.i.l.bf16 %v5280_v58  ;;  %v3551_v23 = vsel %vm1474_vm7, %v8222_v38, %v5307_v39  ;;  %v3550_v22 = vsel %vm1474_vm7, %v8229_v10, %v5306_v16  ;;  %v5282_v50 = vunpack.i.h.bf16 %v5280_v58  ;;  %v3254_v34 = vpop.f32.mrf.mxu2 }
 0x45f   : > { %v8346_v3 = vpop.permute.xlu1 %3069 }
 0x460   : > { %v3154_v29 = vsel %vm3146_vm10, %v3145_v49, %v8346_v3  ;;  %v3564_v11 = vsel %vm3119_vm5, %v7918_v62, %v5281_v57 }
 0x461   : > { %v3163_v33 = vsel %vm3155_vm11, %v3154_v29, %v8351_v17 }
 0x462   : > { %3218 = vmatmul.f32.gmra.mxu1 %v3163_v33 }
 0x467   : > { %v5285_v42 = vpop.permute.xlu1 %5284 }
 0x468   : > { %v5286_v24 = vunpack.i.l.bf16 %v5285_v42  ;;  %v5287_v25 = vunpack.i.h.bf16 %v5285_v42 }
 0x46a   : > { %v3572_v36 = vsel %vm3128_vm8, %v3564_v11, %v5286_v24 }
 0x46b   : > { %v3580_v26 = vsel %vm3137_vm9, %v3572_v36, %v5291_v43 }
 0x486   : > { %v5295_v54 = vpop.permute.xlu0 %5294 }
 0x487   : > { %v5296_v30 = vunpack.i.l.bf16 %v5295_v54  ;;  %v5297_v13 = vunpack.i.h.bf16 %v5295_v54 }
 0x489   : > { %v5300_v52 = vpop.permute.xlu1 %5299  ;;  %v3588_v63 = vsel %vm3146_vm10, %v3580_v26, %v5296_v30 }
 0x48a   : > { %v5301_v19 = vunpack.i.l.bf16 %v5300_v52  ;;  %v5302_v31 = vunpack.i.h.bf16 %v5300_v52 }
 0x48c   : > { %v3596_v61 = vsel %vm3155_vm11, %v3588_v63, %v5301_v19  ;;  %v3257_v63 = vpop.f32.mrf.mxu2 }
 0x48d   : > { %3635 = vmatmul.f32.vlgmr.msrb.gmra.mxu3 %v3596_v61 }
 0x48e   : > { %v5310_v28 = vpop.permute.xlu0 %5309 }
 0x48f   : > { %v5312_v55 = vunpack.i.h.bf16 %v5310_v28  ;;  %v5311_v35 = vunpack.i.l.bf16 %v5310_v28 }
 0x491   : > { %v3557_v2 = vsel %vm9606_vm12, %v3550_v22, %v5311_v35  ;;  %v8387_v60 = vsel %vm9607_vm0, %v3551_v23, %v5312_v55  ;;  %vm9613_vm12 = vmmov %vm9609_vm1 }
 0x492   : > { %v3565_v44 = vsel %vm3119_vm5, %v3557_v2, %v5282_v50  ;;  %vm9614_vm0 = vmmov %vm9611_vm3 }
 0x493   : > { %v3573_v6 = vsel %vm3128_vm8, %v3565_v44, %v5287_v25 }
 0x494   : > { %v3581_v5 = vsel %vm3137_vm9, %v3573_v6, %v5292_v45 }
 0x495   : > { %v3589_v38 = vsel %vm3146_vm10, %v3581_v5, %v5297_v13  ;;  %v3260_v13 = vpop.f32.mrf.mxu2 }
 0x496   : > { %v3597_v10 = vsel %vm3155_vm11, %v3589_v38, %v5302_v31 }
 0x497   : > { %3638 = vmatmul.f32.gmra.mxu3 %v3597_v10 }
 0x4c2   : > { %v3210_v53 = vpop.f32.mrf.mxu1 }
 0x4c3   : > { %v3211_v7 = vadd.f32 %v3210_v53, %v8156_v48 }
 0x4c5   : > { %v3252_v49 = vadd.f32 %v3251_v27, %v3211_v7 }
 0x4c7   : > { %v3286_v18 = vmax.f32 %v3252_v49, 0.0 }
 0x4c9   : > { %v3302_v29 = vrot.slane %v3286_v18, 7 }
 0x4ca   : > { %v3213_v33 = vpop.f32.mrf.mxu1 }
 0x4cb   : > { %v8396_v47 = vsel %vm9608_vm13, 0.0, %v3302_v29  ;;  %v3326_v51 = vsel %vm9600_vm4, %v3302_v29, 0.0  ;;  %v3214_v21 = vadd.f32 %v3213_v33, %v8156_v48  ;;  %vm9615_vm13 = vmmov %vm9609_vm1 }
 0x4cc   : > { %v3356_v56 = vrot.slane %v8396_v47, 1  ;;  %v3357_v9 = vrot.slane %v3326_v51, 1  ;;  %v5328_v58 = vpack.i.bf16 %v8396_v47, %v8268_v0  ;;  %v3398_v15 = vrot.slane %v8396_v47, 2  ;;  %vm9616_vm4 = vmmov %vm9609_vm1 }
 0x4cd   : > { %v3255_v42 = vadd.f32 %v3254_v34, %v3214_v21  ;;  %v3399_v57 = vrot.slane %v3326_v51, 2 }
 0x4ce   : > { %5329 = vrot.lane.b32.xlu1 %v5328_v58, %s5682_s12  ;;  %v3358_v24 = vsel %vm9601_vm15, %v3356_v56, %v3357_v9  ;;  %vm9617_vm15 = vmmov %vm9614_vm0 }
 0x4cf   : > { %v3287_v54 = vmax.f32 %v3255_v42, 0.0  ;;  %v3400_v11 = vsel %vm610_vm2, %v3398_v15, %v3399_v57  ;;  %v5333_v36 = vpack.i.bf16 %v3358_v24, %v8276_v20  ;;  %v8462_v15 = vperm.slane %v8153_v12, 2  ;;  %v5325_v12 = vpop.permute.xlu0 %5324 }
 0x4d0   : > { %5004 = vmatmul.msk.f32.gmra.mxu2 %vm1474_vm7, %v3400_v11 }
 0x4d1   : > { %v3303_v30 = vrot.slane %v3287_v54, 7  ;;  %5334 = vrot.lane.b32.xlu2 %v5333_v36, %s5681_s11 }
 0x4d3   : > { %v8411_v43 = vsel %vm9609_vm1, 0.0, %v3303_v30  ;;  %v3327_v46 = vsel %vm9610_vm14, %v3303_v30, 0.0  ;;  %vm9620_vm1 = vcmask 261120  }
 0x4d4   : > { %v3359_v52 = vrot.slane %v8411_v43, 1  ;;  %v3360_v19 = vrot.slane %v3327_v46, 1  ;;  %v3401_v26 = vrot.slane %v8411_v43, 2  ;;  %v3402_v39 = vrot.slane %v3327_v46, 2  ;;  %vm9621_vm14 = vmmov %vm9620_vm1 }
 0x4d5   : > { %v5348_v55 = vpack.i.bf16 %v8411_v43, %v8396_v47 }
 0x4d6   : > { %5344 = vrot.lane.b32.xlu1 %v8278_v1, %s5677_s13  ;;  %v3403_v20 = vsel %vm610_vm2, %v3401_v26, %v3402_v39  ;;  %v3361_v16 = vsel %vm9611_vm3, %v3359_v52, %v3360_v19  ;;  %v9619_v26 = vld [vmem:[#allocation18_spill] sm:$0xff]  ;;  %vm9622_vm3 = vmmov %vm9620_vm1 }
 0x4d7   : > { %v3216_v61 = vpop.f32.mrf.mxu1  ;;  %v5353_v28 = vpack.i.bf16 %v3361_v16, %v3358_v24  ;;  %v5358_v1 = vpack.i.bf16 %v3403_v20, %v3400_v11  ;;  %v3677_v24 = vpop.f32.mrf.mxu2  ;;  %v9618_v11 = vld [vmem:[#allocation11_spill] sm:$0xff] }
 0x4d8   : > { %5005 = vmatmul.msk.f32.gmra.mxu2 %vm1474_vm7, %v3403_v20  ;;  %v3217_v35 = vadd.f32 %v3216_v61, %v8156_v48  ;;  %v5320_v20 = vpop.permute.xlu2 %5319 }
 0x4d9   : > { %5354 = vrot.lane.b32.xlu0 %v5353_v28, %s5678_s5  ;;  %5349 = vrot.lane.b32.xlu2 %v5348_v55, %s5679_s8  ;;  %v5326_v55 = vunpack.i.l.bf16 %v5325_v12 }
 0x4da   : > { %v3258_v23 = vadd.f32 %v3257_v63, %v3217_v35  ;;  %v5321_v35 = vunpack.i.l.bf16 %v5320_v20 }
 0x4dc   : > { %v3288_v22 = vmax.f32 %v3258_v23, 0.0 }
 0x4de   : > { %v3304_v50 = vrot.slane %v3288_v22, 7  ;;  %5359 = vrot.lane.b32.xlu1 %v5358_v1, %s5680_s10 }
 0x4df   : > { %v3219_v25 = vpop.f32.mrf.mxu1  ;;  %v3680_v52 = vpop.f32.mrf.mxu2 }
 0x4e0   : > { %v8428_v2 = vsel %vm9612_vm6, 0.0, %v3304_v50  ;;  %v3328_v45 = vsel %vm9613_vm12, %v3304_v50, 0.0  ;;  %v3220_v44 = vadd.f32 %v3219_v25, %v8156_v48  ;;  %vm9623_vm6 = vmmov %vm9620_vm1 }
 0x4e1   : > { %v3362_v6 = vrot.slane %v8428_v2, 1  ;;  %v3363_v31 = vrot.slane %v3328_v45, 1  ;;  %v5363_v5 = vpack.i.bf16 %v8428_v2, %v8411_v43  ;;  %v3404_v38 = vrot.slane %v8428_v2, 2  ;;  %vm9624_vm12 = vmmov %vm9620_vm1 }
 0x4e2   : > { %v3261_v10 = vadd.f32 %v3260_v13, %v3220_v44  ;;  %v3405_v53 = vrot.slane %v3328_v45, 2  ;;  %v5340_v45 = vpop.permute.xlu0 %5339 }
 0x4e3   : > { %5364 = vrot.lane.b32.xlu2 %v5363_v5, %s5682_s12  ;;  %v3364_v7 = vsel %vm9614_vm0, %v3362_v6, %v3363_v31  ;;  %v5341_v31 = vunpack.i.l.bf16 %v5340_v45  ;;  %vm9625_vm0 = vmmov %vm9616_vm4 }
 0x4e4   : > { %v3289_v27 = vmax.f32 %v3261_v10, 0.0  ;;  %v3406_v49 = vsel %vm610_vm2, %v3404_v38, %v3405_v53  ;;  %v5368_v18 = vpack.i.bf16 %v3364_v7, %v3361_v16  ;;  %v5315_v16 = vpop.permute.xlu1 %5314  ;;  %v5322_v53 = vunpack.i.h.bf16 %v5320_v20 }
 0x4e5   : > { %5006 = vmatmul.msk.f32.gmra.mxu2 %vm1474_vm7, %v3406_v49  ;;  %v5316_v63 = vunpack.i.l.bf16 %v5315_v16  ;;  %v3552_v10 = vsel %vm1474_vm7, %v8254_v32, %v5341_v31 }
 0x4e6   : > { %v3305_v48 = vrot.slane %v3289_v27, 7  ;;  %5374 = vrot.lane.b32.xlu1 %v5353_v28, %s5673_s9  ;;  %5369 = vrot.lane.b32.xlu0 %v5368_v18, %s5681_s11 }
 0x4e7   : > { %v3566_v28 = vsel %vm3119_vm5, %v8387_v60, %v5316_v63  ;;  %v5317_v60 = vunpack.i.h.bf16 %v5315_v16 }
 0x4e8   : > { %v3321_v29 = vsel %vm9615_vm13, 0.0, %v3305_v48  ;;  %v3329_v33 = vsel %vm9616_vm4, %v3305_v48, 0.0  ;;  %v3574_v22 = vsel %vm3128_vm8, %v3566_v28, %v5321_v35  ;;  %vm9626_vm13 = vmmov %vm9625_vm0 }
 0x4e9   : > { %v3481_v51 = vrot.slane %v3321_v29, 2  ;;  %v3482_v21 = vrot.slane %v3329_v33, 2  ;;  %v3455_v56 = vrot.slane %v3329_v33, 1  ;;  %v3454_v9 = vrot.slane %v3321_v29, 1  ;;  %vm9627_vm4 = vmmov %vm9625_vm0 }
 0x4ea   : > { %v3582_v25 = vsel %vm3137_vm9, %v3574_v22, %v5326_v55 }
 0x4eb   : > { %5379 = vrot.lane.b32.xlu2 %v5358_v1, %s5677_s13  ;;  %v3483_v34 = vsel %vm610_vm2, %v3481_v51, %v3482_v21  ;;  %v3456_v58 = vsel %vm9617_vm15, %v3454_v9, %v3455_v56  ;;  %vm9628_vm15 = vmmov %vm9625_vm0 }
 0x4ed   : > { %5007 = vmatmul.msk.f32.gmra.mxu2 %vm1474_vm7, %v3483_v34 }
 0x4ee   : > { %3469 = vrot.lane.b32.xlu1 %v3364_v7, %s5678_s5  ;;  %3441 = vrot.lane.b32.xlu0 %v8428_v2, %s5679_s8 }
 0x4f3   : > { %3496 = vrot.lane.b32.xlu2 %v3406_v49, %s5680_s10 }
 0x4f5   : > { %5008 = vmatmul.msk.f32.gmra.mxu2 %vm1474_vm7, %v7638_v14 }
 0x4f6   : > { %3541 = vrot.lane.b32.xlu1 %v3456_v58, %s5681_s11  ;;  %3520 = vrot.lane.b32.xlu0 %v3321_v29, %s5682_s12 }
 0x4fb   : > { %3377 = vrot.lane.b32.xlu2 %v3364_v7, %s5673_s9  ;;  %v5342_v7 = vunpack.i.h.bf16 %v5340_v45 }
 0x4fd   : > { %v3553_v56 = vsel %vm1474_vm7, %v8268_v0, %v5342_v7 }
 0x4fe   : > { %3443 = vrot.lane.b32.xlu1 %v3321_v29, %s5679_s8  ;;  %3419 = vrot.lane.b32.xlu0 %v3406_v49, %s5677_s13  ;;  %v5327_v49 = vunpack.i.h.bf16 %v5325_v12 }
 0x503   : > { %3471 = vrot.lane.b32.xlu2 %v3456_v58, %s5678_s5 }
 0x506   : > { %3498 = vrot.lane.b32.xlu0 %v3483_v34, %s5680_s10 }
 0x510   : > { %v3636_v42 = vpop.f32.mrf.mxu3 }
 0x511   : > { %v3637_v57 = vadd.f32 %v3636_v42, %v8462_v15 }
 0x513   : > { %v3678_v54 = vadd.f32 %v3677_v24, %v3637_v57 }
 0x515   : > { %v8466_v36 = vadd.f32 %v9618_v11, %v3678_v54 }
 0x51a   : > { %v3639_v30 = vpop.f32.mrf.mxu3 }
 0x51b   : > { %v3640_v46 = vadd.f32 %v3639_v30, %v8462_v15 }
 0x51d   : > { %v3681_v19 = vadd.f32 %v3680_v52, %v3640_v46 }
 0x51f   : > { %v8470_v39 = vadd.f32 %v9619_v26, %v3681_v19 }
 0x52b   : > { %v5335_v61 = vpop.permute.xlu2 %5334 }
 0x52c   : > { %v5336_v50 = vunpack.i.l.bf16 %v5335_v61  ;;  %v5337_v21 = vunpack.i.h.bf16 %v5335_v61 }
 0x533   : > { %v5350_v6 = vpop.permute.xlu2 %5349 }
 0x534   : > { %v5351_v24 = vunpack.i.l.bf16 %v5350_v6  ;;  %v5352_v28 = vunpack.i.h.bf16 %v5350_v6 }
 0x53d   : > { %v5365_v29 = vpop.permute.xlu2 %5364 }
 0x53e   : > { %v5366_v0 = vunpack.i.l.bf16 %v5365_v29  ;;  %v5367_v45 = vunpack.i.h.bf16 %v5365_v29 }
 0x540   : > { %v5330_v23 = vpop.permute.xlu1 %5329 }
 0x541   : > { %v5331_v1 = vunpack.i.l.bf16 %v5330_v23  ;;  %v5332_v33 = vunpack.i.h.bf16 %v5330_v23 }
 0x543   : > { %v3590_v44 = vsel %vm3146_vm10, %v3582_v25, %v5331_v1 }
 0x544   : > { %v3598_v13 = vsel %vm3155_vm11, %v3590_v44, %v5336_v50 }
 0x545   : > { %3641 = vmatmul.f32.gmra.mxu3 %v3598_v13  ;;  %v5380_v52 = vpop.permute.xlu2 %5379 }
 0x546   : > { %v5381_v63 = vunpack.i.l.bf16 %v5380_v52  ;;  %v5382_v31 = vunpack.i.h.bf16 %v5380_v52 }
 0x548   : > { %v5345_v5 = vpop.permute.xlu1 %5344 }
 0x549   : > { %v5346_v38 = vunpack.i.l.bf16 %v5345_v5  ;;  %v5347_v18 = vunpack.i.h.bf16 %v5345_v5 }
 0x54b   : > { %v3559_v27 = vsel %vm9620_vm1, %v3552_v10, %v5346_v38  ;;  %v5355_v9 = vpop.permute.xlu0 %5354  ;;  %v3560_v58 = vsel %vm9621_vm14, %v3553_v56, %v5347_v18  ;;  %vm9629_vm1 = vcmask 1046528  }
 0x54c   : > { %v3567_v48 = vsel %vm3119_vm5, %v3559_v27, %v5317_v60  ;;  %v5356_v54 = vunpack.i.l.bf16 %v5355_v9  ;;  %v3568_v11 = vsel %vm3119_vm5, %v3560_v58, %v5351_v24  ;;  %v5357_v1 = vunpack.i.h.bf16 %v5355_v9  ;;  %vm9630_vm14 = vmmov %vm9629_vm1 }
 0x54d   : > { %v3575_v51 = vsel %vm3128_vm8, %v3567_v48, %v5322_v53  ;;  %v3497_v27 = vpop.permute.xlu2 %3496 }
 0x54e   : > { %v3583_v34 = vsel %vm3137_vm9, %v3575_v51, %v5327_v49  ;;  %v3576_v46 = vsel %vm3128_vm8, %v3568_v11, %v5356_v54 }
 0x54f   : > { %v3591_v32 = vsel %vm3146_vm10, %v3583_v34, %v5332_v33 }
 0x550   : > { %v5360_v42 = vpop.permute.xlu1 %5359  ;;  %v3599_v57 = vsel %vm3155_vm11, %v3591_v32, %v5337_v21 }
 0x551   : > { %3644 = vmatmul.f32.gmra.mxu3 %v3599_v57  ;;  %v5361_v30 = vunpack.i.l.bf16 %v5360_v42  ;;  %v5362_v50 = vunpack.i.h.bf16 %v5360_v42 }
 0x553   : > { %v3584_v19 = vsel %vm3137_vm9, %v3576_v46, %v5361_v30  ;;  %v3683_v46 = vpop.f32.mrf.mxu2 }
 0x554   : > { %v3592_v61 = vsel %vm3146_vm10, %v3584_v19, %v5366_v0 }
 0x555   : > { %v3378_v51 = vpop.permute.xlu2 %3377 }
 0x556   : > { %v3556_v34 = vsel %vm1474_vm7, %v8428_v2, %v3378_v51 }
 0x558   : > { %v5375_v26 = vpop.permute.xlu1 %5374  ;;  %v5370_v20 = vpop.permute.xlu0 %5369 }
 0x559   : > { %v5376_v16 = vunpack.i.l.bf16 %v5375_v26  ;;  %v5371_v12 = vunpack.i.l.bf16 %v5370_v20  ;;  %v5377_v55 = vunpack.i.h.bf16 %v5375_v26  ;;  %v5372_v60 = vunpack.i.h.bf16 %v5370_v20 }
 0x55b   : > { %v3554_v35 = vsel %vm1474_vm7, %v8396_v47, %v5376_v16  ;;  %v3600_v23 = vsel %vm3155_vm11, %v3592_v61, %v5371_v12  ;;  %v3555_v13 = vsel %vm1474_vm7, %v8411_v43, %v5377_v55  ;;  %v3686_v26 = vpop.f32.mrf.mxu2 }
 0x55c   : > { %v3561_v22 = vsel %vm9622_vm3, %v3554_v35, %v5381_v63  ;;  %3647 = vmatmul.f32.gmra.mxu3 %v3600_v23  ;;  %v3562_v10 = vsel %vm9623_vm6, %v3555_v13, %v5382_v31  ;;  %vm9631_vm3 = vmmov %vm9625_vm0 }
 0x55d   : > { %v3569_v25 = vsel %vm3119_vm5, %v3561_v22, %v5352_v28  ;;  %v3472_v58 = vpop.permute.xlu2 %3471  ;;  %vm9632_vm6 = vmmov %vm9625_vm0 }
 0x55e   : > { %v3577_v44 = vsel %vm3128_vm8, %v3569_v25, %v5357_v1 }
 0x55f   : > { %v3585_v6 = vsel %vm3137_vm9, %v3577_v44, %v5362_v50 }
 0x560   : > { %v3470_v5 = vpop.permute.xlu1 %3469  ;;  %v3442_v47 = vpop.permute.xlu0 %3441  ;;  %v3593_v38 = vsel %vm3146_vm10, %v3585_v6, %v5367_v45 }
 0x561   : > { %v3570_v53 = vsel %vm3119_vm5, %v3562_v10, %v3442_v47  ;;  %v3601_v7 = vsel %vm3155_vm11, %v3593_v38, %v5372_v60 }
 0x562   : > { %v3578_v49 = vsel %vm3128_vm8, %v3570_v53, %v3470_v5 }
 0x563   : > { %v3586_v43 = vsel %vm3137_vm9, %v3578_v49, %v3497_v27  ;;  %v3689_v63 = vpop.f32.mrf.mxu2 }
 0x564   : > { %3650 = vmatmul.f32.gmra.mxu3 %v3601_v7 }
 0x568   : > { %v3521_v18 = vpop.permute.xlu0 %3520  ;;  %v3542_v48 = vpop.permute.xlu1 %3541 }
 0x569   : > { %v3594_v29 = vsel %vm3146_vm10, %v3586_v43, %v3521_v18 }
 0x56a   : > { %v3602_v33 = vsel %vm3155_vm11, %v3594_v29, %v3542_v48 }
 0x56b   : > { %v3692_v23 = vpop.f32.mrf.mxu2 }
 0x56c   : > { %3653 = vmatmul.f32.gmra.mxu3 %v3602_v33 }
 0x570   : > { %v3420_v21 = vpop.permute.xlu0 %3419  ;;  %v3444_v9 = vpop.permute.xlu1 %3443 }
 0x571   : > { %v3563_v56 = vsel %vm9624_vm12, %v3556_v34, %v3420_v21  ;;  %vm9633_vm12 = vmmov %vm9629_vm1 }
 0x572   : > { %v3571_v32 = vsel %vm3119_vm5, %v3563_v56, %v3444_v9 }
 0x573   : > { %v3579_v57 = vsel %vm3128_vm8, %v3571_v32, %v3472_v58  ;;  %v3695_v44 = vpop.f32.mrf.mxu2 }
 0x578   : > { %v3499_v42 = vpop.permute.xlu0 %3498 }
 0x579   : > { %v3587_v24 = vsel %vm3137_vm9, %v3579_v57, %v3499_v42  ;;  %v3921_v57 = vmax.f32 %v8470_v39, 0.0 }
 0x57a   : > { %v3595_v54 = vsel %vm3146_vm10, %v3587_v24, %v8346_v3 }
 0x57b   : > { %v3603_v11 = vsel %vm3155_vm11, %v3595_v54, %v8351_v17  ;;  %v3698_v9 = vpop.f32.mrf.mxu2 }
 0x57c   : > { %3656 = vmatmul.f32.gmra.mxu3 %v3603_v11  ;;  %v3937_v11 = vrot.slane %v3921_v57, 7 }
 0x5c8   : > { %v3642_v30 = vpop.f32.mrf.mxu3 }
 0x5c9   : > { %v3643_v2 = vadd.f32 %v3642_v30, %v8462_v15 }
 0x5cb   : > { %v3684_v52 = vadd.f32 %v3683_v46, %v3643_v2 }
 0x5cd   : > { %v8522_v19 = vadd.f32 %v7458_v37, %v3684_v52 }
 0x5d4   : > { %v3645_v0 = vpop.f32.mrf.mxu3 }
 0x5d5   : > { %v3646_v20 = vadd.f32 %v3645_v0, %v8462_v15 }
 0x5d7   : > { %v3687_v16 = vadd.f32 %v3686_v26, %v3646_v20 }
 0x5d9   : > { %v8526_v12 = vadd.f32 %v7656_v4, %v3687_v16 }
 0x5df   : > { %v3648_v61 = vpop.f32.mrf.mxu3 }
 0x5e0   : > { %v3649_v28 = vadd.f32 %v3648_v61, %v8462_v15 }
 0x5e2   : > { %v3690_v55 = vadd.f32 %v3689_v63, %v3649_v28  ;;  %v8587_v63 = vsel %vm9625_vm0, 0.0, %v3937_v11 }
 0x5e4   : > { %v8530_v35 = vadd.f32 %v7817_v8, %v3690_v55 }
 0x5e7   : > { %v3651_v1 = vpop.f32.mrf.mxu3 }
 0x5e8   : > { %v3652_v37 = vadd.f32 %v3651_v1, %v8462_v15 }
 0x5ea   : > { %v3693_v22 = vadd.f32 %v3692_v23, %v3652_v37  ;;  %v3985_v37 = vrot.slane %v8587_v63, 1 }
 0x5ec   : > { %v8534_v50 = vadd.f32 %v7995_v40, %v3693_v22 }
 0x5ee   : > { %v3925_v25 = vmax.f32 %v8534_v50, 0.0 }
 0x5ef   : > { %v3654_v4 = vpop.f32.mrf.mxu3 }
 0x5f0   : > { %v3655_v45 = vadd.f32 %v3654_v4, %v8462_v15  ;;  %v3941_v13 = vrot.slane %v3925_v25, 7  ;;  %v3923_v4 = vmax.f32 %v8526_v12, 0.0 }
 0x5f2   : > { %v3696_v6 = vadd.f32 %v3695_v44, %v3655_v45  ;;  %v8542_v8 = vsel %vm9625_vm0, 0.0, %v3941_v13  ;;  %v3965_v5 = vsel %vm9626_vm13, %v3941_v13, 0.0  ;;  %vm9634_vm13 = vmmov %vm9625_vm0  ;;  %v3922_v13 = vmax.f32 %v8522_v19, 0.0 }
 0x5f3   : > { %v3998_v38 = vrot.slane %v3965_v5, 1  ;;  %v4040_v60 = vrot.slane %v3965_v5, 2  ;;  %v4039_v10 = vrot.slane %v8542_v8, 2  ;;  %v3997_v53 = vrot.slane %v8542_v8, 1 }
 0x5f4   : > { %v8539_v31 = vadd.f32 %v8201_v41, %v3696_v6  ;;  %v3961_v61 = vsel %vm9634_vm13, %v3937_v11, 0.0  ;;  %vm9641_vm13 = vmmov %vm9629_vm1 }
 0x5f5   : > { %v8555_v48 = vsel %vm610_vm2, %v4039_v10, %v4040_v60  ;;  %v8561_v33 = vsel %vm9629_vm1, %v3997_v53, %v3998_v38  ;;  %v3986_v1 = vrot.slane %v3961_v61, 1  ;;  %v4027_v60 = vrot.slane %v8587_v63, 2 }
 0x5f6   : > { %v3926_v47 = vmax.f32 %v8539_v31, 0.0  ;;  %v3939_v10 = vrot.slane %v3923_v4, 7  ;;  %v5021_v4 = vld [vmem:[%s9137_s2 + $0x180] sm:$0xff] }
 0x5f7   : > { %v3987_v44 = vsel %vm9629_vm1, %v3985_v37, %v3986_v1  ;;  %v5023_v37 = vld [vmem:[%s9137_s2 + $0x190] sm:$0xff] }
 0x5f8   : > { %v3942_v40 = vrot.slane %v3926_v47, 7 }
 0x5fa   : > { %v8549_v7 = vsel %vm9627_vm4, 0.0, %v3942_v40  ;;  %v3966_v41 = vsel %vm9628_vm15, %v3942_v40, 0.0  ;;  %vm9635_vm4 = vmmov %vm9625_vm0  ;;  %v4028_v40 = vrot.slane %v3961_v61, 2  ;;  %v3924_v61 = vmax.f32 %v8530_v35, 0.0 }
 0x5fb   : > { %v4001_v27 = vrot.slane %v3966_v41, 1  ;;  %v4043_v49 = vrot.slane %v3966_v41, 2  ;;  %v4042_v18 = vrot.slane %v8549_v7, 2  ;;  %v4000_v43 = vrot.slane %v8549_v7, 1  ;;  %vm9636_vm15 = vmmov %vm9625_vm0 }
 0x5fc   : > { %v3940_v1 = vrot.slane %v3924_v61, 7 }
 0x5fd   : > { %v8558_v29 = vsel %vm610_vm2, %v4042_v18, %v4043_v49  ;;  %v8564_v51 = vsel %vm9630_vm14, %v4000_v43, %v4001_v27  ;;  %v3938_v27 = vrot.slane %v3922_v13, 7  ;;  %vm9637_vm14 = vmmov %vm9629_vm1  ;;  %v8615_v18 = vsel %vm610_vm2, %v4027_v60, %v4028_v40  ;;  %v5019_v40 = vld [vmem:[%s9137_s2 + $0x170] sm:$0xff] }
 0x5fe   : > { %v5388_v21 = vpack.i.bf16 %v8558_v29, %v8555_v48  ;;  %v5383_v34 = vpack.i.bf16 %v8564_v51, %v8561_v33 }
 0x5ff   : > { %v3657_v56 = vpop.f32.mrf.mxu3 }
 0x600   : > { %5389 = vrot.lane.b32.xlu2 %v5388_v21, %s5677_s13  ;;  %5384 = vrot.lane.b32.xlu1 %v5383_v34, %s5673_s9  ;;  %v3658_v32 = vadd.f32 %v3657_v56, %v8462_v15  ;;  %v3920_v15 = vmax.f32 %v8466_v36, 0.0 }
 0x602   : > { %v3699_v58 = vadd.f32 %v3698_v9, %v3658_v32  ;;  %v3936_v23 = vrot.slane %v3920_v15, 7  ;;  %v3962_v32 = vsel %vm9625_vm0, %v3938_v27, 0.0 }
 0x603   : > { %v4031_v15 = vrot.slane %v3962_v32, 2 }
 0x604   : > { %v8574_v42 = vadd.f32 %v8219_v59, %v3699_v58  ;;  %v8598_v22 = vsel %vm9635_vm4, 0.0, %v3936_v23  ;;  %v3960_v25 = vsel %vm9636_vm15, %v3936_v23, 0.0  ;;  %vm9642_vm4 = vmmov %vm9629_vm1  ;;  %v5024_v23 = vld [vmem:[%s9137_s2 + $0x198] sm:$0xff] }
 0x605   : > { %v5418_v5 = vpack.i.bf16 %v8587_v63, %v8598_v22  ;;  %v3983_v47 = vrot.slane %v3960_v25, 1  ;;  %v3982_v38 = vrot.slane %v8598_v22, 1  ;;  %v4025_v53 = vrot.slane %v3960_v25, 2  ;;  %5073 = vmatpush.msra.mxu3 %v5024_v23  ;;  %4257 = vmatpush.msrb.mxu1 %v5024_v23  ;;  %v5022_v25 = vld [vmem:[%s9137_s2 + $0x188] sm:$0xff]  ;;  %vm9643_vm15 = vmmov %vm9625_vm0 }
 0x606   : > { %v3927_v24 = vmax.f32 %v8574_v42, 0.0  ;;  %v4024_v41 = vrot.slane %v8598_v22, 2  ;;  %vm9644_vm1 = vmmov %vm9625_vm0 }
 0x607   : > { %v3984_v49 = vsel %vm9637_vm14, %v3982_v38, %v3983_v47  ;;  %5074 = vmatpush.msra.mxu3 %v5023_v37  ;;  %4258 = vmatpush.msrb.mxu1 %v5023_v37  ;;  %v5020_v47 = vld [vmem:[%s9137_s2 + $0x178] sm:$0xff]  ;;  %vm9645_vm14 = vmmov %vm9642_vm4 }
 0x608   : > { %v3943_v54 = vrot.slane %v3927_v24, 7  ;;  %v5423_v34 = vpack.i.bf16 %v3987_v44, %v3984_v49  ;;  %v4026_v56 = vsel %vm610_vm2, %v4024_v41, %v4025_v53  ;;  %v5017_v53 = vld [vmem:[%s9137_s2 + $0x160] sm:$0xff]  ;;  %v5016_v49 = vld [vmem:[%s9137_s2 + $0x158] sm:$0xff] }
 0x609   : > { %v5428_v58 = vpack.i.bf16 %v8615_v18, %v4026_v56  ;;  %5075 = vmatpush.msra.mxu3 %v5022_v25  ;;  %4259 = vmatpush.msrb.mxu1 %v5022_v25  ;;  %v5013_v56 = vld [vmem:[%s9137_s2 + $0x140] sm:$0xff] }
 0x60a   : > { %v3959_v30 = vsel %vm9631_vm3, 0.0, %v3943_v54  ;;  %v3967_v2 = vsel %vm9632_vm6, %v3943_v54, 0.0  ;;  %vm9638_vm3 = vmmov %vm9625_vm0  ;;  %v3989_v54 = vrot.slane %v3962_v32, 1  ;;  %v5012_v32 = vld [vmem:[%s9137_s2 + $0x138] sm:$0xff] }
 0x60b   : > { %v4092_v46 = vrot.slane %v3959_v30, 1  ;;  %v4093_v52 = vrot.slane %v3967_v2, 1  ;;  %v4119_v0 = vrot.slane %v3959_v30, 2  ;;  %v4120_v26 = vrot.slane %v3967_v2, 2  ;;  %vm9639_vm6 = vmmov %vm9625_vm0  ;;  %5076 = vmatpush.msra.mxu3 %v5021_v4  ;;  %4260 = vmatpush.msrb.mxu1 %v5021_v4 }
 0x60c   : > { %v5393_v20 = vpack.i.bf16 %v3959_v30, %v8549_v7  ;;  %v5398_v45 = vpack.i.bf16 %v8587_v63, %v3959_v30  ;;  %v8618_v43 = vsel %vm9638_vm3, 0.0, %v3939_v10  ;;  %v3963_v21 = vsel %vm9639_vm6, %v3939_v10, 0.0  ;;  %v5018_v10 = vld [vmem:[%s9137_s2 + $0x168] sm:$0xff] }
 0x60d   : > { %v8583_v59 = vsel %vm610_vm2, %v4119_v0, %v4120_v26  ;;  %v4094_v16 = vsel %vm9633_vm12, %v4092_v46, %v4093_v52  ;;  %vm9640_vm12 = vmmov %vm9625_vm0  ;;  %v3992_v57 = vrot.slane %v3963_v21, 1  ;;  %v3991_v24 = vrot.slane %v8618_v43, 1  ;;  %5077 = vmatpush.msra.mxu3 %v5020_v47  ;;  %4261 = vmatpush.msrb.mxu1 %v5020_v47 }
 0x60e   : > { %5394 = vrot.lane.b32.xlu0 %v5393_v20, %s5679_s8  ;;  %v5408_v28 = vpack.i.bf16 %v8583_v59, %v8558_v29  ;;  %v5403_v55 = vpack.i.bf16 %v4094_v16, %v8564_v51  ;;  %v5413_v6 = vpack.i.bf16 %v3987_v44, %v4094_v16  ;;  %v8623_v9 = vsel %vm9640_vm12, 0.0, %v3938_v27 }
 0x60f   : > { %v3988_v11 = vrot.slane %v8623_v9, 1  ;;  %v3993_v30 = vsel %vm9641_vm13, %v3991_v24, %v3992_v57  ;;  %v5443_v46 = vpack.i.bf16 %v8618_v43, %v8623_v9  ;;  %v4034_v0 = vrot.slane %v3963_v21, 2  ;;  %5078 = vmatpush.msra.mxu3 %v5019_v40  ;;  %4262 = vmatpush.msrb.mxu1 %v5019_v40  ;;  %v5015_v21 = vld [vmem:[%s9137_s2 + $0x150] sm:$0xff]  ;;  %v5009_v57 = vld [vmem:[%s9137_s2 + $0x120] sm:$0xff] }
 0x610   : > { %5409 = vrot.lane.b32.xlu2 %v5408_v28, %s5680_s10  ;;  %5404 = vrot.lane.b32.xlu1 %v5403_v55, %s5678_s5  ;;  %v4033_v26 = vrot.slane %v8618_v43, 2  ;;  %v4030_v20 = vrot.slane %v8623_v9, 2  ;;  %v3964_v44 = vsel %vm9644_vm1, %v3940_v1, 0.0  ;;  %vm9646_vm3 = vcmask 261120  }
 0x611   : > { %v3990_v2 = vsel %vm9642_vm4, %v3988_v11, %v3989_v54  ;;  %5079 = vmatpush.msra.mxu3 %v5018_v10  ;;  %4263 = vmatpush.msrb.mxu1 %v5018_v10  ;;  %v4037_v41 = vrot.slane %v3964_v44, 2  ;;  %v5026_v54 = vld [vmem:[%s9137_s2 + $0x1a8] sm:$0xff]  ;;  %vm9647_vm6 = vmmov %vm9646_vm3 }
 0x612   : > { %v5448_v52 = vpack.i.bf16 %v3993_v30, %v3990_v2  ;;  %v8642_v16 = vsel %vm610_vm2, %v4033_v26, %v4034_v0  ;;  %v8646_v28 = vsel %vm610_vm2, %v4030_v20, %v4031_v15  ;;  %v5025_v30 = vld [vmem:[%s9137_s2 + $0x1a0] sm:$0xff]  ;;  %vm9648_vm12 = vmmov %vm9646_vm3 }
 0x613   : > { %v5463_v55 = vpack.i.bf16 %v8642_v16, %v8646_v28  ;;  %5080 = vmatpush.msra.mxu3 %v5017_v53  ;;  %4264 = vmatpush.msrb.mxu1 %v5017_v53  ;;  %vm9649_vm0 = vmmov %vm9646_vm3 }
 0x614   : > { %vm9650_vm13 = vmmov %vm9649_vm0 }
 0x615   : > { %5081 = vmatpush.msra.mxu3 %v5016_v49  ;;  %4265 = vmatpush.msrb.mxu1 %v5016_v49  ;;  %vm9651_vm4 = vmmov %vm9649_vm0 }
 0x616   : > { %5399 = vrot.lane.b32.xlu0 %v5398_v45, %s5682_s12  ;;  %v8666_v45 = vsel %vm9643_vm15, 0.0, %v3940_v1  ;;  %vm9652_vm15 = vmmov %vm9649_vm0 }
 0x617   : > { %v5478_v13 = vpack.i.bf16 %v8542_v8, %v8666_v45  ;;  %5082 = vmatpush.msra.mxu3 %v5015_v21  ;;  %4266 = vmatpush.msrb.mxu1 %v5015_v21 }
 0x618   : > { %5414 = vrot.lane.b32.xlu1 %v5413_v6, %s5681_s11  ;;  %5419 = vrot.lane.b32.xlu2 %v5418_v5, %s5679_s8  ;;  %v3995_v6 = vrot.slane %v3964_v44, 1  ;;  %v3994_v5 = vrot.slane %v8666_v45, 1 }
 0x61a   : > { %v3996_v38 = vsel %vm9645_vm14, %v3994_v5, %v3995_v6  ;;  %vm9653_vm14 = vmmov %vm9644_vm1 }
 0x61b   : > { %v5483_v60 = vpack.i.bf16 %v8561_v33, %v3996_v38  ;;  %v4036_v33 = vrot.slane %v8666_v45, 2 }
 0x61d   : > { %v8694_v27 = vsel %vm610_vm2, %v4036_v33, %v4037_v41 }
 0x61e   : > { %5424 = vrot.lane.b32.xlu0 %v5423_v34, %s5678_s5 }
 0x620   : > { %5429 = vrot.lane.b32.xlu1 %v5428_v58, %s5680_s10  ;;  %5434 = vrot.lane.b32.xlu2 %v5423_v34, %s5673_s9  ;;  %v5014_v34 = vld [vmem:[%s9137_s2 + $0x148] sm:$0xff] }
 0x621   : > { %5083 = vmatpush.msra.mxu3 %v5014_v34  ;;  %4267 = vmatpush.msrb.mxu1 %v5014_v34 }
 0x623   : > { %5084 = vmatpush.msra.mxu3 %v5013_v56  ;;  %4268 = vmatpush.msrb.mxu1 %v5013_v56 }
 0x625   : > { %5085 = vmatpush.msra.mxu3 %v5012_v32  ;;  %4269 = vmatpush.msrb.mxu1 %v5012_v32 }
 0x626   : > { %5439 = vrot.lane.b32.xlu0 %v5428_v58, %s5677_s13  ;;  %v5010_v58 = vld [vmem:[%s9137_s2 + $0x128] sm:$0xff] }
 0x628   : > { %5444 = vrot.lane.b32.xlu1 %v5443_v46, %s5682_s12  ;;  %5449 = vrot.lane.b32.xlu2 %v5448_v52, %s5681_s11 }
 0x62e   : > { %5454 = vrot.lane.b32.xlu0 %v5443_v46, %s5679_s8 }
 0x630   : > { %5459 = vrot.lane.b32.xlu1 %v5448_v52, %s5678_s5  ;;  %5464 = vrot.lane.b32.xlu2 %v5463_v55, %s5680_s10 }
 0x636   : > { %5469 = vrot.lane.b32.xlu0 %v5448_v52, %s5673_s9 }
 0x638   : > { %5474 = vrot.lane.b32.xlu1 %v5463_v55, %s5677_s13  ;;  %5479 = vrot.lane.b32.xlu2 %v5478_v13, %s5682_s12 }
 0x63e   : > { %5484 = vrot.lane.b32.xlu0 %v5483_v60, %s5681_s11 }
 0x640   : > { %5489 = vrot.lane.b32.xlu1 %v5478_v13, %s5679_s8  ;;  %5494 = vrot.lane.b32.xlu2 %v5483_v60, %s5678_s5 }
 0x646   : > { %4130 = vrot.lane.b32.xlu0 %v8694_v27, %s5680_s10 }
 0x648   : > { %4011 = vrot.lane.b32.xlu1 %v3996_v38, %s5673_s9  ;;  %4053 = vrot.lane.b32.xlu2 %v8694_v27, %s5677_s13 }
 0x64e   : > { %4132 = vrot.lane.b32.xlu0 %v8555_v48, %s5680_s10 }
 0x650   : > { %4156 = vrot.lane.b32.xlu1 %v8549_v7, %s5682_s12  ;;  %4177 = vrot.lane.b32.xlu2 %v8564_v51, %s5681_s11  ;;  %v5011_v51 = vld [vmem:[%s9137_s2 + $0x130] sm:$0xff] }
 0x651   : > { %5086 = vmatpush.msra.mxu3 %v5011_v51  ;;  %4270 = vmatpush.msrb.mxu1 %v5011_v51 }
 0x653   : > { %5087 = vmatpush.msra.mxu3 %v5010_v58  ;;  %4271 = vmatpush.msrb.mxu1 %v5010_v58 }
 0x655   : > { %5088 = vmatpush.msra.mxu3 %v5009_v57  ;;  %4272 = vmatpush.msrb.mxu1 %v5009_v57 }
 0x657   : > { %4312 = vmatpush.msrb.mxu3 %v5026_v54 }
 0x659   : > { %4313 = vmatpush.msrb.mxu3 %v5025_v30 }
 0x65a   : > { %v5390_v24 = vpop.permute.xlu2 %5389 }
 0x65b   : > { %v5391_v55 = vunpack.i.l.bf16 %v5390_v24  ;;  %v5392_v13 = vunpack.i.h.bf16 %v5390_v24 }
 0x66a   : > { %v5410_v11 = vpop.permute.xlu2 %5409 }
 0x66b   : > { %v5411_v40 = vunpack.i.l.bf16 %v5410_v11  ;;  %v5412_v49 = vunpack.i.h.bf16 %v5410_v11 }
 0x672   : > { %v5385_v2 = vpop.permute.xlu1 %5384  ;;  %v5420_v46 = vpop.permute.xlu2 %5419 }
 0x673   : > { %v5386_v52 = vunpack.i.l.bf16 %v5385_v2  ;;  %v5387_v15 = vunpack.i.h.bf16 %v5385_v2  ;;  %v5421_v34 = vunpack.i.l.bf16 %v5420_v46 }
 0x675   : > { %v4193_v20 = vsel %vm1474_vm7, %v8542_v8, %v5386_v52  ;;  %v4194_v37 = vsel %vm1474_vm7, %v8549_v7, %v5387_v15  ;;  %v4202_v54 = vsel %vm3119_vm5, %v7918_v62, %v5421_v34 }
 0x676   : > { %v4200_v1 = vsel %vm9646_vm3, %v4193_v20, %v5391_v55  ;;  %v4201_v8 = vsel %vm9647_vm6, %v4194_v37, %v5392_v13  ;;  %vm9654_vm3 = vmmov %vm9644_vm1 }
 0x677   : > { %vm9655_vm6 = vmmov %vm9644_vm1 }
 0x67a   : > { %v5435_v25 = vpop.permute.xlu2 %5434 }
 0x67b   : > { %v5436_v15 = vunpack.i.l.bf16 %v5435_v25 }
 0x67d   : > { %v4188_v37 = vsel %vm1474_vm7, %v8598_v22, %v5436_v15 }
 0x680   : > { %v5395_v0 = vpop.permute.xlu0 %5394 }
 0x681   : > { %v5396_v61 = vunpack.i.l.bf16 %v5395_v0  ;;  %v5397_v4 = vunpack.i.h.bf16 %v5395_v0 }
 0x682   : > { %v5405_v26 = vpop.permute.xlu1 %5404  ;;  %v5450_v51 = vpop.permute.xlu2 %5449 }
 0x683   : > { %v5406_v23 = vunpack.i.l.bf16 %v5405_v26  ;;  %v4208_v44 = vsel %vm3119_vm5, %v4200_v1, %v5396_v61  ;;  %v5407_v6 = vunpack.i.h.bf16 %v5405_v26  ;;  %v4209_v10 = vsel %vm3119_vm5, %v4201_v8, %v5397_v4 }
 0x684   : > { %v5422_v1 = vunpack.i.h.bf16 %v5420_v46  ;;  %v5437_v8 = vunpack.i.h.bf16 %v5435_v25 }
 0x685   : > { %v4216_v5 = vsel %vm3128_vm8, %v4208_v44, %v5406_v23  ;;  %v4217_v7 = vsel %vm3128_vm8, %v4209_v10, %v5407_v6 }
 0x686   : > { %v4224_v33 = vsel %vm3137_vm9, %v4216_v5, %v5411_v40  ;;  %v4225_v56 = vsel %vm3137_vm9, %v4217_v7, %v5412_v49 }
 0x687   : > { %v4233_v24 = vsel %vm3146_vm10, %v4225_v56, %v8346_v3 }
 0x688   : > { %v5400_v47 = vpop.permute.xlu0 %5399  ;;  %v4241_v0 = vsel %vm3155_vm11, %v4233_v24, %v8351_v17 }
 0x689   : > { %v5401_v38 = vunpack.i.l.bf16 %v5400_v47  ;;  %v5402_v2 = vunpack.i.h.bf16 %v5400_v47 }
 0x68a   : > { %v5415_v60 = vpop.permute.xlu1 %5414  ;;  %v5465_v44 = vpop.permute.xlu2 %5464 }
 0x68b   : > { %v5416_v53 = vunpack.i.l.bf16 %v5415_v60  ;;  %v4232_v41 = vsel %vm3146_vm10, %v4224_v33, %v5401_v38  ;;  %v5417_v52 = vunpack.i.h.bf16 %v5415_v60  ;;  %v5451_v60 = vunpack.i.l.bf16 %v5450_v51 }
 0x68c   : > { %v5466_v34 = vunpack.i.l.bf16 %v5465_v44 }
 0x68d   : > { %v4240_v21 = vsel %vm3155_vm11, %v4232_v41, %v5416_v53  ;;  %v4189_v41 = vsel %vm1474_vm7, %v8587_v63, %v5437_v8 }
 0x68e   : > { %4291 = vmatmul.f32.vlgmr.msra.gmra.mxu3 %v4240_v21 }
 0x690   : > { %v5425_v32 = vpop.permute.xlu0 %5424 }
 0x691   : > { %v5426_v58 = vunpack.i.l.bf16 %v5425_v32  ;;  %v5427_v13 = vunpack.i.h.bf16 %v5425_v32 }
 0x692   : > { %v5430_v57 = vpop.permute.xlu1 %5429  ;;  %v5480_v56 = vpop.permute.xlu2 %5479 }
 0x693   : > { %v5431_v30 = vunpack.i.l.bf16 %v5430_v57  ;;  %v4210_v11 = vsel %vm3128_vm8, %v4202_v54, %v5426_v58  ;;  %v5432_v47 = vunpack.i.h.bf16 %v5430_v57  ;;  %v5452_v57 = vunpack.i.h.bf16 %v5450_v51 }
 0x695   : > { %v4218_v26 = vsel %vm3137_vm9, %v4210_v11, %v5431_v30 }
 0x696   : > { %4294 = vmatmul.f32.gmra.mxu3 %v4241_v0  ;;  %v4226_v20 = vsel %vm3146_vm10, %v4218_v26, %v5402_v2 }
 0x697   : > { %v4234_v61 = vsel %vm3155_vm11, %v4226_v20, %v5417_v52  ;;  %v5467_v20 = vunpack.i.h.bf16 %v5465_v44 }
 0x698   : > { %v5440_v55 = vpop.permute.xlu0 %5439  ;;  %4273 = vmatmul.f32.vlgmr.msrb.gmra.mxu1 %v4234_v61  ;;  %v5481_v61 = vunpack.i.l.bf16 %v5480_v56 }
 0x699   : > { %v5441_v23 = vunpack.i.l.bf16 %v5440_v55  ;;  %v5442_v10 = vunpack.i.h.bf16 %v5440_v55 }
 0x69a   : > { %v5445_v4 = vpop.permute.xlu1 %5444  ;;  %v5495_v55 = vpop.permute.xlu2 %5494 }
 0x69b   : > { %v4195_v6 = vsel %vm9648_vm12, %v4188_v37, %v5441_v23  ;;  %v5446_v5 = vunpack.i.l.bf16 %v5445_v4  ;;  %v4196_v25 = vsel %vm9649_vm0, %v4189_v41, %v5442_v10  ;;  %v5447_v32 = vunpack.i.h.bf16 %v5445_v4 }
 0x69c   : > { %v4203_v40 = vsel %vm3119_vm5, %v4195_v6, %v5422_v1  ;;  %vm9656_vm12 = vcmask 1046528  }
 0x69d   : > { %v4211_v38 = vsel %vm3128_vm8, %v4203_v40, %v5427_v13  ;;  %vm9657_vm0 = vmmov %vm9656_vm12 }
 0x69e   : > { %5027 = vmatmul.msk.f32.vlgmr.msrb.gmra.mxu3 %vm1474_vm7, %v8615_v18  ;;  %v4219_v46 = vsel %vm3137_vm9, %v4211_v38, %v5432_v47 }
 0x69f   : > { %v4227_v22 = vsel %vm3146_vm10, %v4219_v46, %v5446_v5  ;;  %v5482_v46 = vunpack.i.h.bf16 %v5480_v56 }
 0x6a0   : > { %v5455_v53 = vpop.permute.xlu0 %5454  ;;  %v4235_v33 = vsel %vm3155_vm11, %v4227_v22, %v5451_v60 }
 0x6a1   : > { %v5456_v7 = vunpack.i.l.bf16 %v5455_v53  ;;  %4276 = vmatmul.f32.gmra.mxu1 %v4235_v33  ;;  %v5457_v0 = vunpack.i.h.bf16 %v5455_v53 }
 0x6a2   : > { %v5460_v49 = vpop.permute.xlu1 %5459  ;;  %v4054_v22 = vpop.permute.xlu2 %4053 }
 0x6a3   : > { %v5461_v21 = vunpack.i.l.bf16 %v5460_v49  ;;  %v4204_v18 = vsel %vm3119_vm5, %v4196_v25, %v5456_v7  ;;  %v5462_v15 = vunpack.i.h.bf16 %v5460_v49 }
 0x6a5   : > { %v4212_v58 = vsel %vm3128_vm8, %v4204_v18, %v5461_v21 }
 0x6a6   : > { %5028 = vmatmul.msk.f32.gmra.mxu3 %vm1474_vm7, %v8646_v28  ;;  %v4220_v24 = vsel %vm3137_vm9, %v4212_v58, %v5466_v34 }
 0x6a7   : > { %v4228_v54 = vsel %vm3146_vm10, %v4220_v24, %v5447_v32 }
 0x6a8   : > { %v5470_v63 = vpop.permute.xlu0 %5469  ;;  %v4236_v30 = vsel %vm3155_vm11, %v4228_v54, %v5452_v57 }
 0x6a9   : > { %v5471_v2 = vunpack.i.l.bf16 %v5470_v63  ;;  %4279 = vmatmul.f32.gmra.mxu1 %v4236_v30  ;;  %v5472_v23 = vunpack.i.h.bf16 %v5470_v63  ;;  %v5052_v30 = vld [vmem:[%s9137_s2 + $0x238] sm:$0xff] }
 0x6aa   : > { %v5475_v11 = vpop.permute.xlu1 %5474  ;;  %v4178_v57 = vpop.permute.xlu2 %4177  ;;  %4750 = vmatpush.msra.mxu1 %v5052_v30 }
 0x6ab   : > { %v5476_v52 = vunpack.i.l.bf16 %v5475_v11  ;;  %v4190_v26 = vsel %vm1474_vm7, %v8623_v9, %v5471_v2  ;;  %v5477_v37 = vunpack.i.h.bf16 %v5475_v11  ;;  %v4191_v44 = vsel %vm1474_vm7, %v8618_v43, %v5472_v23  ;;  %v5051_v2 = vld [vmem:[%s9137_s2 + $0x230] sm:$0xff] }
 0x6ac   : > { %4751 = vmatpush.msra.mxu1 %v5051_v2 }
 0x6ad   : > { %v4197_v51 = vsel %vm9650_vm13, %v4190_v26, %v5476_v52  ;;  %v4198_v38 = vsel %vm9651_vm4, %v4191_v44, %v5477_v37  ;;  %vm9658_vm13 = vmmov %vm9644_vm1 }
 0x6ae   : > { %v4205_v28 = vsel %vm3119_vm5, %v4197_v51, %v5457_v0  ;;  %5029 = vmatmul.msk.f32.gmra.mxu3 %vm1474_vm7, %v8642_v16  ;;  %v5496_v16 = vunpack.i.l.bf16 %v5495_v55  ;;  %vm9659_vm4 = vmmov %vm9644_vm1 }
 0x6af   : > { %v4213_v1 = vsel %vm3128_vm8, %v4205_v28, %v5462_v15 }
 0x6b0   : > { %v5485_v4 = vpop.permute.xlu0 %5484  ;;  %v4221_v13 = vsel %vm3137_vm9, %v4213_v1, %v5467_v20 }
 0x6b1   : > { %v5486_v6 = vunpack.i.l.bf16 %v5485_v4  ;;  %v4229_v9 = vsel %vm3146_vm10, %v4221_v13, %v5481_v61  ;;  %v5487_v53 = vunpack.i.h.bf16 %v5485_v4 }
 0x6b2   : > { %v5490_v5 = vpop.permute.xlu1 %5489 }
 0x6b3   : > { %v5491_v47 = vunpack.i.l.bf16 %v5490_v5  ;;  %v4237_v40 = vsel %vm3155_vm11, %v4229_v9, %v5486_v6  ;;  %v5492_v41 = vunpack.i.h.bf16 %v5490_v5 }
 0x6b4   : > { %4282 = vmatmul.f32.gmra.mxu1 %v4237_v40 }
 0x6b5   : > { %v4206_v8 = vsel %vm3119_vm5, %v4198_v38, %v5491_v47 }
 0x6b6   : > { %5030 = vmatmul.msk.f32.gmra.mxu3 %vm1474_vm7, %v8694_v27  ;;  %v4214_v60 = vsel %vm3128_vm8, %v4206_v8, %v5496_v16  ;;  %v5497_v27 = vunpack.i.h.bf16 %v5495_v55 }
 0x6b8   : > { %v4131_v10 = vpop.permute.xlu0 %4130 }
 0x6b9   : > { %v4222_v43 = vsel %vm3137_vm9, %v4214_v60, %v4131_v10 }
 0x6ba   : > { %v4012_v33 = vpop.permute.xlu1 %4011  ;;  %v4230_v7 = vsel %vm3146_vm10, %v4222_v43, %v5482_v46 }
 0x6bb   : > { %v4192_v49 = vsel %vm1474_vm7, %v8666_v45, %v4012_v33  ;;  %v4238_v25 = vsel %vm3155_vm11, %v4230_v7, %v5487_v53 }
 0x6bc   : > { %v4199_v21 = vsel %vm9652_vm15, %v4192_v49, %v4054_v22  ;;  %4285 = vmatmul.f32.gmra.mxu1 %v4238_v25  ;;  %vm9660_vm15 = vmmov %vm9657_vm0 }
 0x6bd   : > { %v4207_v34 = vsel %vm3119_vm5, %v4199_v21, %v5492_v41 }
 0x6be   : > { %5031 = vmatmul.msk.f32.gmra.mxu3 %vm1474_vm7, %v8555_v48  ;;  %v4215_v18 = vsel %vm3128_vm8, %v4207_v34, %v5497_v27 }
 0x6c0   : > { %v4133_v56 = vpop.permute.xlu0 %4132 }
 0x6c1   : > { %v4223_v32 = vsel %vm3137_vm9, %v4215_v18, %v4133_v56 }
 0x6c2   : > { %v4157_v58 = vpop.permute.xlu1 %4156 }
 0x6c3   : > { %v4231_v45 = vsel %vm3146_vm10, %v4223_v32, %v4157_v58 }
 0x6c4   : > { %v4239_v24 = vsel %vm3155_vm11, %v4231_v45, %v4178_v57 }
 0x6c5   : > { %4288 = vmatmul.f32.gmra.mxu1 %v4239_v24 }
 0x6c6   : > { %5032 = vmatmul.msk.f32.gmra.mxu3 %vm1474_vm7, %v8558_v29  ;;  %v8830_v29 = vld [vmem:[%s9138_s3] sm:$0x1f] }
 0x6ce   : > { %5033 = vmatmul.msk.f32.gmra.mxu3 %vm1474_vm7, %v8583_v59  ;;  %v8833_v59 = vperm.slane %v8830_v29, 3 }
 0x6d6   : > { %5034 = vmatmul.msk.f32.gmra.mxu3 %vm1474_vm7, %v7638_v14 }
 0x711   : > { %v8817_v48 = vpop.f32.mrf.mxu3 }
 0x715   : > { %v4274_v54 = vpop.f32.mrf.mxu1 }
 0x716   : > { %v4275_v11 = vadd.f32 %v4274_v54, %v8833_v59 }
 0x719   : > { %v8819_v63 = vpop.f32.mrf.mxu3 }
 0x71e   : > { %v4277_v52 = vpop.f32.mrf.mxu1 }
 0x71f   : > { %v4278_v51 = vadd.f32 %v4277_v52, %v8833_v59 }
 0x721   : > { %v4315_v0 = vpop.f32.mrf.mxu3 }
 0x722   : > { %v4316_v26 = vadd.f32 %v4315_v0, %v4275_v11 }
 0x724   : > { %v4358_v15 = vmax.f32 %v4316_v26, 0.0 }
 0x726   : > { %v4374_v20 = vrot.slane %v4358_v15, 7  ;;  %v4280_v55 = vpop.f32.mrf.mxu1 }
 0x727   : > { %v4281_v44 = vadd.f32 %v4280_v55, %v8833_v59 }
 0x728   : > { %v8838_v23 = vsel %vm9644_vm1, 0.0, %v4374_v20  ;;  %v4398_v1 = vsel %vm9653_vm14, %v4374_v20, 0.0  ;;  %vm9661_vm14 = vmmov %vm9644_vm1 }
 0x729   : > { %v4318_v28 = vpop.f32.mrf.mxu3  ;;  %v4420_v13 = vrot.slane %v8838_v23, 1  ;;  %v4421_v6 = vrot.slane %v4398_v1, 1  ;;  %v4462_v9 = vrot.slane %v8838_v23, 2  ;;  %v4463_v5 = vrot.slane %v4398_v1, 2 }
 0x72a   : > { %v4319_v61 = vadd.f32 %v4318_v28, %v4278_v51 }
 0x72b   : > { %v4464_v7 = vsel %vm610_vm2, %v4462_v9, %v4463_v5  ;;  %v4422_v41 = vsel %vm9657_vm0, %v4420_v13, %v4421_v6 }
 0x72c   : > { %v4359_v37 = vmax.f32 %v4319_v61, 0.0 }
 0x72e   : > { %v4375_v4 = vrot.slane %v4359_v37, 7 }
 0x730   : > { %v8845_v47 = vsel %vm9654_vm3, 0.0, %v4375_v4  ;;  %v4399_v40 = vsel %vm9655_vm6, %v4375_v4, 0.0  ;;  %vm9662_vm3 = vmmov %vm9657_vm0 }
 0x731   : > { %v4423_v16 = vrot.slane %v8845_v47, 1  ;;  %v4424_v38 = vrot.slane %v4399_v40, 1  ;;  %v4465_v8 = vrot.slane %v8845_v47, 2  ;;  %v4466_v60 = vrot.slane %v4399_v40, 2  ;;  %v4321_v46 = vpop.f32.mrf.mxu3  ;;  %v4283_v43 = vpop.f32.mrf.mxu1  ;;  %vm9663_vm6 = vmmov %vm9644_vm1 }
 0x732   : > { %v4322_v10 = vadd.f32 %v4321_v46, %v4281_v44  ;;  %v5498_v22 = vpack.i.bf16 %v8845_v47, %v8838_v23  ;;  %v4284_v34 = vadd.f32 %v4283_v43, %v8833_v59 }
 0x733   : > { %v4425_v53 = vsel %vm9656_vm12, %v4423_v16, %v4424_v38  ;;  %v4467_v33 = vsel %vm610_vm2, %v4465_v8, %v4466_v60  ;;  %vm9664_vm12 = vmmov %vm9644_vm1 }
 0x734   : > { %v4360_v49 = vmax.f32 %v4322_v10, 0.0  ;;  %5499 = vrot.lane.b32.xlu0 %v5498_v22, %s5679_s8  ;;  %5053 = vmatmul.msk.f32.vlgmr.msra.gmra.mxu1 %vm1474_vm7, %v4467_v33  ;;  %v5508_v25 = vpack.i.bf16 %v4467_v33, %v4464_v7  ;;  %v5503_v21 = vpack.i.bf16 %v4425_v53, %v4422_v41 }
 0x736   : > { %v4376_v27 = vrot.slane %v4360_v49, 7  ;;  %5509 = vrot.lane.b32.xlu2 %v5508_v25, %s5680_s10  ;;  %5504 = vrot.lane.b32.xlu1 %v5503_v21, %s5678_s5 }
 0x738   : > { %v8862_v18 = vsel %vm9658_vm13, 0.0, %v4376_v27  ;;  %v4400_v56 = vsel %vm9659_vm4, %v4376_v27, 0.0  ;;  %vm9665_vm13 = vmmov %vm9644_vm1 }
 0x739   : > { %v4426_v32 = vrot.slane %v8862_v18, 1  ;;  %v4427_v58 = vrot.slane %v4400_v56, 1  ;;  %v4469_v57 = vrot.slane %v4400_v56, 2  ;;  %v4324_v45 = vpop.f32.mrf.mxu3  ;;  %v4468_v24 = vrot.slane %v8862_v18, 2  ;;  %v4286_v0 = vpop.f32.mrf.mxu1  ;;  %vm9666_vm4 = vmmov %vm9644_vm1 }
 0x73a   : > { %v4325_v54 = vadd.f32 %v4324_v45, %v4284_v34  ;;  %v4287_v15 = vadd.f32 %v4286_v0, %v8833_v59  ;;  %v5523_v13 = vpack.i.bf16 %v8862_v18, %v8845_v47  ;;  %v4293_v56 = vadd.f32 %v8817_v48, %v8833_v59 }
 0x73b   : > { %v4428_v30 = vsel %vm9660_vm15, %v4426_v32, %v4427_v58  ;;  %v4470_v2 = vsel %vm610_vm2, %v4468_v24, %v4469_v57  ;;  %vm9667_vm15 = vmmov %vm9657_vm0 }
 0x73c   : > { %v4361_v11 = vmax.f32 %v4325_v54, 0.0  ;;  %5519 = vrot.lane.b32.xlu0 %v5508_v25, %s5677_s13  ;;  %5054 = vmatmul.msk.f32.gmra.mxu1 %vm1474_vm7, %v4470_v2  ;;  %v5528_v52 = vpack.i.bf16 %v4428_v30, %v4425_v53 }
 0x73e   : > { %v4377_v26 = vrot.slane %v4361_v11, 7  ;;  %5514 = vrot.lane.b32.xlu2 %v5503_v21, %s5673_s9  ;;  %5529 = vrot.lane.b32.xlu1 %v5528_v52, %s5681_s11 }
 0x740   : > { %v8875_v51 = vsel %vm9644_vm1, 0.0, %v4377_v26  ;;  %v4401_v20 = vsel %vm9661_vm14, %v4377_v26, 0.0  ;;  %vm9668_vm14 = vmmov %vm9644_vm1 }
 0x741   : > { %v4429_v28 = vrot.slane %v8875_v51, 1  ;;  %v4430_v61 = vrot.slane %v4401_v20, 1  ;;  %v4472_v55 = vrot.slane %v4401_v20, 2  ;;  %v4327_v1 = vpop.f32.mrf.mxu3  ;;  %v4471_v37 = vrot.slane %v8875_v51, 2 }
 0x742   : > { %v4328_v4 = vadd.f32 %v4327_v1, %v4287_v15  ;;  %v5533_v40 = vpack.i.bf16 %v8875_v51, %v8862_v18  ;;  %v4289_v16 = vpop.f32.mrf.mxu1  ;;  %v4296_v20 = vadd.f32 %v8819_v63, %v8833_v59 }
 0x743   : > { %v4431_v6 = vsel %vm9662_vm3, %v4429_v28, %v4430_v61  ;;  %v4473_v9 = vsel %vm610_vm2, %v4471_v37, %v4472_v55  ;;  %v4290_v46 = vadd.f32 %v4289_v16, %v8833_v59  ;;  %v5050_v59 = vld [vmem:[%s9137_s2 + $0x228] sm:$0xff]  ;;  %vm9669_vm3 = vmmov %vm9644_vm1 }
 0x744   : > { %v4362_v5 = vmax.f32 %v4328_v4, 0.0  ;;  %5524 = vrot.lane.b32.xlu0 %v5523_v13, %s5682_s12  ;;  %5055 = vmatmul.msk.f32.gmra.mxu1 %vm1474_vm7, %v4473_v9  ;;  %v5538_v44 = vpack.i.bf16 %v4431_v6, %v4428_v30  ;;  %v5543_v7 = vpack.i.bf16 %v4473_v9, %v4470_v2 }
 0x745   : > { %4695 = vmatpush.msra.mxu2 %v5050_v59 }
 0x746   : > { %v4378_v38 = vrot.slane %v4362_v5, 7  ;;  %5539 = vrot.lane.b32.xlu2 %v5538_v44, %s5678_s5  ;;  %5534 = vrot.lane.b32.xlu1 %v5533_v40, %s5679_s8 }
 0x748   : > { %v8891_v8 = vsel %vm9663_vm6, 0.0, %v4378_v38  ;;  %v4402_v60 = vsel %vm9664_vm12, %v4378_v38, 0.0  ;;  %vm9670_vm6 = vmmov %vm9644_vm1 }
 0x749   : > { %v4432_v10 = vrot.slane %v8891_v8, 1  ;;  %v4433_v22 = vrot.slane %v4402_v60, 1  ;;  %v4475_v53 = vrot.slane %v4402_v60, 2  ;;  %v4330_v43 = vpop.f32.mrf.mxu3  ;;  %v4474_v33 = vrot.slane %v8891_v8, 2  ;;  %vm9672_vm12 = vmmov %vm9657_vm0 }
 0x74a   : > { %v4331_v41 = vadd.f32 %v4330_v43, %v4290_v46  ;;  %v5558_v0 = vpack.i.bf16 %v8891_v8, %v8875_v51  ;;  %v5048_v43 = vld [vmem:[%s9137_s2 + $0x218] sm:$0xff] }
 0x74b   : > { %v4434_v49 = vsel %vm9657_vm0, %v4432_v10, %v4433_v22  ;;  %v4476_v25 = vsel %vm610_vm2, %v4474_v33, %v4475_v53  ;;  %v5049_v53 = vld [vmem:[%s9137_s2 + $0x220] sm:$0xff]  ;;  %v5047_v33 = vld [vmem:[%s9137_s2 + $0x210] sm:$0xff] }
 0x74c   : > { %v4363_v21 = vmax.f32 %v4331_v41, 0.0  ;;  %5544 = vrot.lane.b32.xlu0 %v5543_v7, %s5680_s10  ;;  %5056 = vmatmul.msk.f32.gmra.mxu1 %vm1474_vm7, %v4476_v25  ;;  %v5563_v27 = vpack.i.bf16 %v4434_v49, %v4431_v6 }
 0x74d   : > { %4696 = vmatpush.msra.mxu2 %v5049_v53 }
 0x74e   : > { %v4379_v34 = vrot.slane %v4363_v21, 7  ;;  %5564 = vrot.lane.b32.xlu2 %v5563_v27, %s5681_s11  ;;  %5554 = vrot.lane.b32.xlu1 %v5543_v7, %s5677_s13  ;;  %v5046_v21 = vld [vmem:[%s9137_s2 + $0x208] sm:$0xff]  ;;  %v5045_v27 = vld [vmem:[%s9137_s2 + $0x200] sm:$0xff] }
 0x74f   : > { %4697 = vmatpush.msra.mxu2 %v5048_v43 }
 0x750   : > { %v8906_v32 = vsel %vm9665_vm13, 0.0, %v4379_v34  ;;  %v4403_v58 = vsel %vm9666_vm4, %v4379_v34, 0.0  ;;  %v5044_v34 = vld [vmem:[%s9137_s2 + $0x1f8] sm:$0xff] }
 0x751   : > { %v4478_v57 = vrot.slane %v4403_v58, 2  ;;  %v4333_v45 = vpop.f32.mrf.mxu3  ;;  %v4477_v24 = vrot.slane %v8906_v32, 2  ;;  %v4435_v30 = vrot.slane %v8906_v32, 1  ;;  %v4436_v2 = vrot.slane %v4403_v58, 1  ;;  %4698 = vmatpush.msra.mxu2 %v5047_v33  ;;  %v5042_v58 = vld [vmem:[%s9137_s2 + $0x1e8] sm:$0xff] }
 0x752   : > { %v4334_v54 = vadd.f32 %v4333_v45, %v4293_v56  ;;  %v5568_v48 = vpack.i.bf16 %v8906_v32, %v8891_v8  ;;  %v5043_v56 = vld [vmem:[%s9137_s2 + $0x1f0] sm:$0xff]  ;;  %v5040_v45 = vld [vmem:[%s9137_s2 + $0x1d8] sm:$0xff] }
 0x753   : > { %v4479_v11 = vsel %vm610_vm2, %v4477_v24, %v4478_v57  ;;  %v4437_v15 = vsel %vm9667_vm15, %v4435_v30, %v4436_v2  ;;  %4699 = vmatpush.msra.mxu2 %v5046_v21  ;;  %v5041_v57 = vld [vmem:[%s9137_s2 + $0x1e0] sm:$0xff]  ;;  %v5039_v24 = vld [vmem:[%s9137_s2 + $0x1d0] sm:$0xff]  ;;  %v5036_v2 = vld [vmem:[%s9137_s2 + $0x1b8] sm:$0xff] }
 0x754   : > { %v4364_v52 = vmax.f32 %v4334_v54, 0.0  ;;  %5549 = vrot.lane.b32.xlu0 %v5538_v44, %s5673_s9  ;;  %5057 = vmatmul.msk.f32.gmra.mxu1 %vm1474_vm7, %v4479_v11  ;;  %v5573_v13 = vpack.i.bf16 %v4437_v15, %v4434_v49  ;;  %v5588_v9 = vpack.i.bf16 %v4479_v11, %v4476_v25  ;;  %v5038_v54 = vld [vmem:[%s9137_s2 + $0x1c8] sm:$0xff]  ;;  %v5037_v30 = vld [vmem:[%s9137_s2 + $0x1c0] sm:$0xff] }
 0x755   : > { %4700 = vmatpush.msra.mxu2 %v5045_v27 }
 0x756   : > { %v4380_v26 = vrot.slane %v4364_v52, 7  ;;  %5569 = vrot.lane.b32.xlu2 %v5568_v48, %s5679_s8  ;;  %5559 = vrot.lane.b32.xlu1 %v5558_v0, %s5682_s12  ;;  %v5035_v52 = vld [vmem:[%s9137_s2 + $0x1b0] sm:$0xff] }
 0x757   : > { %4701 = vmatpush.msra.mxu2 %v5044_v34 }
 0x758   : > { %v8924_v28 = vsel %vm9644_vm1, 0.0, %v4380_v26  ;;  %v4404_v61 = vsel %vm9668_vm14, %v4380_v26, 0.0 }
 0x759   : > { %v4481_v55 = vrot.slane %v4404_v61, 2  ;;  %v4336_v1 = vpop.f32.mrf.mxu3  ;;  %v4480_v37 = vrot.slane %v8924_v28, 2  ;;  %v4438_v60 = vrot.slane %v8924_v28, 1  ;;  %v4439_v46 = vrot.slane %v4404_v61, 1  ;;  %4702 = vmatpush.msra.mxu2 %v5043_v56 }
 0x75a   : > { %v4337_v4 = vadd.f32 %v4336_v1, %v4296_v20  ;;  %v5593_v22 = vpack.i.bf16 %v8924_v28, %v8906_v32 }
 0x75b   : > { %v4482_v6 = vsel %vm610_vm2, %v4480_v37, %v4481_v55  ;;  %4703 = vmatpush.msra.mxu2 %v5042_v58 }
 0x75c   : > { %v4365_v5 = vmax.f32 %v4337_v4, 0.0  ;;  %5574 = vrot.lane.b32.xlu0 %v5573_v13, %s5678_s5  ;;  %5058 = vmatmul.msk.f32.gmra.mxu1 %vm1474_vm7, %v4482_v6 }
 0x75d   : > { %4704 = vmatpush.msra.mxu2 %v5041_v57 }
 0x75e   : > { %v4381_v63 = vrot.slane %v4365_v5, 7  ;;  %5589 = vrot.lane.b32.xlu2 %v5588_v9, %s5677_s13  ;;  %5579 = vrot.lane.b32.xlu1 %v5588_v9, %s5680_s10 }
 0x75f   : > { %4705 = vmatpush.msra.mxu2 %v5040_v45 }
 0x760   : > { %v4397_v44 = vsel %vm9669_vm3, 0.0, %v4381_v63  ;;  %v4405_v40 = vsel %vm9670_vm6, %v4381_v63, 0.0 }
 0x761   : > { %v4558_v16 = vrot.slane %v4405_v40, 2  ;;  %v4557_v38 = vrot.slane %v4397_v44, 2  ;;  %v4530_v49 = vrot.slane %v4397_v44, 1  ;;  %v4531_v25 = vrot.slane %v4405_v40, 1  ;;  %4706 = vmatpush.msra.mxu2 %v5039_v24 }
 0x763   : > { %v4559_v10 = vsel %vm610_vm2, %v4557_v38, %v4558_v16  ;;  %vm9671_vm2 = vmmov %vm9657_vm0  ;;  %4707 = vmatpush.msra.mxu2 %v5038_v54  ;;  %vm9673_vm0 = vcmask 261120  }
 0x764   : > { %4517 = vrot.lane.b32.xlu0 %v8924_v28, %s5679_s8  ;;  %5059 = vmatmul.msk.f32.gmra.mxu1 %vm1474_vm7, %v4559_v10  ;;  %v4440_v7 = vsel %vm9671_vm2, %v4438_v60, %v4439_v46  ;;  %vm9674_vm13 = vmmov %vm9673_vm0 }
 0x765   : > { %v5598_v41 = vpack.i.bf16 %v4440_v7, %v4437_v15  ;;  %4708 = vmatpush.msra.mxu2 %v5037_v30  ;;  %vm9675_vm4 = vmmov %vm9673_vm0 }
 0x766   : > { %5594 = vrot.lane.b32.xlu2 %v5593_v22, %s5682_s12  ;;  %5584 = vrot.lane.b32.xlu1 %v5573_v13, %s5673_s9  ;;  %vm9676_vm15 = vmmov %vm9673_vm0 }
 0x767   : > { %4709 = vmatpush.msra.mxu2 %v5036_v2  ;;  %vm9677_vm1 = vmmov %vm9673_vm0 }
 0x768   : > { %vm9678_vm14 = vmmov %vm9673_vm0 }
 0x769   : > { %4710 = vmatpush.msra.mxu2 %v5035_v52  ;;  %vm9679_vm3 = vmmov %vm9673_vm0 }
 0x76c   : > { %5599 = vrot.lane.b32.xlu0 %v5598_v41, %s5681_s11  ;;  %5060 = vmatmul.msk.f32.gmra.mxu1 %vm1474_vm7, %v7638_v14  ;;  %v4532_v14 = vsel %vm9672_vm12, %v4530_v49, %v4531_v25 }
 0x76e   : > { %4572 = vrot.lane.b32.xlu2 %v4482_v6, %s5680_s10  ;;  %4545 = vrot.lane.b32.xlu1 %v4440_v7, %s5678_s5 }
 0x774   : > { %4495 = vrot.lane.b32.xlu0 %v4482_v6, %s5677_s13  ;;  %s4875_s13 = sshll.u32 %s188_s20, 6 }
 0x776   : > { %4453 = vrot.lane.b32.xlu2 %v4440_v7, %s5673_s9  ;;  %4617 = vrot.lane.b32.xlu1 %v4532_v14, %s5681_s11  ;;  %s9075_s9 = scalar_lea.vmem [#allocation2], %s4875_s13  ;;  %s5067_s11 = sshll.u32 %s5730_s19, 6 }
 0x777   : > { %s4805_s23 = scalar_lea.hbm %s9139_s4, %s5067_s11  ;;  %s4794_s19 = scalar_lea.sflag [#allocation3], %s188_s20 }
 0x778   : > { %s4808_s7 = sshll.u32 %s4805_s23, 4  ;;  %s4809_s7 = int_to_ptr.hbm [resolvable:$true] %s4808_s7 }
 0x77c   : > { %4596 = vrot.lane.b32.xlu0 %v4397_v44, %s5682_s12 }
 0x77e   : > { %4547 = vrot.lane.b32.xlu2 %v4532_v14, %s5678_s5  ;;  %4519 = vrot.lane.b32.xlu1 %v4397_v44, %s5679_s8  ;;  %s4806_s5 = sshll.u32 %s9075_s9, 4  ;;  %s5619_s8 = sshra.s32 %s4809_s7, 4  ;;  %s4807_s5 = int_to_ptr.vmem [resolvable:$true] %s4806_s5  ;;  %s5620_s8 = int_to_ptr.hbm [resolvable:$true] %s5619_s8 }
 0x77f   : > { %s5621_s27 = scalar_lea.hbm %s5620_s8, 64  ;;  %p5626_p0 = scmp.lt.s32.totalorder %s5620_s8, %s9139_s4 }
 0x780   : > { %p5622_p11 = scmp.ne.s32.totalorder %s5620_s8, %s5621_s27 }
 0x782   : > { %p5623_p12 = pnand %p5622_p11, %p5747_p5 }
 0x784   : > { %4574 = vrot.lane.b32.xlu0 %v4559_v10, %s5680_s10  ;;  %p5624_p13 = pneg %p5623_p12  ;;  %s5625_s10 = scalar_lea.hbm %s9139_s4, 128 }
 0x785   : > { %p5627_p1 = scmp.lt.s32.totalorder %s5625_s10, %s5621_s27 }
 0x787   : > { %p5628_p2 = por %p5627_p1, %p5626_p0 }
 0x789   : > { %p5629_p3 = pnand %p5628_p2, %p5624_p13 }
 0x790   : > { %v5510_v11 = vpop.permute.xlu2 %5509 }
 0x791   : > { %v5511_v59 = vunpack.i.l.bf16 %v5510_v11  ;;  %v5512_v33 = vunpack.i.h.bf16 %v5510_v11 }
 0x798   : > { %v5515_v48 = vpop.permute.xlu2 %5514 }
 0x799   : > { %v5516_v55 = vunpack.i.l.bf16 %v5515_v48  ;;  %v5517_v49 = vunpack.i.h.bf16 %v5515_v48 }
 0x79b   : > { %v4626_v13 = vsel %vm1474_vm7, %v8838_v23, %v5516_v55  ;;  %v4627_v57 = vsel %vm1474_vm7, %v8845_v47, %v5517_v49 }
 0x7a0   : > { %v5540_v20 = vpop.permute.xlu2 %5539 }
 0x7a1   : > { %v5541_v2 = vunpack.i.l.bf16 %v5540_v20  ;;  %v5542_v55 = vunpack.i.h.bf16 %v5540_v20 }
 0x7a6   : > { %v5500_v0 = vpop.permute.xlu0 %5499 }
 0x7a7   : > { %v5501_v1 = vunpack.i.l.bf16 %v5500_v0  ;;  %v5502_v44 = vunpack.i.h.bf16 %v5500_v0 }
 0x7a8   : > { %v5505_v26 = vpop.permute.xlu1 %5504  ;;  %v5565_v38 = vpop.permute.xlu2 %5564 }
 0x7a9   : > { %v5506_v37 = vunpack.i.l.bf16 %v5505_v26  ;;  %v4640_v6 = vsel %vm3119_vm5, %v7918_v62, %v5501_v1  ;;  %v5507_v22 = vunpack.i.h.bf16 %v5505_v26  ;;  %v5566_v47 = vunpack.i.l.bf16 %v5565_v38 }
 0x7ab   : > { %v4648_v9 = vsel %vm3128_vm8, %v4640_v6, %v5506_v37 }
 0x7ac   : > { %v4656_v10 = vsel %vm3137_vm9, %v4648_v9, %v5511_v59 }
 0x7ae   : > { %v5520_v15 = vpop.permute.xlu0 %5519 }
 0x7af   : > { %v5521_v4 = vunpack.i.l.bf16 %v5520_v15  ;;  %v5522_v27 = vunpack.i.h.bf16 %v5520_v15 }
 0x7b0   : > { %v5530_v61 = vpop.permute.xlu1 %5529  ;;  %v5570_v56 = vpop.permute.xlu2 %5569 }
 0x7b1   : > { %v4633_v5 = vsel %vm9673_vm0, %v4626_v13, %v5521_v4  ;;  %v5531_v46 = vunpack.i.l.bf16 %v5530_v61  ;;  %v5532_v14 = vunpack.i.h.bf16 %v5530_v61  ;;  %v4634_v45 = vsel %vm9674_vm13, %v4627_v57, %v5522_v27 }
 0x7b2   : > { %v4641_v60 = vsel %vm3119_vm5, %v4633_v5, %v5502_v44  ;;  %v5572_v27 = vunpack.i.h.bf16 %v5570_v56 }
 0x7b3   : > { %v4649_v43 = vsel %vm3128_vm8, %v4641_v60, %v5507_v22  ;;  %v5567_v60 = vunpack.i.h.bf16 %v5565_v38 }
 0x7b4   : > { %v4657_v41 = vsel %vm3137_vm9, %v4649_v43, %v5512_v33 }
 0x7b6   : > { %v5525_v63 = vpop.permute.xlu0 %5524 }
 0x7b7   : > { %v5526_v40 = vunpack.i.l.bf16 %v5525_v63  ;;  %v5527_v53 = vunpack.i.h.bf16 %v5525_v63 }
 0x7b8   : > { %v5535_v16 = vpop.permute.xlu1 %5534  ;;  %v5590_v63 = vpop.permute.xlu2 %5589 }
 0x7b9   : > { %v4664_v23 = vsel %vm3146_vm10, %v4656_v10, %v5526_v40  ;;  %v4665_v21 = vsel %vm3146_vm10, %v4657_v41, %v5527_v53  ;;  %v5536_v34 = vunpack.i.l.bf16 %v5535_v16  ;;  %v5537_v0 = vunpack.i.h.bf16 %v5535_v16 }
 0x7ba   : > { %v4672_v62 = vsel %vm3155_vm11, %v4664_v23, %v5531_v46  ;;  %v4673_v58 = vsel %vm3155_vm11, %v4665_v21, %v5532_v14  ;;  %v5591_v21 = vunpack.i.l.bf16 %v5590_v63 }
 0x7bb   : > { %4711 = vmatmul.f32.vlgmr.msra.gmra.mxu2 %v4672_v62  ;;  %v4642_v24 = vsel %vm3119_vm5, %v4634_v45, %v5536_v34 }
 0x7bc   : > { %v4650_v61 = vsel %vm3128_vm8, %v4642_v24, %v5541_v2 }
 0x7be   : > { %v5545_v7 = vpop.permute.xlu0 %5544 }
 0x7bf   : > { %v5546_v54 = vunpack.i.l.bf16 %v5545_v7  ;;  %v5547_v6 = vunpack.i.h.bf16 %v5545_v7  ;;  %v5571_v7 = vunpack.i.l.bf16 %v5570_v56 }
 0x7c0   : > { %v5555_v25 = vpop.permute.xlu1 %5554  ;;  %v5595_v62 = vpop.permute.xlu2 %5594 }
 0x7c1   : > { %v5556_v52 = vunpack.i.l.bf16 %v5555_v25  ;;  %v4658_v37 = vsel %vm3137_vm9, %v4650_v61, %v5546_v54  ;;  %v5557_v22 = vunpack.i.h.bf16 %v5555_v25  ;;  %v5596_v57 = vunpack.i.l.bf16 %v5595_v62 }
 0x7c2   : > { %v5592_v61 = vunpack.i.h.bf16 %v5590_v63 }
 0x7c3   : > { %4714 = vmatmul.f32.gmra.mxu2 %v4673_v58 }
 0x7c6   : > { %v5550_v30 = vpop.permute.xlu0 %5549 }
 0x7c7   : > { %v5551_v11 = vunpack.i.l.bf16 %v5550_v30  ;;  %v5552_v40 = vunpack.i.h.bf16 %v5550_v30 }
 0x7c8   : > { %v5560_v48 = vpop.permute.xlu1 %5559 }
 0x7c9   : > { %v4628_v26 = vsel %vm1474_vm7, %v8862_v18, %v5551_v11  ;;  %v5561_v15 = vunpack.i.l.bf16 %v5560_v48  ;;  %v5562_v20 = vunpack.i.h.bf16 %v5560_v48  ;;  %v4629_v10 = vsel %vm1474_vm7, %v8875_v51, %v5552_v40 }
 0x7ca   : > { %v4635_v1 = vsel %vm9675_vm4, %v4628_v26, %v5556_v52  ;;  %v4636_v53 = vsel %vm9676_vm15, %v4629_v10, %v5557_v22  ;;  %v4573_v52 = vpop.permute.xlu2 %4572  ;;  %v5597_v26 = vunpack.i.h.bf16 %v5595_v62 }
 0x7cb   : > { %v4666_v4 = vsel %vm3146_vm10, %v4658_v37, %v5561_v15  ;;  %v4643_v13 = vsel %vm3119_vm5, %v4635_v1, %v5537_v0  ;;  %v4644_v38 = vsel %vm3119_vm5, %v4636_v53, %v5571_v7  ;;  %v4753_v53 = vpop.f32.mrf.mxu1 }
 0x7cc   : > { %v4674_v9 = vsel %vm3155_vm11, %v4666_v4, %v5566_v47  ;;  %v4651_v5 = vsel %vm3128_vm8, %v4643_v13, %v5542_v55 }
 0x7cd   : > { %4717 = vmatmul.f32.gmra.mxu2 %v4674_v9  ;;  %v4659_v59 = vsel %vm3137_vm9, %v4651_v5, %v5547_v6 }
 0x7ce   : > { %v5575_v18 = vpop.permute.xlu0 %5574  ;;  %v4667_v16 = vsel %vm3146_vm10, %v4659_v59, %v5562_v20 }
 0x7cf   : > { %v4675_v46 = vsel %vm3155_vm11, %v4667_v16, %v5567_v60  ;;  %v5576_v43 = vunpack.i.l.bf16 %v5575_v18  ;;  %v5577_v45 = vunpack.i.h.bf16 %v5575_v18 }
 0x7d0   : > { %v5580_v44 = vpop.permute.xlu1 %5579 }
 0x7d1   : > { %v5581_v41 = vunpack.i.l.bf16 %v5580_v44  ;;  %v4652_v51 = vsel %vm3128_vm8, %v4644_v38, %v5576_v43 }
 0x7d2   : > { %v4454_v9 = vpop.permute.xlu2 %4453 }
 0x7d3   : > { %v4660_v34 = vsel %vm3137_vm9, %v4652_v51, %v5581_v41  ;;  %v4756_v41 = vpop.f32.mrf.mxu1 }
 0x7d4   : > { %v4668_v56 = vsel %vm3146_vm10, %v4660_v34, %v5596_v57 }
 0x7d5   : > { %4720 = vmatmul.f32.gmra.mxu2 %v4675_v46 }
 0x7d6   : > { %v4518_v23 = vpop.permute.xlu0 %4517 }
 0x7d8   : > { %v5585_v33 = vpop.permute.xlu1 %5584 }
 0x7d9   : > { %v5586_v49 = vunpack.i.l.bf16 %v5585_v33  ;;  %v5587_v30 = vunpack.i.h.bf16 %v5585_v33 }
 0x7da   : > { %v4548_v60 = vpop.permute.xlu2 %4547 }
 0x7db   : > { %v4630_v14 = vsel %vm1474_vm7, %v8891_v8, %v5586_v49  ;;  %v5582_v8 = vunpack.i.h.bf16 %v5580_v44  ;;  %v4631_v15 = vsel %vm1474_vm7, %v8906_v32, %v5587_v30  ;;  %v4632_v44 = vsel %vm1474_vm7, %v8924_v28, %v4454_v9 }
 0x7dc   : > { %v4637_v25 = vsel %vm9677_vm1, %v4630_v14, %v5591_v21  ;;  %v4638_v37 = vsel %vm9678_vm14, %v4631_v15, %v5592_v61  ;;  %v4680_v28 = vperm.slane %v8830_v29, 4 }
 0x7dd   : > { %v4645_v58 = vsel %vm3119_vm5, %v4637_v25, %v5572_v27  ;;  %v4646_v6 = vsel %vm3119_vm5, %v4638_v37, %v4518_v23  ;;  %v4759_v27 = vpop.f32.mrf.mxu1 }
 0x7de   : > { %v5600_v24 = vpop.permute.xlu0 %5599  ;;  %v4653_v11 = vsel %vm3128_vm8, %v4645_v58, %v5577_v45 }
 0x7df   : > { %v5601_v54 = vunpack.i.l.bf16 %v5600_v24  ;;  %v4661_v0 = vsel %vm3137_vm9, %v4653_v11, %v5582_v8  ;;  %v5602_v55 = vunpack.i.h.bf16 %v5600_v24 }
 0x7e0   : > { %v4546_v2 = vpop.permute.xlu1 %4545  ;;  %v4669_v1 = vsel %vm3146_vm10, %v4661_v0, %v5597_v26 }
 0x7e1   : > { %v4676_v48 = vsel %vm3155_vm11, %v4668_v56, %v5601_v54  ;;  %v4677_v13 = vsel %vm3155_vm11, %v4669_v1, %v5602_v55  ;;  %v4654_v5 = vsel %vm3128_vm8, %v4646_v6, %v4546_v2 }
 0x7e2   : > { %4723 = vmatmul.f32.gmra.mxu2 %v4676_v48  ;;  %v4662_v59 = vsel %vm3137_vm9, %v4654_v5, %v4573_v52 }
 0x7e5   : > { %v4762_v25 = vpop.f32.mrf.mxu1 }
 0x7e6   : > { %v4496_v47 = vpop.permute.xlu0 %4495 }
 0x7e7   : > { %v4639_v40 = vsel %vm9679_vm3, %v4632_v44, %v4496_v47 }
 0x7e8   : > { %v4618_v4 = vpop.permute.xlu1 %4617 }
 0x7ea   : > { %4726 = vmatmul.f32.gmra.mxu2 %v4677_v13 }
 0x7ee   : > { %v4597_v18 = vpop.permute.xlu0 %4596 }
 0x7ef   : > { %v4670_v32 = vsel %vm3146_vm10, %v4662_v59, %v4597_v18 }
 0x7f0   : > { %v4520_v63 = vpop.permute.xlu1 %4519  ;;  %v4678_v20 = vsel %vm3155_vm11, %v4670_v32, %v4618_v4 }
 0x7f1   : > { %v4647_v16 = vsel %vm3119_vm5, %v4639_v40, %v4520_v63 }
 0x7f2   : > { %4729 = vmatmul.f32.gmra.mxu2 %v4678_v20  ;;  %v4655_v10 = vsel %vm3128_vm8, %v4647_v16, %v4548_v60 }
 0x7f6   : > { %v4575_v46 = vpop.permute.xlu0 %4574 }
 0x7f7   : > { %v4663_v22 = vsel %vm3137_vm9, %v4655_v10, %v4575_v46 }
 0x7f8   : > { %v4671_v23 = vsel %vm3146_vm10, %v4663_v22, %v8346_v3 }
 0x7f9   : > { %v4679_v62 = vsel %vm3155_vm11, %v4671_v23, %v8351_v17 }
 0x7fa   : > { %4732 = vmatmul.f32.gmra.mxu2 %v4679_v62 }
 0x83e   : > { %v4712_v43 = vpop.f32.mrf.mxu2 }
 0x83f   : > { %v4713_v33 = vadd.f32 %v4712_v43, %v4680_v28 }
 0x841   : > { %v4754_v7 = vadd.f32 %v4753_v53, %v4713_v33 }
 0x843   : > { %v4777_v49 = vadd.f32 %v4754_v7, %v8466_v36 }
 0x845   : > { %4785 = vst.msk [vmem:[%s9075_s9] sm:$0xff] %vm1474_vm7, %v4777_v49 }
 0x846   : > { %v4715_v3 = vpop.f32.mrf.mxu2 }
 0x847   : > { %v4716_v17 = vadd.f32 %v4715_v3, %v4680_v28 }
 0x849   : > { %v4757_v29 = vadd.f32 %v4756_v41, %v4716_v17 }
 0x84b   : > { %v4778_v21 = vadd.f32 %v4757_v29, %v8470_v39  ;;  %v4765_v39 = vpop.f32.mrf.mxu1 }
 0x84d   : > { %4786 = vst.msk [vmem:[%s9075_s9 + $0x8] sm:$0xff] %vm1474_vm7, %v4778_v21 }
 0x850   : > { %v4718_v38 = vpop.f32.mrf.mxu2 }
 0x851   : > { %v4719_v14 = vadd.f32 %v4718_v38, %v4680_v28 }
 0x853   : > { %v4760_v36 = vadd.f32 %v4759_v27, %v4719_v14 }
 0x855   : > { %v4779_v51 = vadd.f32 %v4760_v36, %v8522_v19  ;;  %v4768_v19 = vpop.f32.mrf.mxu1 }
 0x857   : > { %4787 = vst.msk [vmem:[%s9075_s9 + $0x10] sm:$0xff] %vm1474_vm7, %v4779_v51 }
 0x858   : > { %v4721_v34 = vpop.f32.mrf.mxu2 }
 0x859   : > { %v4722_v58 = vadd.f32 %v4721_v34, %v4680_v28 }
 0x85b   : > { %v4763_v57 = vadd.f32 %v4762_v25, %v4722_v58 }
 0x85d   : > { %v4780_v45 = vadd.f32 %v4763_v57, %v8526_v12  ;;  %v4771_v12 = vpop.f32.mrf.mxu1 }
 0x85f   : > { %4788 = vst.msk [vmem:[%s9075_s9 + $0x18] sm:$0xff] %vm1474_vm7, %v4780_v45 }
 0x865   : > { %v4724_v24 = vpop.f32.mrf.mxu2 }
 0x866   : > { %v4725_v54 = vadd.f32 %v4724_v24, %v4680_v28 }
 0x868   : > { %v4766_v30 = vadd.f32 %v4765_v39, %v4725_v54 }
 0x86a   : > { %v4781_v2 = vadd.f32 %v4766_v30, %v8530_v35 }
 0x86c   : > { %4789 = vst.msk [vmem:[%s9075_s9 + $0x20] sm:$0xff] %vm1474_vm7, %v4781_v2 }
 0x86d   : > { %v4727_v56 = vpop.f32.mrf.mxu2 }
 0x86e   : > { %v4728_v11 = vadd.f32 %v4727_v56, %v4680_v28 }
 0x870   : > { %v4769_v52 = vadd.f32 %v4768_v19, %v4728_v11 }
 0x872   : > { %v4782_v8 = vadd.f32 %v4769_v52, %v8534_v50  ;;  %v4774_v50 = vpop.f32.mrf.mxu1 }
 0x874   : > { %4790 = vst.msk [vmem:[%s9075_s9 + $0x28] sm:$0xff] %vm1474_vm7, %v4782_v8 }
 0x875   : > { %v4730_v48 = vpop.f32.mrf.mxu2 }
 0x876   : > { %v4731_v0 = vadd.f32 %v4730_v48, %v4680_v28 }
 0x878   : > { %v4772_v26 = vadd.f32 %v4771_v12, %v4731_v0 }
 0x87a   : > { %v4783_v35 = vadd.f32 %v4772_v26, %v8539_v31 }
 0x87c   : > { %4791 = vst.msk [vmem:[%s9075_s9 + $0x30] sm:$0xff] %vm1474_vm7, %v4783_v35 }
 0x87d   : > { %v4733_v15 = vpop.f32.mrf.mxu2 }
 0x87e   : > { %v4734_v61 = vadd.f32 %v4733_v15, %v4680_v28 }
 0x880   : > { %v4775_v55 = vadd.f32 %v4774_v50, %v4734_v61 }
 0x882   : > { %v4784_v47 = vadd.f32 %v4775_v55, %v8574_v42 }
 0x884   : > { %4792 = vst.msk [vmem:[%s9075_s9 + $0x38] sm:$0xff] %vm1474_vm7, %v4784_v47 }
 0x885   : > { %5632 = shalt.err (!%p5629_p3)
}
 0x886   : > { %s5683_s14 = smov 128   ;;  %s9680_s20 = smov 8  }
 0x887   : > { %5089 = dma.vmem_to_hbm [thread:$0]  (%p5747_p5), %s4807_s5, 1024, %s4809_s7, %s4794_s19, %s5683_s14, %s5683_s14, %s9680_s20  }
 0x888 PF: > { %p5095_p4 = scmp.ge.s32.totalorder %s5667_s18, 2  ;;  %s4823_s13 = sand.u32 1, %s5655_s15  }
 0x889   : > { %s4824_s9 = scalar_lea.sflag [#allocation3], %s4823_s13 }
 0x88a   : > { %p5092_p7 = pnand %p5095_p4, %p5751_p6 }
 0x88c   : > { %p5093_p8 = pneg %p5092_p7 }
 0x88e   : > { %5650 = dma.done.wait (%p5093_p8), %s4824_s9, 1024  }
 0x88f   : > { %5652 = vsyncadd (%p5093_p8), %s4824_s9, 4294966272  ;;  %p14_p9 = scmp.ge.s32.totalorder %s5734_s21, 4   ;;  %s9681_s15 = smov %s5659_s16 }
 0x890   : > { %s9682_s16 = smov %s5663_s17  ;;  %s9683_s17 = smov %s5745_s24 }
 0x891   : > { %s9684_s18 = smov %s5734_s21  ;;  %16 = sbr.rel (!%p14_p9) target bundleno = 3 (0x3), region = 74 }
 0x896   :  { %4830 = vsyncpa [#allocation3], 1 }
 0x897   :  { %4832 = vsyncpa [#allocation3 + $0x1], 1 }

</bundles_post_ra>
